<compile_context>
chip_gen: v7x
topology: tpu7x:2x2x1
jax: 0.10.0
libtpu: 0.0.40
codegen_flags: <defaults>
</compile_context>

<pallas_src>
import jax
import jax.numpy as jnp
from jax.experimental import pallas as pl
from jax.experimental.pallas import tpu as pltpu


def dqn_mlp_kernel(x_ref, w12_ref, b12_ref, w3_ref, b3_ref, w4_ref, b4_ref,
                   o_ref):
    x = x_ref[...]                                           # (TM, 1152) bf16

    # fused Linear(1056->512) o Linear(512->512), then the first ReLU
    h = jnp.dot(x, w12_ref[...], preferred_element_type=jnp.float32)
    h = jnp.maximum(h + b12_ref[...], 0.0)

    # Linear(512->128) + ReLU
    h = jnp.dot(h.astype(jnp.bfloat16), w3_ref[...],
                preferred_element_type=jnp.float32)
    h = jnp.maximum(h + b3_ref[...], 0.0)

    # Linear(128 -> n_actions)   (output dim zero-padded to 128 lanes)
    out = jnp.dot(h.astype(jnp.bfloat16), w4_ref[...],
                  preferred_element_type=jnp.float32) + b4_ref[...]
    o_ref[...] = out.astype(o_ref.dtype)


def init_params(key, n_actions):
    """PyTorch-Linear-style init U(-1/sqrt(in), 1/sqrt(in)); f32 masters, (in,out)."""
    dims = [(1056, 512), (512, 512), (512, 128), (128, n_actions)]
    params = {}
    for i, (din, dout) in enumerate(dims, start=1):
        key, kw, kb = jax.random.split(key, 3)
        bound = 1.0 / (din ** 0.5)
        params[f"w{i}"] = jax.random.uniform(
            kw, (din, dout), jnp.float32, minval=-bound, maxval=bound)
        params[f"b{i}"] = jax.random.uniform(
            kb, (1, dout), jnp.float32, minval=-bound, maxval=bound)
    return params


def prepare_params(raw):
    """Offline: fuse L1+L2, cast weights to bf16, lane-pad K and the output dim."""
    w1, b1 = raw["w1"].astype(jnp.float32), raw["b1"].astype(jnp.float32)
    w2, b2 = raw["w2"].astype(jnp.float32), raw["b2"].astype(jnp.float32)
    w3, b3 = raw["w3"].astype(jnp.float32), raw["b3"].astype(jnp.float32)
    w4, b4 = raw["w4"].astype(jnp.float32), raw["b4"].astype(jnp.float32)

    # Algebraic fusion of the two back-to-back Linears (no ReLU between them).
    w12 = w1 @ w2                       # (1056, 512)
    b12 = b1 @ w2 + b2                  # (1, 512)

    d_in = w12.shape[0]
    d_in_pad = pl.cdiv(d_in, 128) * 128                  # 1056 -> 1152
    if d_in_pad != d_in:
        w12 = jnp.pad(w12, ((0, d_in_pad - d_in), (0, 0)))

    n_actions = w4.shape[1]
    n_out_pad = max(128, pl.cdiv(n_actions, 128) * 128)
    if n_out_pad != n_actions:
        w4 = jnp.pad(w4, ((0, 0), (0, n_out_pad - n_actions)))
        b4 = jnp.pad(b4, ((0, 0), (0, n_out_pad - n_actions)))

    return {
        "w12": w12.astype(jnp.bfloat16), "b12": b12,
        "w3": w3.astype(jnp.bfloat16), "b3": b3,
        "w4": w4.astype(jnp.bfloat16), "b4": b4,
        "d_in": d_in, "d_in_pad": d_in_pad,
        "n_actions": n_actions, "n_out_pad": n_out_pad,
    }


def _pick_tm(batch):
    """Batch tile: round-to-16 at tiny batch; >=2 grid steps and <=512 at large."""
    r16 = lambda n: ((n + 15) // 16) * 16
    if batch <= 128:
        return r16(max(batch, 1))
    return min(512, r16(pl.cdiv(batch, 2)))


def dqn_forward(x, params, *, tm=None):
    """x: (B, C, H, W) with C*H*W == 1056 (any float/int dtype)."""
    w12, b12 = params["w12"], params["b12"]
    w3, b3 = params["w3"], params["b3"]
    w4, b4 = params["w4"], params["b4"]
    d_in, d_in_pad = params["d_in"], params["d_in_pad"]
    n_actions, n_out_pad = params["n_actions"], params["n_out_pad"]

    B = x.shape[0]
    # mirrors x.view(B, -1).float(); bf16 for the MXU-native path.
    # TODO(synk): under jit the reshape/cast/pad below fuses into one pass over
    # x; verify in HLO if this wrapper ever runs unjitted on a hot path.
    x_flat = x.reshape(B, -1).astype(jnp.bfloat16)
    assert x_flat.shape[1] == d_in

    if tm is None:
        tm = _pick_tm(B)
    b_pad = pl.cdiv(B, tm) * tm

    # single pad: batch -> multiple of tm, feature 1056 -> 1152 (zero-padded)
    x_flat = jnp.pad(x_flat, ((0, b_pad - B), (0, d_in_pad - d_in)))

    def build(single_buffer_weights):
        if single_buffer_weights:
            # constant index_map => fetched once; 1 buffer, no wasted VMEM copy
            resident = lambda arr: pl.BlockSpec(
                arr.shape, lambda i: (0, 0), pipeline_mode=pl.Buffered(1))
        else:
            resident = lambda arr: pl.BlockSpec(arr.shape, lambda i: (0, 0))
        return pl.pallas_call(
            dqn_mlp_kernel,
            out_shape=jax.ShapeDtypeStruct((b_pad, n_out_pad), jnp.float32),
            grid=(b_pad // tm,),
            in_specs=[
                pl.BlockSpec((tm, d_in_pad), lambda i: (i, 0)),  # x: batch-tiled
                resident(w12), resident(b12),                    # weights/biases
                resident(w3), resident(b3),                      # stay VMEM-
                resident(w4), resident(b4),                      # resident
            ],
            out_specs=pl.BlockSpec((tm, n_out_pad), lambda i: (i, 0)),
            compiler_params=pltpu.CompilerParams(
                dimension_semantics=("parallel",)),              # megacore on v7x
        )

    try:
        out = build(True)(x_flat, w12, b12, w3, b3, w4, b4)
    except Exception:
        # Fallback for jax versions that reject pipeline_mode=Buffered(1) here.
        out = build(False)(x_flat, w12, b12, w3, b3, w4, b4)

    return out[:B, :n_actions]


if __name__ == "__main__":
    n_actions = 6
    key = jax.random.PRNGKey(0)
    k_x, k_p = jax.random.split(key)

    # small NCHW input whose flattened size is 1056 (4 * 12 * 22 = 1056)
    x = jax.random.normal(k_x, (2, 4, 12, 22), jnp.float32)
    raw = init_params(k_p, n_actions)
    params = prepare_params(raw)

    out = dqn_forward(x, params)
    jax.block_until_ready(out)
    assert out.shape == (2, n_actions) and out.dtype == jnp.float32
    assert bool(jnp.all(jnp.isfinite(out)))

    # plain-JAX f32 reference of the (well-defined) unfused chain
    xr = x.reshape(2, -1).astype(jnp.float32)
    h = xr @ raw["w1"] + raw["b1"]
    h = h @ raw["w2"] + raw["b2"]
    h = jnp.maximum(h, 0.0)
    h = jnp.maximum(h @ raw["w3"] + raw["b3"], 0.0)
    ref = h @ raw["w4"] + raw["b4"]
    err = float(jnp.max(jnp.abs(out - ref)))
    assert err < 2e-1, f"max abs err vs f32 reference too large: {err}"

    print("KERNEL_OK")
</pallas_src>

<mosaic_0001>
module attributes {stable_mosaic.version = 11 : i64} {
  func.func @dqn_mlp_kernel(%arg0: i32, %arg1: memref<16x1152xbf16, #tpu.memory_space<vmem>>, %arg2: memref<1152x512xbf16, #tpu.memory_space<vmem>>, %arg3: memref<1x512xf32, #tpu.memory_space<vmem>>, %arg4: memref<512x128xbf16, #tpu.memory_space<vmem>>, %arg5: memref<1x128xf32, #tpu.memory_space<vmem>>, %arg6: memref<128x128xbf16, #tpu.memory_space<vmem>>, %arg7: memref<1x128xf32, #tpu.memory_space<vmem>>, %arg8: memref<16x128xf32, #tpu.memory_space<vmem>>) attributes {dimension_semantics = [#tpu.dimension_semantics<parallel>], iteration_bounds = array<i64: 1>, scalar_prefetch = 0 : i64, scratch_operands = 0 : i64, tpu.core_type = #tpu.core_type<tc>, window_params = [{transform_indices = @transform_0, window_bounds = array<i64: 16, 1152>}, {pipeline_mode = #tpu.pipeline_mode<synchronous>, transform_indices = @transform_1, window_bounds = array<i64: 1152, 512>}, {pipeline_mode = #tpu.pipeline_mode<synchronous>, transform_indices = @transform_2, window_bounds = array<i64: 1, 512>}, {pipeline_mode = #tpu.pipeline_mode<synchronous>, transform_indices = @transform_3, window_bounds = array<i64: 512, 128>}, {pipeline_mode = #tpu.pipeline_mode<synchronous>, transform_indices = @transform_4, window_bounds = array<i64: 1, 128>}, {pipeline_mode = #tpu.pipeline_mode<synchronous>, transform_indices = @transform_5, window_bounds = array<i64: 128, 128>}, {pipeline_mode = #tpu.pipeline_mode<synchronous>, transform_indices = @transform_6, window_bounds = array<i64: 1, 128>}, {transform_indices = @transform_7, window_bounds = array<i64: 16, 128>}]} {
    %c0 = arith.constant 0 : index
    %c0_0 = arith.constant 0 : index
    %0 = vector.load %arg1[%c0, %c0_0] : memref<16x1152xbf16, #tpu.memory_space<vmem>>, vector<16x1152xbf16>
    %c0_1 = arith.constant 0 : index
    %c0_2 = arith.constant 0 : index
    %1 = vector.load %arg2[%c0_1, %c0_2] : memref<1152x512xbf16, #tpu.memory_space<vmem>>, vector<1152x512xbf16>
    %cst = arith.constant dense<0.000000e+00> : vector<16x512xf32>
    %2 = tpu.matmul %0, %1, %cst {dimension_numbers = #tpu.dot_dimension_numbers<[1], [0], [0], [1], [0, 0, 1, 1], [], []>} : vector<16x1152xbf16>, vector<1152x512xbf16>, vector<16x512xf32> -> vector<16x512xf32>
    %c0_3 = arith.constant 0 : index
    %c0_4 = arith.constant 0 : index
    %3 = vector.load %arg3[%c0_3, %c0_4] : memref<1x512xf32, #tpu.memory_space<vmem>>, vector<1x512xf32>
    %4 = vector.broadcast %3 : vector<1x512xf32> to vector<16x512xf32>
    %5 = arith.addf %2, %4 : vector<16x512xf32>
    %cst_5 = arith.constant 0.000000e+00 : f32
    %6 = vector.broadcast %cst_5 : f32 to vector<16x512xf32>
    %7 = arith.maximumf %5, %6 : vector<16x512xf32>
    %8 = arith.truncf %7 : vector<16x512xf32> to vector<16x512xbf16>
    %c0_6 = arith.constant 0 : index
    %c0_7 = arith.constant 0 : index
    %9 = vector.load %arg4[%c0_6, %c0_7] : memref<512x128xbf16, #tpu.memory_space<vmem>>, vector<512x128xbf16>
    %cst_8 = arith.constant dense<0.000000e+00> : vector<16x128xf32>
    %10 = tpu.matmul %8, %9, %cst_8 {dimension_numbers = #tpu.dot_dimension_numbers<[1], [0], [0], [1], [0, 0, 1, 1], [], []>} : vector<16x512xbf16>, vector<512x128xbf16>, vector<16x128xf32> -> vector<16x128xf32>
    %c0_9 = arith.constant 0 : index
    %c0_10 = arith.constant 0 : index
    %11 = vector.load %arg5[%c0_9, %c0_10] : memref<1x128xf32, #tpu.memory_space<vmem>>, vector<1x128xf32>
    %12 = vector.broadcast %11 : vector<1x128xf32> to vector<16x128xf32>
    %13 = arith.addf %10, %12 : vector<16x128xf32>
    %cst_11 = arith.constant 0.000000e+00 : f32
    %14 = vector.broadcast %cst_11 : f32 to vector<16x128xf32>
    %15 = arith.maximumf %13, %14 : vector<16x128xf32>
    %16 = arith.truncf %15 : vector<16x128xf32> to vector<16x128xbf16>
    %c0_12 = arith.constant 0 : index
    %c0_13 = arith.constant 0 : index
    %17 = vector.load %arg6[%c0_12, %c0_13] : memref<128x128xbf16, #tpu.memory_space<vmem>>, vector<128x128xbf16>
    %cst_14 = arith.constant dense<0.000000e+00> : vector<16x128xf32>
    %18 = tpu.matmul %16, %17, %cst_14 {dimension_numbers = #tpu.dot_dimension_numbers<[1], [0], [0], [1], [0, 0, 1, 1], [], []>} : vector<16x128xbf16>, vector<128x128xbf16>, vector<16x128xf32> -> vector<16x128xf32>
    %c0_15 = arith.constant 0 : index
    %c0_16 = arith.constant 0 : index
    %19 = vector.load %arg7[%c0_15, %c0_16] : memref<1x128xf32, #tpu.memory_space<vmem>>, vector<1x128xf32>
    %20 = vector.broadcast %19 : vector<1x128xf32> to vector<16x128xf32>
    %21 = arith.addf %18, %20 : vector<16x128xf32>
    %c0_17 = arith.constant 0 : index
    %c0_18 = arith.constant 0 : index
    %22 = vector.load %arg8[%c0_17, %c0_18] : memref<16x128xf32, #tpu.memory_space<vmem>>, vector<16x128xf32>
    tpu.vector_store %arg8[%c0_17, %c0_18], %21 {strides = array<i32>} : memref<16x128xf32, #tpu.memory_space<vmem>>, vector<16x128xf32>,
    return
  }
  func.func @transform_0(%arg0: i32) -> (i32, i32) {
    %c0_i32 = arith.constant 0 : i32
    %c0_i32_0 = arith.constant 0 : i32
    return %arg0, %c0_i32 : i32, i32
  }
  func.func @transform_1(%arg0: i32) -> (i32, i32) {
    %c0_i32 = arith.constant 0 : i32
    %c0_i32_0 = arith.constant 0 : i32
    %c0_i32_1 = arith.constant 0 : i32
    return %c0_i32, %c0_i32_0 : i32, i32
  }
  func.func @transform_2(%arg0: i32) -> (i32, i32) {
    %c0_i32 = arith.constant 0 : i32
    %c0_i32_0 = arith.constant 0 : i32
    %c0_i32_1 = arith.constant 0 : i32
    return %c0_i32, %c0_i32_0 : i32, i32
  }
  func.func @transform_3(%arg0: i32) -> (i32, i32) {
    %c0_i32 = arith.constant 0 : i32
    %c0_i32_0 = arith.constant 0 : i32
    %c0_i32_1 = arith.constant 0 : i32
    return %c0_i32, %c0_i32_0 : i32, i32
  }
  func.func @transform_4(%arg0: i32) -> (i32, i32) {
    %c0_i32 = arith.constant 0 : i32
    %c0_i32_0 = arith.constant 0 : i32
    %c0_i32_1 = arith.constant 0 : i32
    return %c0_i32, %c0_i32_0 : i32, i32
  }
  func.func @transform_5(%arg0: i32) -> (i32, i32) {
    %c0_i32 = arith.constant 0 : i32
    %c0_i32_0 = arith.constant 0 : i32
    %c0_i32_1 = arith.constant 0 : i32
    return %c0_i32, %c0_i32_0 : i32, i32
  }
  func.func @transform_6(%arg0: i32) -> (i32, i32) {
    %c0_i32 = arith.constant 0 : i32
    %c0_i32_0 = arith.constant 0 : i32
    %c0_i32_1 = arith.constant 0 : i32
    return %c0_i32, %c0_i32_0 : i32, i32
  }
  func.func @transform_7(%arg0: i32) -> (i32, i32) {
    %c0_i32 = arith.constant 0 : i32
    %c0_i32_0 = arith.constant 0 : i32
    return %arg0, %c0_i32 : i32, i32
  }
}

module attributes {stable_mosaic.version = 11 : i64} {
  func.func @dqn_mlp_kernel(%arg0: i32, %arg1: memref<16x1152xbf16, #tpu.memory_space<vmem>>, %arg2: memref<1152x512xbf16, #tpu.memory_space<vmem>>, %arg3: memref<1x512xf32, #tpu.memory_space<vmem>>, %arg4: memref<512x128xbf16, #tpu.memory_space<vmem>>, %arg5: memref<1x128xf32, #tpu.memory_space<vmem>>, %arg6: memref<128x128xbf16, #tpu.memory_space<vmem>>, %arg7: memref<1x128xf32, #tpu.memory_space<vmem>>, %arg8: memref<16x128xf32, #tpu.memory_space<vmem>>) attributes {dimension_semantics = [#tpu.dimension_semantics<parallel>], iteration_bounds = array<i64: 1>, scalar_prefetch = 0 : i64, scratch_operands = 0 : i64, tpu.core_type = #tpu.core_type<tc>, window_params = [{transform_indices = @transform_0, window_bounds = array<i64: 16, 1152>}, {pipeline_mode = #tpu.pipeline_mode<synchronous>, transform_indices = @transform_1, window_bounds = array<i64: 1152, 512>}, {pipeline_mode = #tpu.pipeline_mode<synchronous>, transform_indices = @transform_2, window_bounds = array<i64: 1, 512>}, {pipeline_mode = #tpu.pipeline_mode<synchronous>, transform_indices = @transform_3, window_bounds = array<i64: 512, 128>}, {pipeline_mode = #tpu.pipeline_mode<synchronous>, transform_indices = @transform_4, window_bounds = array<i64: 1, 128>}, {pipeline_mode = #tpu.pipeline_mode<synchronous>, transform_indices = @transform_5, window_bounds = array<i64: 128, 128>}, {pipeline_mode = #tpu.pipeline_mode<synchronous>, transform_indices = @transform_6, window_bounds = array<i64: 1, 128>}, {transform_indices = @transform_7, window_bounds = array<i64: 16, 128>}]} {
    %c0 = arith.constant 0 : index
    %c0_0 = arith.constant 0 : index
    %0 = vector.load %arg1[%c0, %c0_0] : memref<16x1152xbf16, #tpu.memory_space<vmem>>, vector<16x1152xbf16>
    %c0_1 = arith.constant 0 : index
    %c0_2 = arith.constant 0 : index
    %1 = vector.load %arg2[%c0_1, %c0_2] : memref<1152x512xbf16, #tpu.memory_space<vmem>>, vector<1152x512xbf16>
    %cst = arith.constant dense<0.000000e+00> : vector<16x512xf32>
    %2 = tpu.matmul %0, %1, %cst {dimension_numbers = #tpu.dot_dimension_numbers<[1], [0], [0], [1], [0, 0, 1, 1], [], []>} : vector<16x1152xbf16>, vector<1152x512xbf16>, vector<16x512xf32> -> vector<16x512xf32>
    %c0_3 = arith.constant 0 : index
    %c0_4 = arith.constant 0 : index
    %3 = vector.load %arg3[%c0_3, %c0_4] : memref<1x512xf32, #tpu.memory_space<vmem>>, vector<1x512xf32>
    %4 = vector.broadcast %3 : vector<1x512xf32> to vector<16x512xf32>
    %5 = arith.addf %2, %4 : vector<16x512xf32>
    %cst_5 = arith.constant 0.000000e+00 : f32
    %6 = vector.broadcast %cst_5 : f32 to vector<16x512xf32>
    %7 = arith.maximumf %5, %6 : vector<16x512xf32>
    %8 = arith.truncf %7 : vector<16x512xf32> to vector<16x512xbf16>
    %c0_6 = arith.constant 0 : index
    %c0_7 = arith.constant 0 : index
    %9 = vector.load %arg4[%c0_6, %c0_7] : memref<512x128xbf16, #tpu.memory_space<vmem>>, vector<512x128xbf16>
    %cst_8 = arith.constant dense<0.000000e+00> : vector<16x128xf32>
    %10 = tpu.matmul %8, %9, %cst_8 {dimension_numbers = #tpu.dot_dimension_numbers<[1], [0], [0], [1], [0, 0, 1, 1], [], []>} : vector<16x512xbf16>, vector<512x128xbf16>, vector<16x128xf32> -> vector<16x128xf32>
    %c0_9 = arith.constant 0 : index
    %c0_10 = arith.constant 0 : index
    %11 = vector.load %arg5[%c0_9, %c0_10] : memref<1x128xf32, #tpu.memory_space<vmem>>, vector<1x128xf32>
    %12 = vector.broadcast %11 : vector<1x128xf32> to vector<16x128xf32>
    %13 = arith.addf %10, %12 : vector<16x128xf32>
    %cst_11 = arith.constant 0.000000e+00 : f32
    %14 = vector.broadcast %cst_11 : f32 to vector<16x128xf32>
    %15 = arith.maximumf %13, %14 : vector<16x128xf32>
    %16 = arith.truncf %15 : vector<16x128xf32> to vector<16x128xbf16>
    %c0_12 = arith.constant 0 : index
    %c0_13 = arith.constant 0 : index
    %17 = vector.load %arg6[%c0_12, %c0_13] : memref<128x128xbf16, #tpu.memory_space<vmem>>, vector<128x128xbf16>
    %cst_14 = arith.constant dense<0.000000e+00> : vector<16x128xf32>
    %18 = tpu.matmul %16, %17, %cst_14 {dimension_numbers = #tpu.dot_dimension_numbers<[1], [0], [0], [1], [0, 0, 1, 1], [], []>} : vector<16x128xbf16>, vector<128x128xbf16>, vector<16x128xf32> -> vector<16x128xf32>
    %c0_15 = arith.constant 0 : index
    %c0_16 = arith.constant 0 : index
    %19 = vector.load %arg7[%c0_15, %c0_16] : memref<1x128xf32, #tpu.memory_space<vmem>>, vector<1x128xf32>
    %20 = vector.broadcast %19 : vector<1x128xf32> to vector<16x128xf32>
    %21 = arith.addf %18, %20 : vector<16x128xf32>
    %c0_17 = arith.constant 0 : index
    %c0_18 = arith.constant 0 : index
    %22 = vector.load %arg8[%c0_17, %c0_18] : memref<16x128xf32, #tpu.memory_space<vmem>>, vector<16x128xf32>
    tpu.vector_store %arg8[%c0_17, %c0_18], %21 {strides = array<i32>} : memref<16x128xf32, #tpu.memory_space<vmem>>, vector<16x128xf32>,
    return
  }
  func.func @transform_0(%arg0: i32) -> (i32, i32) {
    %c0_i32 = arith.constant 0 : i32
    %c0_i32_0 = arith.constant 0 : i32
    return %arg0, %c0_i32 : i32, i32
  }
  func.func @transform_1(%arg0: i32) -> (i32, i32) {
    %c0_i32 = arith.constant 0 : i32
    %c0_i32_0 = arith.constant 0 : i32
    %c0_i32_1 = arith.constant 0 : i32
    return %c0_i32, %c0_i32_0 : i32, i32
  }
  func.func @transform_2(%arg0: i32) -> (i32, i32) {
    %c0_i32 = arith.constant 0 : i32
    %c0_i32_0 = arith.constant 0 : i32
    %c0_i32_1 = arith.constant 0 : i32
    return %c0_i32, %c0_i32_0 : i32, i32
  }
  func.func @transform_3(%arg0: i32) -> (i32, i32) {
    %c0_i32 = arith.constant 0 : i32
    %c0_i32_0 = arith.constant 0 : i32
    %c0_i32_1 = arith.constant 0 : i32
    return %c0_i32, %c0_i32_0 : i32, i32
  }
  func.func @transform_4(%arg0: i32) -> (i32, i32) {
    %c0_i32 = arith.constant 0 : i32
    %c0_i32_0 = arith.constant 0 : i32
    %c0_i32_1 = arith.constant 0 : i32
    return %c0_i32, %c0_i32_0 : i32, i32
  }
  func.func @transform_5(%arg0: i32) -> (i32, i32) {
    %c0_i32 = arith.constant 0 : i32
    %c0_i32_0 = arith.constant 0 : i32
    %c0_i32_1 = arith.constant 0 : i32
    return %c0_i32, %c0_i32_0 : i32, i32
  }
  func.func @transform_6(%arg0: i32) -> (i32, i32) {
    %c0_i32 = arith.constant 0 : i32
    %c0_i32_0 = arith.constant 0 : i32
    %c0_i32_1 = arith.constant 0 : i32
    return %c0_i32, %c0_i32_0 : i32, i32
  }
  func.func @transform_7(%arg0: i32) -> (i32, i32) {
    %c0_i32 = arith.constant 0 : i32
    %c0_i32_0 = arith.constant 0 : i32
    return %arg0, %c0_i32 : i32, i32
  }
}

</mosaic_0001>

<bundles_post_ra>
// kernel: tpu_custom_call.1
= control target key start
LH: loop header
LB: loop body
LE: loop exit
PB: predicated region body
PF: predicated region fallthrough
CT: control target
= control target key end

     0   :  { %12 = vsyncpa [#allocation3], 0  ;;  %s4160_s0 = inlined_call_operand.hbm [shape: bf16[16,1152], index: 0, kind: input, shape index: {}]   ;;  %s4161_s1 = inlined_call_operand.hbm [shape: bf16[1152,512], index: 1, kind: input, shape index: {}]   ;;  %s4162_s2 = inlined_call_operand.hbm [shape: f32[1,512], index: 2, kind: input, shape index: {}]   ;;  %s4163_s3 = inlined_call_operand.hbm [shape: bf16[512,128], index: 3, kind: input, shape index: {}]   ;;  %s4164_s4 = inlined_call_operand.hbm [shape: f32[1,128], index: 4, kind: input, shape index: {}]   ;;  %s4165_s5 = inlined_call_operand.hbm [shape: bf16[128,128], index: 5, kind: input, shape index: {}]   ;;  %s4166_s6 = inlined_call_operand.hbm [shape: f32[1,128], index: 6, kind: input, shape index: {}]   ;;  %s4167_s7 = inlined_call_operand.hbm [shape: f32[16,128], index: 7, kind: output, shape index: {}]  }
   0x1   :  { %13 = vsyncpa [#allocation6], 0 }
   0x2   :  { %14 = vsyncpa [#allocation9], 0 }
   0x3   :  { %15 = vsyncpa [#allocation12], 0 }
   0x4   :  { %16 = vsyncpa [#allocation4], 0  ;;  %s3989_s24 = smov [#allocation5]   ;;  %s3803_s28 = scalar_lea.hbm %s4161_s1, 36864 }
   0x5   :  { %s34_s25 = sshll.u32 %s3989_s24, 4  ;;  %p3804_p0 = scmp.ne.s32.totalorder %s4161_s1, %s3803_s28  ;;  %s35_s25 = int_to_ptr.vmem [resolvable:$true] %s34_s25 }
   0x6   :  { %p3807_p1 = scmp.lt.u32.totalorder %s3803_s28, %s4161_s1 }
   0x8   :  { %p3809_p2 = pnand %p3807_p1, %p3804_p0 }
   0xa   :  { %3812 = shalt.err (!%p3809_p2)
}
   0xb   :  { %s3813_s10 = scalar_lea.vmem %s35_s25, 36864  ;;  %p3818_p4 = scmp.lt.s32.totalorder %s35_s25, %s35_s25 }
   0xc   :  { %p3814_p3 = scmp.ne.s32.totalorder %s35_s25, %s3813_s10  ;;  %p3819_p5 = scmp.lt.s32.totalorder %s3813_s10, %s3813_s10 }
   0xe   :  { %p3820_p6 = por %p3819_p5, %p3818_p4 }
  0x10   :  { %p3821_p7 = pnand %p3820_p6, %p3814_p3 }
  0x12   :  { %3824 = shalt.err (!%p3821_p7)
}
  0x13   :  { %s3990_s11 = smov 256   ;;  %s3991_s12 = smov 16  }
  0x14   :  { %40 = dma.hbm_to_vmem [thread:$0]  %s4161_s1, 36864, %s35_s25, [#allocation6], %s3990_s11, %s3990_s11, %s3991_s12  }
  0x15   :  { %s3992_s15 = smov [#allocation8]   ;;  %s3825_s19 = scalar_lea.hbm %s4163_s3, 4096 }
  0x16   :  { %s56_s16 = sshll.u32 %s3992_s15, 4  ;;  %p3826_p8 = scmp.ne.s32.totalorder %s4163_s3, %s3825_s19  ;;  %s57_s16 = int_to_ptr.vmem [resolvable:$true] %s56_s16 }
  0x17   :  { %p3829_p9 = scmp.lt.u32.totalorder %s3825_s19, %s4163_s3 }
  0x19   :  { %p3831_p10 = pnand %p3829_p9, %p3826_p8 }
  0x1b   :  { %3834 = shalt.err (!%p3831_p10)
}
  0x1c   :  { %s3835_s24 = scalar_lea.vmem %s57_s16, 4096  ;;  %p3840_p12 = scmp.lt.s32.totalorder %s57_s16, %s57_s16 }
  0x1d   :  { %p3836_p11 = scmp.ne.s32.totalorder %s57_s16, %s3835_s24  ;;  %p3841_p13 = scmp.lt.s32.totalorder %s3835_s24, %s3835_s24 }
  0x1f   :  { %p3842_p0 = por %p3841_p13, %p3840_p12 }
  0x21   :  { %p3843_p1 = pnand %p3842_p0, %p3836_p11 }
  0x23   :  { %3846 = shalt.err (!%p3843_p1)
}
  0x24   :  { %s3993_s1 = smov 64   ;;  %s3994_s25 = smov 4  }
  0x25   :  { %62 = dma.hbm_to_vmem [thread:$0]  %s4163_s3, 4096, %s57_s16, [#allocation9], %s3993_s1, %s3993_s1, %s3994_s25  }
  0x26   :  { %s3995_s28 = smov [#allocation11]   ;;  %s3996_s30 = smov [#allocation2]  }
  0x27   :  { %s78_s29 = sshll.u32 %s3995_s28, 4  ;;  %s22_s8 = sshll.u32 %s3996_s30, 4  ;;  %s79_s29 = int_to_ptr.vmem [resolvable:$true] %s78_s29  ;;  %s4072_s8 = int_to_ptr.vmem [resolvable:$true] %s22_s8 }
  0x28   :  { %s3847_s11 = scalar_lea.hbm %s4165_s5, 1024 }
  0x29   :  { %p3848_p2 = scmp.ne.s32.totalorder %s4165_s5, %s3847_s11  ;;  %p3851_p3 = scmp.lt.u32.totalorder %s3847_s11, %s4165_s5 }
  0x2b   :  { %p3853_p4 = pnand %p3851_p3, %p3848_p2 }
  0x2d   :  { %3856 = shalt.err (!%p3853_p4)
}
  0x2e   :  { %s3857_s3 = scalar_lea.vmem %s79_s29, 1024  ;;  %p3862_p6 = scmp.lt.s32.totalorder %s79_s29, %s79_s29 }
  0x2f   :  { %p3858_p5 = scmp.ne.s32.totalorder %s79_s29, %s3857_s3  ;;  %p3863_p7 = scmp.lt.s32.totalorder %s3857_s3, %s3857_s3 }
  0x31   :  { %p3864_p8 = por %p3863_p7, %p3862_p6 }
  0x33   :  { %p3865_p9 = pnand %p3864_p8, %p3858_p5 }
  0x35   :  { %3868 = shalt.err (!%p3865_p9)
}
  0x36   :  { %84 = dma.hbm_to_vmem [thread:$0]  %s4165_s5, 1024, %s79_s29, [#allocation12], %s3993_s1, %s3993_s1, %s3994_s25  }
  0x37   :  { %s3869_s20 = scalar_lea.hbm %s4160_s0, 1152 }
  0x38   :  { %p3870_p10 = scmp.ne.s32.totalorder %s4160_s0, %s3869_s20  ;;  %p3873_p11 = scmp.lt.u32.totalorder %s3869_s20, %s4160_s0 }
  0x3a   :  { %p3875_p12 = pnand %p3873_p11, %p3870_p10 }
  0x3c   :  { %3878 = shalt.err (!%p3875_p12)
}
  0x3d   :  { %s3879_s26 = scalar_lea.vmem %s4072_s8, 1152  ;;  %p3884_p0 = scmp.lt.s32.totalorder %s4072_s8, %s4072_s8 }
  0x3e   :  { %p3880_p13 = scmp.ne.s32.totalorder %s4072_s8, %s3879_s26  ;;  %p3885_p1 = scmp.lt.s32.totalorder %s3879_s26, %s3879_s26 }
  0x40   :  { %p3886_p2 = por %p3885_p1, %p3884_p0 }
  0x42   :  { %p3887_p3 = pnand %p3886_p2, %p3880_p13 }
  0x44   :  { %3890 = shalt.err (!%p3887_p3)
}
  0x45   :  { %s3997_s5 = smov 576   ;;  %s3998_s1 = smov 36  }
  0x46   :  { %28 = dma.hbm_to_vmem [thread:$0]  %s4160_s0, 1152, %s4072_s8, [#allocation3], %s3997_s5, %s3997_s5, %s3998_s1  }
  0x47   :  { %s3999_s28 = smov [#allocation7]   ;;  %s4000_s30 = smov [#allocation10]  }
  0x48   :  { %s47_s29 = sshll.u32 %s3999_s28, 4  ;;  %s69_s9 = sshll.u32 %s4000_s30, 4  ;;  %s48_s29 = int_to_ptr.vmem [resolvable:$true] %s47_s29  ;;  %s70_s9 = int_to_ptr.vmem [resolvable:$true] %s69_s9 }
  0x49   :  { %s3891_s12 = scalar_lea.hbm %s4162_s2, 64 }
  0x4a   :  { %p3892_p4 = scmp.ne.s32.totalorder %s4162_s2, %s3891_s12  ;;  %p3895_p5 = scmp.lt.u32.totalorder %s3891_s12, %s4162_s2 }
  0x4c   :  { %p3897_p6 = pnand %p3895_p5, %p3892_p4 }
  0x4e   :  { %3900 = shalt.err (!%p3897_p6)
}
  0x4f   :  { %s3901_s0 = scalar_lea.vmem %s48_s29, 64  ;;  %p3906_p8 = scmp.lt.s32.totalorder %s48_s29, %s48_s29 }
  0x50   :  { %p3902_p7 = scmp.ne.s32.totalorder %s48_s29, %s3901_s0  ;;  %p3907_p9 = scmp.lt.s32.totalorder %s3901_s0, %s3901_s0 }
  0x52   :  { %p3908_p10 = por %p3907_p9, %p3906_p8 }
  0x54   :  { %p3909_p11 = pnand %p3908_p10, %p3902_p7 }
  0x56   :  { %3912 = shalt.err (!%p3909_p11)
}
  0x57   :  { %50 = dma.hbm_to_vmem [thread:$0]  %s4162_s2, 64, %s48_s29, [#allocation6]  }
  0x58   :  { %s3913_s19 = scalar_lea.hbm %s4164_s4, 16 }
  0x59   :  { %p3914_p12 = scmp.ne.s32.totalorder %s4164_s4, %s3913_s19  ;;  %p3917_p13 = scmp.lt.u32.totalorder %s3913_s19, %s4164_s4 }
  0x5b   :  { %p3919_p0 = pnand %p3917_p13, %p3914_p12 }
  0x5d   :  { %3922 = shalt.err (!%p3919_p0)
}
  0x5e   :  { %s3923_s24 = scalar_lea.vmem %s70_s9, 16  ;;  %s3927_s26 = scalar_lea.vmem %s70_s9, 32 }
  0x5f   :  { %p3924_p1 = scmp.ne.s32.totalorder %s70_s9, %s3923_s24  ;;  %p3928_p2 = scmp.lt.s32.totalorder %s70_s9, %s70_s9 }
  0x60   :  { %p3929_p3 = scmp.lt.s32.totalorder %s3927_s26, %s3923_s24 }
  0x62   :  { %p3930_p4 = por %p3929_p3, %p3928_p2 }
  0x64   :  { %p3931_p5 = pnand %p3930_p4, %p3924_p1 }
  0x66   :  { %3934 = shalt.err (!%p3931_p5)
}
  0x67   :  { %72 = dma.hbm_to_vmem [thread:$0]  %s4164_s4, 16, %s70_s9, [#allocation9]  }
  0x68   :  { %s4001_s1 = smov [#allocation13]   ;;  %s3935_s29 = scalar_lea.hbm %s4166_s6, 16 }
  0x69   :  { %s91_s25 = sshll.u32 %s4001_s1, 4  ;;  %p3936_p6 = scmp.ne.s32.totalorder %s4166_s6, %s3935_s29  ;;  %s92_s25 = int_to_ptr.vmem [resolvable:$true] %s91_s25 }
  0x6a   :  { %p3939_p7 = scmp.lt.u32.totalorder %s3935_s29, %s4166_s6 }
  0x6c   :  { %p3941_p8 = pnand %p3939_p7, %p3936_p6 }
  0x6e   :  { %3944 = shalt.err (!%p3941_p8)
}
  0x6f   :  { %s3945_s13 = scalar_lea.vmem %s92_s25, 16  ;;  %s3949_s4 = scalar_lea.vmem %s92_s25, 32 }
  0x70   :  { %p3946_p9 = scmp.ne.s32.totalorder %s92_s25, %s3945_s13  ;;  %p3950_p10 = scmp.lt.s32.totalorder %s92_s25, %s92_s25 }
  0x71   :  { %p3951_p11 = scmp.lt.s32.totalorder %s3949_s4, %s3945_s13 }
  0x73   :  { %p3952_p12 = por %p3951_p11, %p3950_p10 }
  0x75   :  { %p3953_p13 = pnand %p3952_p12, %p3946_p9 }
  0x77   :  { %3956 = shalt.err (!%p3953_p13)
}
  0x78   :  { %94 = dma.hbm_to_vmem [thread:$0]  %s4166_s6, 16, %s92_s25, [#allocation12]  }
  0x79   :  { %3979 = dma.done.wait [#allocation3], 1152  }
  0x7a   :  { %3980 = vsyncadd [#allocation3], 4294966144 }
  0x7b   :  { %3981 = dma.done.wait [#allocation6], 36928  }
  0x7c   :  { %3982 = vsyncadd [#allocation6], 4294930368 }
  0x7d   :  { %3983 = dma.done.wait [#allocation9], 4112  }
  0x7e   :  { %3984 = vsyncadd [#allocation9], 4294963184 }
  0x7f   :  { %3985 = dma.done.wait [#allocation12], 1040  }
  0x80   :  { %3986 = vsyncadd [#allocation12], 4294966256  ;;  %v3318_v0 = vld [vmem:[#allocation5 + $0x4] ss:$16 sps:$4 sm:$0xff]   ;;  %v3320_v1 = vld [vmem:[#allocation5 + $0xc] ss:$16 sps:$4 sm:$0xff]  }
  0x81   :  { %1923 = vmatprep.subr.bf16.mxu0 %v3318_v0  ;;  %v3322_v2 = vld [vmem:[#allocation5] ss:$16 sps:$4 sm:$0xff]   ;;  %v3323_v3 = vld [vmem:[#allocation5 + $0x8] ss:$16 sps:$4 sm:$0xff]   ;;  %2138 = vmatprep.subr.bf16.mxu1 %v3320_v1  ;;  %v3324_v4 = vld [vmem:[#allocation5 + $0x24] ss:$16 sps:$4 sm:$0xff]  }
  0x82   :  { %1924 = vmatpush1.bf16.msra.mxu0 %v3322_v2  ;;  %2139 = vmatpush1.bf16.msra.mxu1 %v3323_v3  ;;  %v3326_v5 = vld [vmem:[#allocation5 + $0x2c] ss:$16 sps:$4 sm:$0xff]   ;;  %v3328_v6 = vld [vmem:[#allocation5 + $0x20] ss:$16 sps:$4 sm:$0xff]   ;;  %v3329_v7 = vld [vmem:[#allocation5 + $0x28] ss:$16 sps:$4 sm:$0xff]  }
  0x83   :  { %1925 = vmatprep.subr.bf16.mxu0 %v3324_v4  ;;  %2140 = vmatprep.subr.bf16.mxu1 %v3326_v5  ;;  %v3330_v8 = vld [vmem:[#allocation5 + $0x44] ss:$16 sps:$4 sm:$0xff]   ;;  %v3332_v9 = vld [vmem:[#allocation5 + $0x4c] ss:$16 sps:$4 sm:$0xff]   ;;  %v3334_v10 = vld [vmem:[#allocation5 + $0x40] ss:$16 sps:$4 sm:$0xff]  }
  0x84   :  { %v3335_v11 = vld [vmem:[#allocation5 + $0x48] ss:$16 sps:$4 sm:$0xff]   ;;  %v3336_v12 = vld [vmem:[#allocation5 + $0x64] ss:$16 sps:$4 sm:$0xff]   ;;  %v3338_v13 = vld [vmem:[#allocation5 + $0x6c] ss:$16 sps:$4 sm:$0xff]  }
  0x85   :  { %v3340_v14 = vld [vmem:[#allocation5 + $0x60] ss:$16 sps:$4 sm:$0xff]   ;;  %v3341_v15 = vld [vmem:[#allocation5 + $0x68] ss:$16 sps:$4 sm:$0xff]   ;;  %v3342_v16 = vld [vmem:[#allocation5 + $0x84] ss:$16 sps:$4 sm:$0xff]  }
  0x86   :  { %1926 = vmatpush1.bf16.msra.mxu0 %v3328_v6  ;;  %2141 = vmatpush1.bf16.msra.mxu1 %v3329_v7  ;;  %v3344_v17 = vld [vmem:[#allocation5 + $0x8c] ss:$16 sps:$4 sm:$0xff]   ;;  %v3346_v18 = vld [vmem:[#allocation5 + $0x80] ss:$16 sps:$4 sm:$0xff]   ;;  %v3347_v19 = vld [vmem:[#allocation5 + $0x88] ss:$16 sps:$4 sm:$0xff]  }
  0x87   :  { %1927 = vmatprep.subr.bf16.mxu0 %v3330_v8  ;;  %2142 = vmatprep.subr.bf16.mxu1 %v3332_v9  ;;  %v3348_v20 = vld [vmem:[#allocation5 + $0xa4] ss:$16 sps:$4 sm:$0xff]   ;;  %v3350_v21 = vld [vmem:[#allocation5 + $0xac] ss:$16 sps:$4 sm:$0xff]   ;;  %v3352_v22 = vld [vmem:[#allocation5 + $0xa0] ss:$16 sps:$4 sm:$0xff]  }
  0x88   :  { %v3353_v23 = vld [vmem:[#allocation5 + $0xa8] ss:$16 sps:$4 sm:$0xff]   ;;  %v3354_v24 = vld [vmem:[#allocation5 + $0xc4] ss:$16 sps:$4 sm:$0xff]   ;;  %v3356_v25 = vld [vmem:[#allocation5 + $0xcc] ss:$16 sps:$4 sm:$0xff]  }
  0x89   :  { %v3358_v26 = vld [vmem:[#allocation5 + $0xc0] ss:$16 sps:$4 sm:$0xff]   ;;  %v3359_v27 = vld [vmem:[#allocation5 + $0xc8] ss:$16 sps:$4 sm:$0xff]   ;;  %v3360_v28 = vld [vmem:[#allocation5 + $0xe4] ss:$16 sps:$4 sm:$0xff]  }
  0x8a   :  { %1928 = vmatpush1.bf16.msra.mxu0 %v3334_v10  ;;  %2143 = vmatpush1.bf16.msra.mxu1 %v3335_v11  ;;  %v3362_v29 = vld [vmem:[#allocation5 + $0xec] ss:$16 sps:$4 sm:$0xff]   ;;  %v3364_v30 = vld [vmem:[#allocation5 + $0xe0] ss:$16 sps:$4 sm:$0xff]   ;;  %v3365_v31 = vld [vmem:[#allocation5 + $0xe8] ss:$16 sps:$4 sm:$0xff]  }
  0x8b   :  { %1929 = vmatprep.subr.bf16.mxu0 %v3336_v12  ;;  %2144 = vmatprep.subr.bf16.mxu1 %v3338_v13  ;;  %v3366_v32 = vld [vmem:[#allocation5 + $0x104] ss:$16 sps:$4 sm:$0xff]   ;;  %v3368_v33 = vld [vmem:[#allocation5 + $0x10c] ss:$16 sps:$4 sm:$0xff]   ;;  %v3370_v34 = vld [vmem:[#allocation5 + $0x100] ss:$16 sps:$4 sm:$0xff]  }
  0x8c   :  { %v3371_v35 = vld [vmem:[#allocation5 + $0x108] ss:$16 sps:$4 sm:$0xff]   ;;  %v3372_v36 = vld [vmem:[#allocation5 + $0x124] ss:$16 sps:$4 sm:$0xff]   ;;  %v3374_v37 = vld [vmem:[#allocation5 + $0x12c] ss:$16 sps:$4 sm:$0xff]  }
  0x8d   :  { %v3376_v38 = vld [vmem:[#allocation5 + $0x120] ss:$16 sps:$4 sm:$0xff]   ;;  %v3377_v39 = vld [vmem:[#allocation5 + $0x128] ss:$16 sps:$4 sm:$0xff]   ;;  %v3378_v40 = vld [vmem:[#allocation5 + $0x144] ss:$16 sps:$4 sm:$0xff]  }
  0x8e   :  { %1930 = vmatpush1.bf16.msra.mxu0 %v3340_v14  ;;  %2145 = vmatpush1.bf16.msra.mxu1 %v3341_v15  ;;  %v3380_v41 = vld [vmem:[#allocation5 + $0x14c] ss:$16 sps:$4 sm:$0xff]   ;;  %v3382_v42 = vld [vmem:[#allocation5 + $0x140] ss:$16 sps:$4 sm:$0xff]   ;;  %v3383_v43 = vld [vmem:[#allocation5 + $0x148] ss:$16 sps:$4 sm:$0xff]  }
  0x8f   :  { %1931 = vmatprep.subr.bf16.mxu0 %v3342_v16  ;;  %2146 = vmatprep.subr.bf16.mxu1 %v3344_v17  ;;  %v3384_v44 = vld [vmem:[#allocation5 + $0x164] ss:$16 sps:$4 sm:$0xff]   ;;  %v3386_v45 = vld [vmem:[#allocation5 + $0x16c] ss:$16 sps:$4 sm:$0xff]   ;;  %v3388_v46 = vld [vmem:[#allocation5 + $0x160] ss:$16 sps:$4 sm:$0xff]  }
  0x90   :  { %v3389_v47 = vld [vmem:[#allocation5 + $0x168] ss:$16 sps:$4 sm:$0xff]   ;;  %v3416_v48 = vld [vmem:[#allocation2 + $0x4] ss:$36 sps:$4 sm:$0xff]   ;;  %v3390_v49 = vld [vmem:[#allocation5 + $0x184] ss:$16 sps:$4 sm:$0xff]  }
  0x91   :  { %v3392_v50 = vld [vmem:[#allocation5 + $0x18c] ss:$16 sps:$4 sm:$0xff]   ;;  %1955 = vmatprep.mubr.bf16.mxu0 %v3416_v48  ;;  %2170 = vmatprep.mubr.bf16.mxu1 %v3416_v48  ;;  %v3394_v51 = vld [vmem:[#allocation5 + $0x180] ss:$16 sps:$4 sm:$0xff]   ;;  %v3395_v52 = vld [vmem:[#allocation5 + $0x188] ss:$16 sps:$4 sm:$0xff]  }
  0x92   :  { %1932 = vmatpush1.bf16.msra.mxu0 %v3346_v18  ;;  %2147 = vmatpush1.bf16.msra.mxu1 %v3347_v19  ;;  %v3396_v53 = vld [vmem:[#allocation5 + $0x1a4] ss:$16 sps:$4 sm:$0xff]   ;;  %v3398_v54 = vld [vmem:[#allocation5 + $0x1ac] ss:$16 sps:$4 sm:$0xff]   ;;  %v3400_v55 = vld [vmem:[#allocation5 + $0x1a0] ss:$16 sps:$4 sm:$0xff]  }
  0x93   :  { %1933 = vmatprep.subr.bf16.mxu0 %v3348_v20  ;;  %2148 = vmatprep.subr.bf16.mxu1 %v3350_v21  ;;  %v3401_v56 = vld [vmem:[#allocation5 + $0x1a8] ss:$16 sps:$4 sm:$0xff]   ;;  %v3402_v57 = vld [vmem:[#allocation5 + $0x1c4] ss:$16 sps:$4 sm:$0xff]   ;;  %v3404_v58 = vld [vmem:[#allocation5 + $0x1cc] ss:$16 sps:$4 sm:$0xff]  }
  0x94   :  { %v3406_v59 = vld [vmem:[#allocation5 + $0x1c0] ss:$16 sps:$4 sm:$0xff]   ;;  %v3407_v60 = vld [vmem:[#allocation5 + $0x1c8] ss:$16 sps:$4 sm:$0xff]   ;;  %v3408_v61 = vld [vmem:[#allocation5 + $0x1e4] ss:$16 sps:$4 sm:$0xff]  }
  0x95   :  { %v3410_v62 = vld [vmem:[#allocation5 + $0x1ec] ss:$16 sps:$4 sm:$0xff]   ;;  %v3412_v63 = vld [vmem:[#allocation5 + $0x1e0] ss:$16 sps:$4 sm:$0xff]   ;;  %v3413_v0 = vld [vmem:[#allocation5 + $0x1e8] ss:$16 sps:$4 sm:$0xff]  }
  0x96   :  { %1934 = vmatpush1.bf16.msra.mxu0 %v3352_v22  ;;  %2149 = vmatpush1.bf16.msra.mxu1 %v3353_v23  ;;  %v3419_v1 = vld [vmem:[#allocation5 + $0x204] ss:$16 sps:$4 sm:$0xff]   ;;  %v3422_v2 = vld [vmem:[#allocation5 + $0x20c] ss:$16 sps:$4 sm:$0xff]   ;;  %v3417_v4 = vld [vmem:[#allocation5 + $0x200] ss:$16 sps:$4 sm:$0xff]  }
  0x97   :  { %1935 = vmatprep.subr.bf16.mxu0 %v3354_v24  ;;  %2150 = vmatprep.subr.bf16.mxu1 %v3356_v25  ;;  %v3414_v3 = vld [vmem:[#allocation2] ss:$36 sps:$4 sm:$0xff]   ;;  %v3425_v6 = vld [vmem:[#allocation5 + $0x224] ss:$16 sps:$4 sm:$0xff]   ;;  %v3423_v8 = vld [vmem:[#allocation5 + $0x220] ss:$16 sps:$4 sm:$0xff]  }
  0x98   :  { %v3420_v5 = vld [vmem:[#allocation5 + $0x208] ss:$16 sps:$4 sm:$0xff]   ;;  %v3428_v7 = vld [vmem:[#allocation5 + $0x22c] ss:$16 sps:$4 sm:$0xff]   ;;  %v3431_v10 = vld [vmem:[#allocation5 + $0x244] ss:$16 sps:$4 sm:$0xff]  }
  0x99   :  { %v3426_v9 = vld [vmem:[#allocation5 + $0x228] ss:$16 sps:$4 sm:$0xff]   ;;  %v3434_v11 = vld [vmem:[#allocation5 + $0x24c] ss:$16 sps:$4 sm:$0xff]   ;;  %v3429_v12 = vld [vmem:[#allocation5 + $0x240] ss:$16 sps:$4 sm:$0xff]  }
  0x9a   :  { %1936 = vmatpush1.bf16.msra.mxu0 %v3358_v26  ;;  %2151 = vmatpush1.bf16.msra.mxu1 %v3359_v27  ;;  %v3432_v13 = vld [vmem:[#allocation5 + $0x248] ss:$16 sps:$4 sm:$0xff]   ;;  %v3437_v14 = vld [vmem:[#allocation5 + $0x264] ss:$16 sps:$4 sm:$0xff]   ;;  %v3440_v15 = vld [vmem:[#allocation5 + $0x26c] ss:$16 sps:$4 sm:$0xff]  }
  0x9b   :  { %1937 = vmatprep.subr.bf16.mxu0 %v3360_v28  ;;  %2152 = vmatprep.subr.bf16.mxu1 %v3362_v29  ;;  %v3435_v16 = vld [vmem:[#allocation5 + $0x260] ss:$16 sps:$4 sm:$0xff]   ;;  %v3438_v17 = vld [vmem:[#allocation5 + $0x268] ss:$16 sps:$4 sm:$0xff]   ;;  %v3443_v18 = vld [vmem:[#allocation5 + $0x284] ss:$16 sps:$4 sm:$0xff]  }
  0x9c   :  { %v3446_v19 = vld [vmem:[#allocation5 + $0x28c] ss:$16 sps:$4 sm:$0xff]   ;;  %v3441_v20 = vld [vmem:[#allocation5 + $0x280] ss:$16 sps:$4 sm:$0xff]   ;;  %v3444_v21 = vld [vmem:[#allocation5 + $0x288] ss:$16 sps:$4 sm:$0xff]  }
  0x9d   :  { %v3449_v22 = vld [vmem:[#allocation5 + $0x2a4] ss:$16 sps:$4 sm:$0xff]   ;;  %v3452_v23 = vld [vmem:[#allocation5 + $0x2ac] ss:$16 sps:$4 sm:$0xff]   ;;  %v3447_v24 = vld [vmem:[#allocation5 + $0x2a0] ss:$16 sps:$4 sm:$0xff]  }
  0x9e   :  { %1938 = vmatpush1.bf16.msra.mxu0 %v3364_v30  ;;  %2153 = vmatpush1.bf16.msra.mxu1 %v3365_v31  ;;  %v3450_v25 = vld [vmem:[#allocation5 + $0x2a8] ss:$16 sps:$4 sm:$0xff]   ;;  %v3455_v26 = vld [vmem:[#allocation5 + $0x2c4] ss:$16 sps:$4 sm:$0xff]   ;;  %v3458_v27 = vld [vmem:[#allocation5 + $0x2cc] ss:$16 sps:$4 sm:$0xff]  }
  0x9f   :  { %1939 = vmatprep.subr.bf16.mxu0 %v3366_v32  ;;  %2154 = vmatprep.subr.bf16.mxu1 %v3368_v33  ;;  %v3453_v28 = vld [vmem:[#allocation5 + $0x2c0] ss:$16 sps:$4 sm:$0xff]   ;;  %v3456_v29 = vld [vmem:[#allocation5 + $0x2c8] ss:$16 sps:$4 sm:$0xff]   ;;  %v3461_v31 = vld [vmem:[#allocation5 + $0x2e4] ss:$16 sps:$4 sm:$0xff]  }
  0xa0   :  { %v3515_v30 = vld [vmem:[#allocation2 + $0xc] ss:$36 sps:$4 sm:$0xff]   ;;  %v3464_v32 = vld [vmem:[#allocation5 + $0x2ec] ss:$16 sps:$4 sm:$0xff]   ;;  %v3459_v33 = vld [vmem:[#allocation5 + $0x2e0] ss:$16 sps:$4 sm:$0xff]  }
  0xa1   :  { %v3488_v48 = vld [vmem:[#allocation5 + $0x36c] ss:$16 sps:$4 sm:$0xff]   ;;  %vm4004_vm0 = vmmov 0   ;;  %s4005_s6 = smov [#allocation14]  }
  0xa2   :  { %1940 = vmatpush1.bf16.msra.mxu0 %v3370_v34  ;;  %2155 = vmatpush1.bf16.msra.mxu1 %v3371_v35  ;;  %v3462_v34 = vld [vmem:[#allocation5 + $0x2e8] ss:$16 sps:$4 sm:$0xff]   ;;  %v3467_v35 = vld [vmem:[#allocation5 + $0x304] ss:$16 sps:$4 sm:$0xff]   ;;  %s2832_s15 = sshll.u32 %s4005_s6, 4  ;;  %s2833_s15 = int_to_ptr.vmem [resolvable:$true] %s2832_s15 }
  0xa3   :  { %1941 = vmatprep.subr.bf16.mxu0 %v3372_v36  ;;  %2156 = vmatprep.subr.bf16.mxu1 %v3374_v37  ;;  %v3470_v36 = vld [vmem:[#allocation5 + $0x30c] ss:$16 sps:$4 sm:$0xff]   ;;  %v3465_v37 = vld [vmem:[#allocation5 + $0x300] ss:$16 sps:$4 sm:$0xff]   ;;  %s3957_s3 = scalar_lea.vmem %s2833_s15, 256  ;;  %p3962_p1 = scmp.lt.s32.totalorder %s2833_s15, %s2833_s15 }
  0xa4   :  { %p3958_p0 = scmp.ne.s32.totalorder %s2833_s15, %s3957_s3  ;;  %p3963_p2 = scmp.lt.s32.totalorder %s3957_s3, %s3957_s3 }
  0xa6   :  { %1942 = vmatpush1.bf16.msra.mxu0 %v3376_v38  ;;  %2157 = vmatpush1.bf16.msra.mxu1 %v3377_v39  ;;  %v3468_v38 = vld [vmem:[#allocation5 + $0x308] ss:$16 sps:$4 sm:$0xff]   ;;  %v3473_v39 = vld [vmem:[#allocation5 + $0x324] ss:$16 sps:$4 sm:$0xff]   ;;  %p3964_p3 = por %p3963_p2, %p3962_p1 }
  0xa7   :  { %1943 = vmatprep.subr.bf16.mxu0 %v3378_v40  ;;  %2158 = vmatprep.subr.bf16.mxu1 %v3380_v41  ;;  %v3476_v40 = vld [vmem:[#allocation5 + $0x32c] ss:$16 sps:$4 sm:$0xff]   ;;  %v3471_v41 = vld [vmem:[#allocation5 + $0x320] ss:$16 sps:$4 sm:$0xff]  }
  0xa8   :  { %p3965_p4 = pnand %p3964_p3, %p3958_p0 }
  0xaa   :  { %1944 = vmatpush1.bf16.msra.mxu0 %v3382_v42  ;;  %2159 = vmatpush1.bf16.msra.mxu1 %v3383_v43  ;;  %v3474_v42 = vld [vmem:[#allocation5 + $0x328] ss:$16 sps:$4 sm:$0xff]   ;;  %v3479_v43 = vld [vmem:[#allocation5 + $0x344] ss:$16 sps:$4 sm:$0xff]  }
  0xab   :  { %1945 = vmatprep.subr.bf16.mxu0 %v3384_v44  ;;  %2160 = vmatprep.subr.bf16.mxu1 %v3386_v45  ;;  %v3482_v44 = vld [vmem:[#allocation5 + $0x34c] ss:$16 sps:$4 sm:$0xff]   ;;  %v3477_v45 = vld [vmem:[#allocation5 + $0x340] ss:$16 sps:$4 sm:$0xff]  }
  0xae   :  { %1946 = vmatpush1.bf16.msra.mxu0 %v3388_v46  ;;  %2161 = vmatpush1.bf16.msra.mxu1 %v3389_v47  ;;  %v3480_v46 = vld [vmem:[#allocation5 + $0x348] ss:$16 sps:$4 sm:$0xff]   ;;  %v3485_v47 = vld [vmem:[#allocation5 + $0x364] ss:$16 sps:$4 sm:$0xff]  }
  0xaf   :  { %1947 = vmatprep.subr.bf16.mxu0 %v3390_v49  ;;  %2162 = vmatprep.subr.bf16.mxu1 %v3392_v50  ;;  %v3483_v49 = vld [vmem:[#allocation5 + $0x360] ss:$16 sps:$4 sm:$0xff]   ;;  %v3486_v50 = vld [vmem:[#allocation5 + $0x368] ss:$16 sps:$4 sm:$0xff]  }
  0xb2   :  { %1948 = vmatpush1.bf16.msra.mxu0 %v3394_v51  ;;  %2163 = vmatpush1.bf16.msra.mxu1 %v3395_v52  ;;  %v3491_v51 = vld [vmem:[#allocation5 + $0x384] ss:$16 sps:$4 sm:$0xff]   ;;  %v3494_v52 = vld [vmem:[#allocation5 + $0x38c] ss:$16 sps:$4 sm:$0xff]  }
  0xb3   :  { %1949 = vmatprep.subr.bf16.mxu0 %v3396_v53  ;;  %2164 = vmatprep.subr.bf16.mxu1 %v3398_v54  ;;  %v3489_v53 = vld [vmem:[#allocation5 + $0x380] ss:$16 sps:$4 sm:$0xff]   ;;  %v3492_v54 = vld [vmem:[#allocation5 + $0x388] ss:$16 sps:$4 sm:$0xff]  }
  0xb6   :  { %1950 = vmatpush1.bf16.msra.mxu0 %v3400_v55  ;;  %2165 = vmatpush1.bf16.msra.mxu1 %v3401_v56  ;;  %v3497_v55 = vld [vmem:[#allocation5 + $0x3a4] ss:$16 sps:$4 sm:$0xff]   ;;  %v3500_v56 = vld [vmem:[#allocation5 + $0x3ac] ss:$16 sps:$4 sm:$0xff]  }
  0xb7   :  { %1951 = vmatprep.subr.bf16.mxu0 %v3402_v57  ;;  %2166 = vmatprep.subr.bf16.mxu1 %v3404_v58  ;;  %v3495_v57 = vld [vmem:[#allocation5 + $0x3a0] ss:$16 sps:$4 sm:$0xff]   ;;  %v3498_v58 = vld [vmem:[#allocation5 + $0x3a8] ss:$16 sps:$4 sm:$0xff]  }
  0xba   :  { %1952 = vmatpush1.bf16.msra.mxu0 %v3406_v59  ;;  %2167 = vmatpush1.bf16.msra.mxu1 %v3407_v60  ;;  %v3503_v59 = vld [vmem:[#allocation5 + $0x3c4] ss:$16 sps:$4 sm:$0xff]   ;;  %v3506_v60 = vld [vmem:[#allocation5 + $0x3cc] ss:$16 sps:$4 sm:$0xff]  }
  0xbb   :  { %1953 = vmatprep.subr.bf16.mxu0 %v3408_v61  ;;  %2168 = vmatprep.subr.bf16.mxu1 %v3410_v62  ;;  %v3501_v61 = vld [vmem:[#allocation5 + $0x3c0] ss:$16 sps:$4 sm:$0xff]   ;;  %v3504_v62 = vld [vmem:[#allocation5 + $0x3c8] ss:$16 sps:$4 sm:$0xff]  }
  0xbe   :  { %1954 = vmatpush1.bf16.msra.mxu0 %v3412_v63  ;;  %2169 = vmatpush1.bf16.msra.mxu1 %v3413_v0  ;;  %v3509_v63 = vld [vmem:[#allocation5 + $0x3e4] ss:$16 sps:$4 sm:$0xff]   ;;  %v3512_v0 = vld [vmem:[#allocation5 + $0x3ec] ss:$16 sps:$4 sm:$0xff]  }
  0xbf   :  { %1966 = vmatprep.subr.bf16.mxu0 %v3419_v1  ;;  %2181 = vmatprep.subr.bf16.mxu1 %v3422_v2  ;;  %v3507_v1 = vld [vmem:[#allocation5 + $0x3e0] ss:$16 sps:$4 sm:$0xff]   ;;  %v3510_v2 = vld [vmem:[#allocation5 + $0x3e8] ss:$16 sps:$4 sm:$0xff]  }
  0xc1   :  { %1956 = vmatmul.mubr.bf16.vlgmr.msra.gmra.mrb[0].mxu0 %v3414_v3  ;;  %2171 = vmatmul.mubr.bf16.vlgmr.msra.gmra.mrb[0].mxu1 %v3414_v3  ;;  %v3518_v3 = vld [vmem:[#allocation5 + $0x404] ss:$16 sps:$4 sm:$0xff]  }
  0xc2   :  { %1967 = vmatpush1.bf16.msra.mxu0 %v3417_v4  ;;  %2182 = vmatpush1.bf16.msra.mxu1 %v3420_v5  ;;  %v3521_v4 = vld [vmem:[#allocation5 + $0x40c] ss:$16 sps:$4 sm:$0xff]   ;;  %v3513_v5 = vld [vmem:[#allocation2 + $0x8] ss:$36 sps:$4 sm:$0xff]  }
  0xc3   :  { %1968 = vmatprep.subr.bf16.mxu0 %v3425_v6  ;;  %2183 = vmatprep.subr.bf16.mxu1 %v3428_v7  ;;  %v3516_v6 = vld [vmem:[#allocation5 + $0x400] ss:$16 sps:$4 sm:$0xff]   ;;  %v3519_v7 = vld [vmem:[#allocation5 + $0x408] ss:$16 sps:$4 sm:$0xff]  }
  0xc4   :  { %1998 = vmatprep.mubr.bf16.mxu0 %v3515_v30  ;;  %2213 = vmatprep.mubr.bf16.mxu1 %v3515_v30  ;;  %v3557_v30 = vld [vmem:[#allocation5 + $0x4cc] ss:$16 sps:$4 sm:$0xff]  }
  0xc6   :  { %1969 = vmatpush1.bf16.msra.mxu0 %v3423_v8  ;;  %2184 = vmatpush1.bf16.msra.mxu1 %v3426_v9  ;;  %v3524_v8 = vld [vmem:[#allocation5 + $0x424] ss:$16 sps:$4 sm:$0xff]   ;;  %v3527_v9 = vld [vmem:[#allocation5 + $0x42c] ss:$16 sps:$4 sm:$0xff]  }
  0xc7   :  { %1970 = vmatprep.subr.bf16.mxu0 %v3431_v10  ;;  %2185 = vmatprep.subr.bf16.mxu1 %v3434_v11  ;;  %v3522_v10 = vld [vmem:[#allocation5 + $0x420] ss:$16 sps:$4 sm:$0xff]   ;;  %v3525_v11 = vld [vmem:[#allocation5 + $0x428] ss:$16 sps:$4 sm:$0xff]  }
  0xca   :  { %1971 = vmatpush1.bf16.msra.mxu0 %v3429_v12  ;;  %2186 = vmatpush1.bf16.msra.mxu1 %v3432_v13  ;;  %v3614_v12 = vld [vmem:[#allocation2 + $0x14] ss:$36 sps:$4 sm:$0xff]   ;;  %v3530_v13 = vld [vmem:[#allocation5 + $0x444] ss:$16 sps:$4 sm:$0xff]  }
  0xcb   :  { %1972 = vmatprep.subr.bf16.mxu0 %v3437_v14  ;;  %2187 = vmatprep.subr.bf16.mxu1 %v3440_v15  ;;  %v3533_v14 = vld [vmem:[#allocation5 + $0x44c] ss:$16 sps:$4 sm:$0xff]   ;;  %v3528_v15 = vld [vmem:[#allocation5 + $0x440] ss:$16 sps:$4 sm:$0xff]  }
  0xce   :  { %1973 = vmatpush1.bf16.msra.mxu0 %v3435_v16  ;;  %2188 = vmatpush1.bf16.msra.mxu1 %v3438_v17  ;;  %v3531_v16 = vld [vmem:[#allocation5 + $0x448] ss:$16 sps:$4 sm:$0xff]   ;;  %v3536_v17 = vld [vmem:[#allocation5 + $0x464] ss:$16 sps:$4 sm:$0xff]  }
  0xcf   :  { %1974 = vmatprep.subr.bf16.mxu0 %v3443_v18  ;;  %2189 = vmatprep.subr.bf16.mxu1 %v3446_v19  ;;  %v3539_v18 = vld [vmem:[#allocation5 + $0x46c] ss:$16 sps:$4 sm:$0xff]   ;;  %v3534_v19 = vld [vmem:[#allocation5 + $0x460] ss:$16 sps:$4 sm:$0xff]  }
  0xd2   :  { %1975 = vmatpush1.bf16.msra.mxu0 %v3441_v20  ;;  %2190 = vmatpush1.bf16.msra.mxu1 %v3444_v21  ;;  %v3537_v20 = vld [vmem:[#allocation5 + $0x468] ss:$16 sps:$4 sm:$0xff]   ;;  %v3542_v21 = vld [vmem:[#allocation5 + $0x484] ss:$16 sps:$4 sm:$0xff]  }
  0xd3   :  { %1976 = vmatprep.subr.bf16.mxu0 %v3449_v22  ;;  %2191 = vmatprep.subr.bf16.mxu1 %v3452_v23  ;;  %v3545_v22 = vld [vmem:[#allocation5 + $0x48c] ss:$16 sps:$4 sm:$0xff]   ;;  %v3540_v23 = vld [vmem:[#allocation5 + $0x480] ss:$16 sps:$4 sm:$0xff]  }
  0xd6   :  { %1977 = vmatpush1.bf16.msra.mxu0 %v3447_v24  ;;  %2192 = vmatpush1.bf16.msra.mxu1 %v3450_v25  ;;  %v3543_v24 = vld [vmem:[#allocation5 + $0x488] ss:$16 sps:$4 sm:$0xff]   ;;  %v3548_v25 = vld [vmem:[#allocation5 + $0x4a4] ss:$16 sps:$4 sm:$0xff]  }
  0xd7   :  { %1978 = vmatprep.subr.bf16.mxu0 %v3455_v26  ;;  %2193 = vmatprep.subr.bf16.mxu1 %v3458_v27  ;;  %v3551_v26 = vld [vmem:[#allocation5 + $0x4ac] ss:$16 sps:$4 sm:$0xff]   ;;  %v3546_v27 = vld [vmem:[#allocation5 + $0x4a0] ss:$16 sps:$4 sm:$0xff]  }
  0xda   :  { %1979 = vmatpush1.bf16.msra.mxu0 %v3453_v28  ;;  %2194 = vmatpush1.bf16.msra.mxu1 %v3456_v29  ;;  %v3549_v28 = vld [vmem:[#allocation5 + $0x4a8] ss:$16 sps:$4 sm:$0xff]   ;;  %v3554_v29 = vld [vmem:[#allocation5 + $0x4c4] ss:$16 sps:$4 sm:$0xff]  }
  0xdb   :  { %1980 = vmatprep.subr.bf16.mxu0 %v3461_v31  ;;  %2195 = vmatprep.subr.bf16.mxu1 %v3464_v32  ;;  %v3552_v31 = vld [vmem:[#allocation5 + $0x4c0] ss:$16 sps:$4 sm:$0xff]   ;;  %v3555_v32 = vld [vmem:[#allocation5 + $0x4c8] ss:$16 sps:$4 sm:$0xff]  }
  0xde   :  { %1981 = vmatpush1.bf16.msra.mxu0 %v3459_v33  ;;  %2196 = vmatpush1.bf16.msra.mxu1 %v3462_v34  ;;  %v3560_v33 = vld [vmem:[#allocation5 + $0x4e4] ss:$16 sps:$4 sm:$0xff]   ;;  %v3563_v34 = vld [vmem:[#allocation5 + $0x4ec] ss:$16 sps:$4 sm:$0xff]  }
  0xdf   :  { %1982 = vmatprep.subr.bf16.mxu0 %v3467_v35  ;;  %2197 = vmatprep.subr.bf16.mxu1 %v3470_v36  ;;  %v3558_v35 = vld [vmem:[#allocation5 + $0x4e0] ss:$16 sps:$4 sm:$0xff]   ;;  %v3561_v36 = vld [vmem:[#allocation5 + $0x4e8] ss:$16 sps:$4 sm:$0xff]  }
  0xe2   :  { %1983 = vmatpush1.bf16.msra.mxu0 %v3465_v37  ;;  %2198 = vmatpush1.bf16.msra.mxu1 %v3468_v38  ;;  %v3566_v37 = vld [vmem:[#allocation5 + $0x504] ss:$16 sps:$4 sm:$0xff]   ;;  %v3569_v38 = vld [vmem:[#allocation5 + $0x50c] ss:$16 sps:$4 sm:$0xff]  }
  0xe3   :  { %1984 = vmatprep.subr.bf16.mxu0 %v3473_v39  ;;  %2199 = vmatprep.subr.bf16.mxu1 %v3476_v40  ;;  %v3564_v39 = vld [vmem:[#allocation5 + $0x500] ss:$16 sps:$4 sm:$0xff]   ;;  %v3567_v40 = vld [vmem:[#allocation5 + $0x508] ss:$16 sps:$4 sm:$0xff]  }
  0xe6   :  { %1985 = vmatpush1.bf16.msra.mxu0 %v3471_v41  ;;  %2200 = vmatpush1.bf16.msra.mxu1 %v3474_v42  ;;  %v3572_v41 = vld [vmem:[#allocation5 + $0x524] ss:$16 sps:$4 sm:$0xff]   ;;  %v3575_v42 = vld [vmem:[#allocation5 + $0x52c] ss:$16 sps:$4 sm:$0xff]  }
  0xe7   :  { %1986 = vmatprep.subr.bf16.mxu0 %v3479_v43  ;;  %2201 = vmatprep.subr.bf16.mxu1 %v3482_v44  ;;  %v3570_v43 = vld [vmem:[#allocation5 + $0x520] ss:$16 sps:$4 sm:$0xff]   ;;  %v3573_v44 = vld [vmem:[#allocation5 + $0x528] ss:$16 sps:$4 sm:$0xff]  }
  0xea   :  { %1987 = vmatpush1.bf16.msra.mxu0 %v3477_v45  ;;  %2202 = vmatpush1.bf16.msra.mxu1 %v3480_v46  ;;  %v3578_v45 = vld [vmem:[#allocation5 + $0x544] ss:$16 sps:$4 sm:$0xff]   ;;  %v3581_v46 = vld [vmem:[#allocation5 + $0x54c] ss:$16 sps:$4 sm:$0xff]  }
  0xeb   :  { %1988 = vmatprep.subr.bf16.mxu0 %v3485_v47  ;;  %2203 = vmatprep.subr.bf16.mxu1 %v3488_v48  ;;  %v3576_v47 = vld [vmem:[#allocation5 + $0x540] ss:$16 sps:$4 sm:$0xff]   ;;  %v3579_v48 = vld [vmem:[#allocation5 + $0x548] ss:$16 sps:$4 sm:$0xff]  }
  0xee   :  { %1989 = vmatpush1.bf16.msra.mxu0 %v3483_v49  ;;  %2204 = vmatpush1.bf16.msra.mxu1 %v3486_v50  ;;  %v3584_v49 = vld [vmem:[#allocation5 + $0x564] ss:$16 sps:$4 sm:$0xff]   ;;  %v3587_v50 = vld [vmem:[#allocation5 + $0x56c] ss:$16 sps:$4 sm:$0xff]  }
  0xef   :  { %1990 = vmatprep.subr.bf16.mxu0 %v3491_v51  ;;  %2205 = vmatprep.subr.bf16.mxu1 %v3494_v52  ;;  %v3582_v51 = vld [vmem:[#allocation5 + $0x560] ss:$16 sps:$4 sm:$0xff]   ;;  %v3585_v52 = vld [vmem:[#allocation5 + $0x568] ss:$16 sps:$4 sm:$0xff]  }
  0xf2   :  { %1991 = vmatpush1.bf16.msra.mxu0 %v3489_v53  ;;  %2206 = vmatpush1.bf16.msra.mxu1 %v3492_v54  ;;  %v3590_v53 = vld [vmem:[#allocation5 + $0x584] ss:$16 sps:$4 sm:$0xff]   ;;  %v3593_v54 = vld [vmem:[#allocation5 + $0x58c] ss:$16 sps:$4 sm:$0xff]  }
  0xf3   :  { %1992 = vmatprep.subr.bf16.mxu0 %v3497_v55  ;;  %2207 = vmatprep.subr.bf16.mxu1 %v3500_v56  ;;  %v3588_v55 = vld [vmem:[#allocation5 + $0x580] ss:$16 sps:$4 sm:$0xff]   ;;  %v3591_v56 = vld [vmem:[#allocation5 + $0x588] ss:$16 sps:$4 sm:$0xff]  }
  0xf6   :  { %1993 = vmatpush1.bf16.msra.mxu0 %v3495_v57  ;;  %2208 = vmatpush1.bf16.msra.mxu1 %v3498_v58  ;;  %v3596_v57 = vld [vmem:[#allocation5 + $0x5a4] ss:$16 sps:$4 sm:$0xff]   ;;  %v3599_v58 = vld [vmem:[#allocation5 + $0x5ac] ss:$16 sps:$4 sm:$0xff]  }
  0xf7   :  { %1994 = vmatprep.subr.bf16.mxu0 %v3503_v59  ;;  %2209 = vmatprep.subr.bf16.mxu1 %v3506_v60  ;;  %v3594_v59 = vld [vmem:[#allocation5 + $0x5a0] ss:$16 sps:$4 sm:$0xff]   ;;  %v3597_v60 = vld [vmem:[#allocation5 + $0x5a8] ss:$16 sps:$4 sm:$0xff]  }
  0xfa   :  { %1995 = vmatpush1.bf16.msra.mxu0 %v3501_v61  ;;  %2210 = vmatpush1.bf16.msra.mxu1 %v3504_v62  ;;  %v3602_v61 = vld [vmem:[#allocation5 + $0x5c4] ss:$16 sps:$4 sm:$0xff]   ;;  %v3605_v62 = vld [vmem:[#allocation5 + $0x5cc] ss:$16 sps:$4 sm:$0xff]  }
  0xfb   :  { %1996 = vmatprep.subr.bf16.mxu0 %v3509_v63  ;;  %2211 = vmatprep.subr.bf16.mxu1 %v3512_v0  ;;  %v3600_v63 = vld [vmem:[#allocation5 + $0x5c0] ss:$16 sps:$4 sm:$0xff]   ;;  %v3603_v0 = vld [vmem:[#allocation5 + $0x5c8] ss:$16 sps:$4 sm:$0xff]  }
  0xfe   :  { %1997 = vmatpush1.bf16.msra.mxu0 %v3507_v1  ;;  %2212 = vmatpush1.bf16.msra.mxu1 %v3510_v2  ;;  %v3608_v1 = vld [vmem:[#allocation5 + $0x5e4] ss:$16 sps:$4 sm:$0xff]   ;;  %v3611_v2 = vld [vmem:[#allocation5 + $0x5ec] ss:$16 sps:$4 sm:$0xff]  }
  0xff   :  { %2009 = vmatprep.subr.bf16.mxu0 %v3518_v3  ;;  %2224 = vmatprep.subr.bf16.mxu1 %v3521_v4  ;;  %v3606_v3 = vld [vmem:[#allocation5 + $0x5e0] ss:$16 sps:$4 sm:$0xff]   ;;  %v3609_v4 = vld [vmem:[#allocation5 + $0x5e8] ss:$16 sps:$4 sm:$0xff]  }
 0x101   :  { %1999 = vmatmul.mubr.bf16.vlgmr.msra.gmra.mrb[0].mxu0 %v3513_v5  ;;  %2214 = vmatmul.mubr.bf16.vlgmr.msra.gmra.mrb[0].mxu1 %v3513_v5  ;;  %v3617_v5 = vld [vmem:[#allocation5 + $0x604] ss:$16 sps:$4 sm:$0xff]  }
 0x102   :  { %2010 = vmatpush1.bf16.msra.mxu0 %v3516_v6  ;;  %2225 = vmatpush1.bf16.msra.mxu1 %v3519_v7  ;;  %v3620_v6 = vld [vmem:[#allocation5 + $0x60c] ss:$16 sps:$4 sm:$0xff]  }
 0x103   :  { %2011 = vmatprep.subr.bf16.mxu0 %v3524_v8  ;;  %2226 = vmatprep.subr.bf16.mxu1 %v3527_v9  ;;  %v3612_v7 = vld [vmem:[#allocation2 + $0x10] ss:$36 sps:$4 sm:$0xff]   ;;  %v3615_v8 = vld [vmem:[#allocation5 + $0x600] ss:$16 sps:$4 sm:$0xff]  }
 0x104   :  { %2041 = vmatprep.mubr.bf16.mxu0 %v3614_v12  ;;  %2256 = vmatprep.mubr.bf16.mxu1 %v3614_v12  ;;  %v3618_v9 = vld [vmem:[#allocation5 + $0x608] ss:$16 sps:$4 sm:$0xff]  }
 0x105   :  { %v3713_v12 = vld [vmem:[#allocation2 + $0x1c] ss:$36 sps:$4 sm:$0xff]  }
 0x106   :  { %2012 = vmatpush1.bf16.msra.mxu0 %v3522_v10  ;;  %2227 = vmatpush1.bf16.msra.mxu1 %v3525_v11  ;;  %v3623_v10 = vld [vmem:[#allocation5 + $0x624] ss:$16 sps:$4 sm:$0xff]   ;;  %v3626_v11 = vld [vmem:[#allocation5 + $0x62c] ss:$16 sps:$4 sm:$0xff]  }
 0x107   :  { %2013 = vmatprep.subr.bf16.mxu0 %v3530_v13  ;;  %2228 = vmatprep.subr.bf16.mxu1 %v3533_v14  ;;  %v3621_v13 = vld [vmem:[#allocation5 + $0x620] ss:$16 sps:$4 sm:$0xff]   ;;  %v3624_v14 = vld [vmem:[#allocation5 + $0x628] ss:$16 sps:$4 sm:$0xff]  }
 0x10a   :  { %2014 = vmatpush1.bf16.msra.mxu0 %v3528_v15  ;;  %2229 = vmatpush1.bf16.msra.mxu1 %v3531_v16  ;;  %v3629_v15 = vld [vmem:[#allocation5 + $0x644] ss:$16 sps:$4 sm:$0xff]   ;;  %v3632_v16 = vld [vmem:[#allocation5 + $0x64c] ss:$16 sps:$4 sm:$0xff]  }
 0x10b   :  { %2015 = vmatprep.subr.bf16.mxu0 %v3536_v17  ;;  %2230 = vmatprep.subr.bf16.mxu1 %v3539_v18  ;;  %v3627_v17 = vld [vmem:[#allocation5 + $0x640] ss:$16 sps:$4 sm:$0xff]   ;;  %v3630_v18 = vld [vmem:[#allocation5 + $0x648] ss:$16 sps:$4 sm:$0xff]  }
 0x10e   :  { %2016 = vmatpush1.bf16.msra.mxu0 %v3534_v19  ;;  %2231 = vmatpush1.bf16.msra.mxu1 %v3537_v20  ;;  %v3635_v19 = vld [vmem:[#allocation5 + $0x664] ss:$16 sps:$4 sm:$0xff]   ;;  %v3638_v20 = vld [vmem:[#allocation5 + $0x66c] ss:$16 sps:$4 sm:$0xff]  }
 0x10f   :  { %2017 = vmatprep.subr.bf16.mxu0 %v3542_v21  ;;  %2232 = vmatprep.subr.bf16.mxu1 %v3545_v22  ;;  %v3633_v21 = vld [vmem:[#allocation5 + $0x660] ss:$16 sps:$4 sm:$0xff]   ;;  %v3636_v22 = vld [vmem:[#allocation5 + $0x668] ss:$16 sps:$4 sm:$0xff]  }
 0x112   :  { %2018 = vmatpush1.bf16.msra.mxu0 %v3540_v23  ;;  %2233 = vmatpush1.bf16.msra.mxu1 %v3543_v24  ;;  %v3641_v23 = vld [vmem:[#allocation5 + $0x684] ss:$16 sps:$4 sm:$0xff]   ;;  %v3644_v24 = vld [vmem:[#allocation5 + $0x68c] ss:$16 sps:$4 sm:$0xff]  }
 0x113   :  { %2019 = vmatprep.subr.bf16.mxu0 %v3548_v25  ;;  %2234 = vmatprep.subr.bf16.mxu1 %v3551_v26  ;;  %v3639_v25 = vld [vmem:[#allocation5 + $0x680] ss:$16 sps:$4 sm:$0xff]   ;;  %v3642_v26 = vld [vmem:[#allocation5 + $0x688] ss:$16 sps:$4 sm:$0xff]  }
 0x116   :  { %2020 = vmatpush1.bf16.msra.mxu0 %v3546_v27  ;;  %2235 = vmatpush1.bf16.msra.mxu1 %v3549_v28  ;;  %v3647_v27 = vld [vmem:[#allocation5 + $0x6a4] ss:$16 sps:$4 sm:$0xff]   ;;  %v3650_v28 = vld [vmem:[#allocation5 + $0x6ac] ss:$16 sps:$4 sm:$0xff]  }
 0x117   :  { %2021 = vmatprep.subr.bf16.mxu0 %v3554_v29  ;;  %2236 = vmatprep.subr.bf16.mxu1 %v3557_v30  ;;  %v3645_v29 = vld [vmem:[#allocation5 + $0x6a0] ss:$16 sps:$4 sm:$0xff]   ;;  %v3648_v30 = vld [vmem:[#allocation5 + $0x6a8] ss:$16 sps:$4 sm:$0xff]  }
 0x11a   :  { %2022 = vmatpush1.bf16.msra.mxu0 %v3552_v31  ;;  %2237 = vmatpush1.bf16.msra.mxu1 %v3555_v32  ;;  %v3653_v31 = vld [vmem:[#allocation5 + $0x6c4] ss:$16 sps:$4 sm:$0xff]   ;;  %v3656_v32 = vld [vmem:[#allocation5 + $0x6cc] ss:$16 sps:$4 sm:$0xff]  }
 0x11b   :  { %2023 = vmatprep.subr.bf16.mxu0 %v3560_v33  ;;  %2238 = vmatprep.subr.bf16.mxu1 %v3563_v34  ;;  %v3651_v33 = vld [vmem:[#allocation5 + $0x6c0] ss:$16 sps:$4 sm:$0xff]   ;;  %v3654_v34 = vld [vmem:[#allocation5 + $0x6c8] ss:$16 sps:$4 sm:$0xff]  }
 0x11e   :  { %2024 = vmatpush1.bf16.msra.mxu0 %v3558_v35  ;;  %2239 = vmatpush1.bf16.msra.mxu1 %v3561_v36  ;;  %v3659_v35 = vld [vmem:[#allocation5 + $0x6e4] ss:$16 sps:$4 sm:$0xff]   ;;  %v3662_v36 = vld [vmem:[#allocation5 + $0x6ec] ss:$16 sps:$4 sm:$0xff]  }
 0x11f   :  { %2025 = vmatprep.subr.bf16.mxu0 %v3566_v37  ;;  %2240 = vmatprep.subr.bf16.mxu1 %v3569_v38  ;;  %v3657_v37 = vld [vmem:[#allocation5 + $0x6e0] ss:$16 sps:$4 sm:$0xff]   ;;  %v3660_v38 = vld [vmem:[#allocation5 + $0x6e8] ss:$16 sps:$4 sm:$0xff]  }
 0x122   :  { %2026 = vmatpush1.bf16.msra.mxu0 %v3564_v39  ;;  %2241 = vmatpush1.bf16.msra.mxu1 %v3567_v40  ;;  %v3665_v39 = vld [vmem:[#allocation5 + $0x704] ss:$16 sps:$4 sm:$0xff]   ;;  %v3668_v40 = vld [vmem:[#allocation5 + $0x70c] ss:$16 sps:$4 sm:$0xff]  }
 0x123   :  { %2027 = vmatprep.subr.bf16.mxu0 %v3572_v41  ;;  %2242 = vmatprep.subr.bf16.mxu1 %v3575_v42  ;;  %v3663_v41 = vld [vmem:[#allocation5 + $0x700] ss:$16 sps:$4 sm:$0xff]   ;;  %v3666_v42 = vld [vmem:[#allocation5 + $0x708] ss:$16 sps:$4 sm:$0xff]  }
 0x126   :  { %2028 = vmatpush1.bf16.msra.mxu0 %v3570_v43  ;;  %2243 = vmatpush1.bf16.msra.mxu1 %v3573_v44  ;;  %v3671_v43 = vld [vmem:[#allocation5 + $0x724] ss:$16 sps:$4 sm:$0xff]   ;;  %v3674_v44 = vld [vmem:[#allocation5 + $0x72c] ss:$16 sps:$4 sm:$0xff]  }
 0x127   :  { %2029 = vmatprep.subr.bf16.mxu0 %v3578_v45  ;;  %2244 = vmatprep.subr.bf16.mxu1 %v3581_v46  ;;  %v3669_v45 = vld [vmem:[#allocation5 + $0x720] ss:$16 sps:$4 sm:$0xff]   ;;  %v3672_v46 = vld [vmem:[#allocation5 + $0x728] ss:$16 sps:$4 sm:$0xff]  }
 0x12a   :  { %2030 = vmatpush1.bf16.msra.mxu0 %v3576_v47  ;;  %2245 = vmatpush1.bf16.msra.mxu1 %v3579_v48  ;;  %v3677_v47 = vld [vmem:[#allocation5 + $0x744] ss:$16 sps:$4 sm:$0xff]   ;;  %v3680_v48 = vld [vmem:[#allocation5 + $0x74c] ss:$16 sps:$4 sm:$0xff]  }
 0x12b   :  { %2031 = vmatprep.subr.bf16.mxu0 %v3584_v49  ;;  %2246 = vmatprep.subr.bf16.mxu1 %v3587_v50  ;;  %v3675_v49 = vld [vmem:[#allocation5 + $0x740] ss:$16 sps:$4 sm:$0xff]   ;;  %v3678_v50 = vld [vmem:[#allocation5 + $0x748] ss:$16 sps:$4 sm:$0xff]  }
 0x12e   :  { %2032 = vmatpush1.bf16.msra.mxu0 %v3582_v51  ;;  %2247 = vmatpush1.bf16.msra.mxu1 %v3585_v52  ;;  %v3683_v51 = vld [vmem:[#allocation5 + $0x764] ss:$16 sps:$4 sm:$0xff]   ;;  %v3686_v52 = vld [vmem:[#allocation5 + $0x76c] ss:$16 sps:$4 sm:$0xff]  }
 0x12f   :  { %2033 = vmatprep.subr.bf16.mxu0 %v3590_v53  ;;  %2248 = vmatprep.subr.bf16.mxu1 %v3593_v54  ;;  %v3681_v53 = vld [vmem:[#allocation5 + $0x760] ss:$16 sps:$4 sm:$0xff]   ;;  %v3684_v54 = vld [vmem:[#allocation5 + $0x768] ss:$16 sps:$4 sm:$0xff]  }
 0x132   :  { %2034 = vmatpush1.bf16.msra.mxu0 %v3588_v55  ;;  %2249 = vmatpush1.bf16.msra.mxu1 %v3591_v56  ;;  %v3689_v55 = vld [vmem:[#allocation5 + $0x784] ss:$16 sps:$4 sm:$0xff]   ;;  %v3692_v56 = vld [vmem:[#allocation5 + $0x78c] ss:$16 sps:$4 sm:$0xff]  }
 0x133   :  { %2035 = vmatprep.subr.bf16.mxu0 %v3596_v57  ;;  %2250 = vmatprep.subr.bf16.mxu1 %v3599_v58  ;;  %v3687_v57 = vld [vmem:[#allocation5 + $0x780] ss:$16 sps:$4 sm:$0xff]   ;;  %v3690_v58 = vld [vmem:[#allocation5 + $0x788] ss:$16 sps:$4 sm:$0xff]  }
 0x136   :  { %2036 = vmatpush1.bf16.msra.mxu0 %v3594_v59  ;;  %2251 = vmatpush1.bf16.msra.mxu1 %v3597_v60  ;;  %v3695_v59 = vld [vmem:[#allocation5 + $0x7a4] ss:$16 sps:$4 sm:$0xff]   ;;  %v3698_v60 = vld [vmem:[#allocation5 + $0x7ac] ss:$16 sps:$4 sm:$0xff]  }
 0x137   :  { %2037 = vmatprep.subr.bf16.mxu0 %v3602_v61  ;;  %2252 = vmatprep.subr.bf16.mxu1 %v3605_v62  ;;  %v3693_v61 = vld [vmem:[#allocation5 + $0x7a0] ss:$16 sps:$4 sm:$0xff]   ;;  %v3696_v62 = vld [vmem:[#allocation5 + $0x7a8] ss:$16 sps:$4 sm:$0xff]  }
 0x13a   :  { %2038 = vmatpush1.bf16.msra.mxu0 %v3600_v63  ;;  %2253 = vmatpush1.bf16.msra.mxu1 %v3603_v0  ;;  %v3701_v63 = vld [vmem:[#allocation5 + $0x7c4] ss:$16 sps:$4 sm:$0xff]   ;;  %v3704_v0 = vld [vmem:[#allocation5 + $0x7cc] ss:$16 sps:$4 sm:$0xff]  }
 0x13b   :  { %2039 = vmatprep.subr.bf16.mxu0 %v3608_v1  ;;  %2254 = vmatprep.subr.bf16.mxu1 %v3611_v2  ;;  %v3699_v1 = vld [vmem:[#allocation5 + $0x7c0] ss:$16 sps:$4 sm:$0xff]   ;;  %v3702_v2 = vld [vmem:[#allocation5 + $0x7c8] ss:$16 sps:$4 sm:$0xff]  }
 0x13e   :  { %2040 = vmatpush1.bf16.msra.mxu0 %v3606_v3  ;;  %2255 = vmatpush1.bf16.msra.mxu1 %v3609_v4  ;;  %v3707_v3 = vld [vmem:[#allocation5 + $0x7e4] ss:$16 sps:$4 sm:$0xff]   ;;  %v3710_v4 = vld [vmem:[#allocation5 + $0x7ec] ss:$16 sps:$4 sm:$0xff]  }
 0x13f   :  { %2052 = vmatprep.subr.bf16.mxu0 %v3617_v5  ;;  %2267 = vmatprep.subr.bf16.mxu1 %v3620_v6  ;;  %v3705_v5 = vld [vmem:[#allocation5 + $0x7e0] ss:$16 sps:$4 sm:$0xff]   ;;  %v3708_v6 = vld [vmem:[#allocation5 + $0x7e8] ss:$16 sps:$4 sm:$0xff]  }
 0x141   :  { %2042 = vmatmul.mubr.bf16.vlgmr.msra.gmra.mrb[0].mxu0 %v3612_v7  ;;  %2257 = vmatmul.mubr.bf16.vlgmr.msra.gmra.mrb[0].mxu1 %v3612_v7  ;;  %v3716_v7 = vld [vmem:[#allocation5 + $0x804] ss:$16 sps:$4 sm:$0xff]  }
 0x142   :  { %2053 = vmatpush1.bf16.msra.mxu0 %v3615_v8  ;;  %2268 = vmatpush1.bf16.msra.mxu1 %v3618_v9  ;;  %v3719_v8 = vld [vmem:[#allocation5 + $0x80c] ss:$16 sps:$4 sm:$0xff]   ;;  %v3711_v9 = vld [vmem:[#allocation2 + $0x18] ss:$36 sps:$4 sm:$0xff]  }
 0x143   :  { %2054 = vmatprep.subr.bf16.mxu0 %v3623_v10  ;;  %2269 = vmatprep.subr.bf16.mxu1 %v3626_v11  ;;  %v3714_v10 = vld [vmem:[#allocation5 + $0x800] ss:$16 sps:$4 sm:$0xff]   ;;  %v3717_v11 = vld [vmem:[#allocation5 + $0x808] ss:$16 sps:$4 sm:$0xff]  }
 0x144   :  { %2084 = vmatprep.mubr.bf16.mxu0 %v3713_v12  ;;  %2299 = vmatprep.mubr.bf16.mxu1 %v3713_v12  ;;  %v3722_v12 = vld [vmem:[#allocation5 + $0x824] ss:$16 sps:$4 sm:$0xff]  }
 0x146   :  { %2055 = vmatpush1.bf16.msra.mxu0 %v3621_v13  ;;  %2270 = vmatpush1.bf16.msra.mxu1 %v3624_v14  ;;  %v3725_v13 = vld [vmem:[#allocation5 + $0x82c] ss:$16 sps:$4 sm:$0xff]   ;;  %v3720_v14 = vld [vmem:[#allocation5 + $0x820] ss:$16 sps:$4 sm:$0xff]  }
 0x147   :  { %2056 = vmatprep.subr.bf16.mxu0 %v3629_v15  ;;  %2271 = vmatprep.subr.bf16.mxu1 %v3632_v16  ;;  %v3723_v15 = vld [vmem:[#allocation5 + $0x828] ss:$16 sps:$4 sm:$0xff]   ;;  %v3728_v16 = vld [vmem:[#allocation5 + $0x844] ss:$16 sps:$4 sm:$0xff]  }
 0x14a   :  { %2057 = vmatpush1.bf16.msra.mxu0 %v3627_v17  ;;  %2272 = vmatpush1.bf16.msra.mxu1 %v3630_v18  ;;  %v3731_v17 = vld [vmem:[#allocation5 + $0x84c] ss:$16 sps:$4 sm:$0xff]   ;;  %v4002_v18 = vmov 0  }
 0x14b   :  { %2058 = vmatprep.subr.bf16.mxu0 %v3635_v19  ;;  %2273 = vmatprep.subr.bf16.mxu1 %v3638_v20  ;;  %v3726_v19 = vld [vmem:[#allocation5 + $0x840] ss:$16 sps:$4 sm:$0xff]   ;;  %v3729_v20 = vld [vmem:[#allocation5 + $0x848] ss:$16 sps:$4 sm:$0xff]  }
 0x14e   :  { %2059 = vmatpush1.bf16.msra.mxu0 %v3633_v21  ;;  %2274 = vmatpush1.bf16.msra.mxu1 %v3636_v22  ;;  %v3734_v21 = vld [vmem:[#allocation5 + $0x864] ss:$16 sps:$4 sm:$0xff]   ;;  %v3737_v22 = vld [vmem:[#allocation5 + $0x86c] ss:$16 sps:$4 sm:$0xff]  }
 0x14f   :  { %2060 = vmatprep.subr.bf16.mxu0 %v3641_v23  ;;  %2275 = vmatprep.subr.bf16.mxu1 %v3644_v24  ;;  %v3732_v23 = vld [vmem:[#allocation5 + $0x860] ss:$16 sps:$4 sm:$0xff]   ;;  %v3735_v24 = vld [vmem:[#allocation5 + $0x868] ss:$16 sps:$4 sm:$0xff]  }
 0x152   :  { %2061 = vmatpush1.bf16.msra.mxu0 %v3639_v25  ;;  %2276 = vmatpush1.bf16.msra.mxu1 %v3642_v26  ;;  %v3740_v25 = vld [vmem:[#allocation5 + $0x884] ss:$16 sps:$4 sm:$0xff]   ;;  %v3743_v26 = vld [vmem:[#allocation5 + $0x88c] ss:$16 sps:$4 sm:$0xff]  }
 0x153   :  { %2062 = vmatprep.subr.bf16.mxu0 %v3647_v27  ;;  %2277 = vmatprep.subr.bf16.mxu1 %v3650_v28  ;;  %v3738_v27 = vld [vmem:[#allocation5 + $0x880] ss:$16 sps:$4 sm:$0xff]   ;;  %v3741_v28 = vld [vmem:[#allocation5 + $0x888] ss:$16 sps:$4 sm:$0xff]  }
 0x156   :  { %2063 = vmatpush1.bf16.msra.mxu0 %v3645_v29  ;;  %2278 = vmatpush1.bf16.msra.mxu1 %v3648_v30  ;;  %v3746_v29 = vld [vmem:[#allocation5 + $0x8a4] ss:$16 sps:$4 sm:$0xff]   ;;  %v3749_v30 = vld [vmem:[#allocation5 + $0x8ac] ss:$16 sps:$4 sm:$0xff]  }
 0x157   :  { %2064 = vmatprep.subr.bf16.mxu0 %v3653_v31  ;;  %2279 = vmatprep.subr.bf16.mxu1 %v3656_v32  ;;  %v3744_v31 = vld [vmem:[#allocation5 + $0x8a0] ss:$16 sps:$4 sm:$0xff]   ;;  %v3747_v32 = vld [vmem:[#allocation5 + $0x8a8] ss:$16 sps:$4 sm:$0xff]  }
 0x15a   :  { %2065 = vmatpush1.bf16.msra.mxu0 %v3651_v33  ;;  %2280 = vmatpush1.bf16.msra.mxu1 %v3654_v34  ;;  %v3752_v33 = vld [vmem:[#allocation5 + $0x8c4] ss:$16 sps:$4 sm:$0xff]   ;;  %v3755_v34 = vld [vmem:[#allocation5 + $0x8cc] ss:$16 sps:$4 sm:$0xff]  }
 0x15b   :  { %2066 = vmatprep.subr.bf16.mxu0 %v3659_v35  ;;  %2281 = vmatprep.subr.bf16.mxu1 %v3662_v36  ;;  %v3750_v35 = vld [vmem:[#allocation5 + $0x8c0] ss:$16 sps:$4 sm:$0xff]   ;;  %v3753_v36 = vld [vmem:[#allocation5 + $0x8c8] ss:$16 sps:$4 sm:$0xff]  }
 0x15e   :  { %2067 = vmatpush1.bf16.msra.mxu0 %v3657_v37  ;;  %2282 = vmatpush1.bf16.msra.mxu1 %v3660_v38  ;;  %v3758_v37 = vld [vmem:[#allocation5 + $0x8e4] ss:$16 sps:$4 sm:$0xff]   ;;  %v3761_v38 = vld [vmem:[#allocation5 + $0x8ec] ss:$16 sps:$4 sm:$0xff]  }
 0x15f   :  { %2068 = vmatprep.subr.bf16.mxu0 %v3665_v39  ;;  %2283 = vmatprep.subr.bf16.mxu1 %v3668_v40  ;;  %v3756_v39 = vld [vmem:[#allocation5 + $0x8e0] ss:$16 sps:$4 sm:$0xff]   ;;  %v3759_v40 = vld [vmem:[#allocation5 + $0x8e8] ss:$16 sps:$4 sm:$0xff]  }
 0x162   :  { %2069 = vmatpush1.bf16.msra.mxu0 %v3663_v41  ;;  %2284 = vmatpush1.bf16.msra.mxu1 %v3666_v42  ;;  %v3763_v41 = vld [vmem:[#allocation8 + $0x40] sm:$0xff]  }
 0x163   :  { %2070 = vmatprep.subr.bf16.mxu0 %v3671_v43  ;;  %2285 = vmatprep.subr.bf16.mxu1 %v3674_v44  ;;  %v3764_v42 = vld [vmem:[#allocation8 + $0xc0] sm:$0xff]   ;;  %v3762_v43 = vld [vmem:[#allocation2 + $0x20] ss:$36 sps:$4 sm:$0xff]  }
 0x164   :  { %v3765_v44 = vld [vmem:[#allocation8] sm:$0xff]  }
 0x166   :  { %2071 = vmatpush1.bf16.msra.mxu0 %v3669_v45  ;;  %2286 = vmatpush1.bf16.msra.mxu1 %v3672_v46  ;;  %v3766_v45 = vld [vmem:[#allocation8 + $0x80] sm:$0xff]   ;;  %v3767_v46 = vld [vmem:[#allocation8 + $0x48] sm:$0xff]  }
 0x167   :  { %2072 = vmatprep.subr.bf16.mxu0 %v3677_v47  ;;  %2287 = vmatprep.subr.bf16.mxu1 %v3680_v48  ;;  %v3768_v47 = vld [vmem:[#allocation8 + $0xc8] sm:$0xff]  }
 0x168   :  { %v3769_v48 = vld [vmem:[#allocation8 + $0x8] sm:$0xff]  }
 0x16a   :  { %2073 = vmatpush1.bf16.msra.mxu0 %v3675_v49  ;;  %2288 = vmatpush1.bf16.msra.mxu1 %v3678_v50  ;;  %v3770_v49 = vld [vmem:[#allocation8 + $0x88] sm:$0xff]   ;;  %v3771_v50 = vld [vmem:[#allocation8 + $0x50] sm:$0xff]  }
 0x16b   :  { %2074 = vmatprep.subr.bf16.mxu0 %v3683_v51  ;;  %2289 = vmatprep.subr.bf16.mxu1 %v3686_v52  ;;  %v3772_v51 = vld [vmem:[#allocation8 + $0xd0] sm:$0xff]  }
 0x16c   :  { %v3773_v52 = vld [vmem:[#allocation8 + $0x10] sm:$0xff]  }
 0x16e   :  { %2075 = vmatpush1.bf16.msra.mxu0 %v3681_v53  ;;  %2290 = vmatpush1.bf16.msra.mxu1 %v3684_v54  ;;  %v3774_v53 = vld [vmem:[#allocation8 + $0x90] sm:$0xff]   ;;  %v3775_v54 = vld [vmem:[#allocation8 + $0x58] sm:$0xff]  }
 0x16f   :  { %2076 = vmatprep.subr.bf16.mxu0 %v3689_v55  ;;  %2291 = vmatprep.subr.bf16.mxu1 %v3692_v56  ;;  %v3776_v55 = vld [vmem:[#allocation8 + $0xd8] sm:$0xff]  }
 0x170   :  { %v3777_v56 = vld [vmem:[#allocation8 + $0x18] sm:$0xff]  }
 0x172   :  { %2077 = vmatpush1.bf16.msra.mxu0 %v3687_v57  ;;  %2292 = vmatpush1.bf16.msra.mxu1 %v3690_v58  ;;  %v3778_v57 = vld [vmem:[#allocation8 + $0x98] sm:$0xff]   ;;  %v3779_v58 = vld [vmem:[#allocation8 + $0x60] sm:$0xff]  }
 0x173   :  { %2078 = vmatprep.subr.bf16.mxu0 %v3695_v59  ;;  %2293 = vmatprep.subr.bf16.mxu1 %v3698_v60  ;;  %v3780_v59 = vld [vmem:[#allocation8 + $0xe0] sm:$0xff]  }
 0x174   :  { %v3781_v60 = vld [vmem:[#allocation8 + $0x20] sm:$0xff]  }
 0x176   :  { %2079 = vmatpush1.bf16.msra.mxu0 %v3693_v61  ;;  %2294 = vmatpush1.bf16.msra.mxu1 %v3696_v62  ;;  %v3782_v61 = vld [vmem:[#allocation8 + $0xa0] sm:$0xff]   ;;  %v3783_v62 = vld [vmem:[#allocation8 + $0x68] sm:$0xff]  }
 0x177   :  { %2080 = vmatprep.subr.bf16.mxu0 %v3701_v63  ;;  %2295 = vmatprep.subr.bf16.mxu1 %v3704_v0  ;;  %v3784_v63 = vld [vmem:[#allocation8 + $0xe8] sm:$0xff]  }
 0x178   :  { %v3785_v0 = vld [vmem:[#allocation8 + $0x28] sm:$0xff]  }
 0x17a   :  { %2081 = vmatpush1.bf16.msra.mxu0 %v3699_v1  ;;  %2296 = vmatpush1.bf16.msra.mxu1 %v3702_v2  ;;  %v3786_v1 = vld [vmem:[#allocation8 + $0xa8] sm:$0xff]   ;;  %v3787_v2 = vld [vmem:[#allocation8 + $0x70] sm:$0xff]  }
 0x17b   :  { %2082 = vmatprep.subr.bf16.mxu0 %v3707_v3  ;;  %2297 = vmatprep.subr.bf16.mxu1 %v3710_v4  ;;  %v3788_v3 = vld [vmem:[#allocation8 + $0xf0] sm:$0xff]  }
 0x17c   :  { %v3789_v4 = vld [vmem:[#allocation8 + $0x30] sm:$0xff]  }
 0x17e   :  { %2083 = vmatpush1.bf16.msra.mxu0 %v3705_v5  ;;  %2298 = vmatpush1.bf16.msra.mxu1 %v3708_v6  ;;  %v3790_v5 = vld [vmem:[#allocation8 + $0xb0] sm:$0xff]   ;;  %v3791_v6 = vld [vmem:[#allocation8 + $0x78] sm:$0xff]  }
 0x17f   :  { %2095 = vmatprep.subr.bf16.mxu0 %v3716_v7  ;;  %2310 = vmatprep.subr.bf16.mxu1 %v3719_v8  ;;  %v3792_v7 = vld [vmem:[#allocation8 + $0xf8] sm:$0xff]  }
 0x180   :  { %v3793_v8 = vld [vmem:[#allocation8 + $0x38] sm:$0xff]  }
 0x181   :  { %2085 = vmatmul.mubr.bf16.vlgmr.msra.gmra.mrb[0].mxu0 %v3711_v9  ;;  %2300 = vmatmul.mubr.bf16.vlgmr.msra.gmra.mrb[0].mxu1 %v3711_v9  ;;  %v3794_v9 = vld [vmem:[#allocation8 + $0xb8] sm:$0xff]  }
 0x182   :  { %2096 = vmatpush1.bf16.msra.mxu0 %v3714_v10  ;;  %2311 = vmatpush1.bf16.msra.mxu1 %v3717_v11  ;;  %v4003_v10 = vmov 0.0   ;;  %v417_v11 = vlaneseq }
 0x183   :  { %2097 = vmatprep.subr.bf16.mxu0 %v3722_v12  ;;  %2312 = vmatprep.subr.bf16.mxu1 %v3725_v13 }
 0x184   :  { %2127 = vmatprep.mubr.bf16.mxu0 %v4002_v18  ;;  %2342 = vmatprep.mubr.bf16.mxu1 %v4002_v18  ;;  %v418_v12 = vshrl.u32 %v417_v11, 7 }
 0x186   :  { %2098 = vmatpush1.bf16.msra.mxu0 %v3720_v14  ;;  %2313 = vmatpush1.bf16.msra.mxu1 %v3723_v15  ;;  %v419_v13 = vsub.s32 0, %v418_v12  ;;  %v427_v14 = vsub.s32 2, %v418_v12  ;;  %v415_v15 = vld [vmem:[#allocation7] sm:$0xf] }
 0x187   :  { %2099 = vmatprep.subr.bf16.mxu0 %v3728_v16  ;;  %2314 = vmatprep.subr.bf16.mxu1 %v3731_v17  ;;  %v423_v16 = vsub.s32 1, %v418_v12  ;;  %v431_v17 = vsub.s32 3, %v418_v12 }
 0x188   :  { %v420_v18 = vrot.slane %v415_v15, %v419_v13 }
 0x18a   :  { %2100 = vmatpush1.bf16.msra.mxu0 %v3726_v19  ;;  %2315 = vmatpush1.bf16.msra.mxu1 %v3729_v20  ;;  %v428_v19 = vrot.slane %v415_v15, %v427_v14  ;;  %v424_v20 = vrot.slane %v415_v15, %v423_v16  ;;  %v3177_v14 = vld [vmem:[#allocation13] ss:$0 sm:$0xff] }
 0x18b   :  { %2101 = vmatprep.subr.bf16.mxu0 %v3734_v21  ;;  %2316 = vmatprep.subr.bf16.mxu1 %v3737_v22  ;;  %v432_v21 = vrot.slane %v415_v15, %v431_v17 }
 0x18e   :  { %2102 = vmatpush1.bf16.msra.mxu0 %v3732_v23  ;;  %2317 = vmatpush1.bf16.msra.mxu1 %v3735_v24 }
 0x18f   :  { %2103 = vmatprep.subr.bf16.mxu0 %v3740_v25  ;;  %2318 = vmatprep.subr.bf16.mxu1 %v3743_v26 }
 0x192   :  { %2104 = vmatpush1.bf16.msra.mxu0 %v3738_v27  ;;  %2319 = vmatpush1.bf16.msra.mxu1 %v3741_v28 }
 0x193   :  { %2105 = vmatprep.subr.bf16.mxu0 %v3746_v29  ;;  %2320 = vmatprep.subr.bf16.mxu1 %v3749_v30 }
 0x196   :  { %2106 = vmatpush1.bf16.msra.mxu0 %v3744_v31  ;;  %2321 = vmatpush1.bf16.msra.mxu1 %v3747_v32 }
 0x197   :  { %2107 = vmatprep.subr.bf16.mxu0 %v3752_v33  ;;  %2322 = vmatprep.subr.bf16.mxu1 %v3755_v34 }
 0x19a   :  { %2108 = vmatpush1.bf16.msra.mxu0 %v3750_v35  ;;  %2323 = vmatpush1.bf16.msra.mxu1 %v3753_v36 }
 0x19b   :  { %2109 = vmatprep.subr.bf16.mxu0 %v3758_v37  ;;  %2324 = vmatprep.subr.bf16.mxu1 %v3761_v38 }
 0x19e   :  { %2110 = vmatpush1.bf16.msra.mxu0 %v3756_v39  ;;  %2325 = vmatpush1.bf16.msra.mxu1 %v3759_v40 }
 0x19f   :  { %3186 = vmatprep.subr.bf16.mxu0 %v3763_v41  ;;  %3208 = vmatprep.subr.bf16.mxu1 %v3764_v42 }
 0x1a1   :  { %2128 = vmatmul.mubr.bf16.vlgmr.msra.gmra.mrb[0].mxu0 %v3762_v43  ;;  %2343 = vmatmul.mubr.bf16.vlgmr.msra.gmra.mrb[0].mxu1 %v3762_v43 }
 0x1a2   :  { %3187 = vmatpush3.bf16.msra.mxu0 %v3765_v44  ;;  %3209 = vmatpush3.bf16.msra.mxu1 %v3766_v45 }
 0x1a3   :  { %3188 = vmatprep.subr.bf16.mxu0 %v3767_v46  ;;  %3210 = vmatprep.subr.bf16.mxu1 %v3768_v47 }
 0x1a6   :  { %3189 = vmatpush3.bf16.msra.mxu0 %v3769_v48  ;;  %3211 = vmatpush3.bf16.msra.mxu1 %v3770_v49 }
 0x1a7   :  { %3190 = vmatprep.subr.bf16.mxu0 %v3771_v50  ;;  %3212 = vmatprep.subr.bf16.mxu1 %v3772_v51  ;;  %v3795_v50 = vld [vmem:[#allocation11] sm:$0xff]   ;;  %v3796_v51 = vld [vmem:[#allocation11 + $0x8] sm:$0xff]  }
 0x1aa   :  { %3191 = vmatpush3.bf16.msra.mxu0 %v3773_v52  ;;  %3213 = vmatpush3.bf16.msra.mxu1 %v3774_v53  ;;  %v3797_v52 = vld [vmem:[#allocation11 + $0x10] sm:$0xff]   ;;  %v3798_v53 = vld [vmem:[#allocation11 + $0x18] sm:$0xff]  }
 0x1ab   :  { %3192 = vmatprep.subr.bf16.mxu0 %v3775_v54  ;;  %3214 = vmatprep.subr.bf16.mxu1 %v3776_v55  ;;  %v3799_v54 = vld [vmem:[#allocation11 + $0x20] sm:$0xff]   ;;  %v3800_v55 = vld [vmem:[#allocation11 + $0x28] sm:$0xff]  }
 0x1ae   :  { %3193 = vmatpush3.bf16.msra.mxu0 %v3777_v56  ;;  %3215 = vmatpush3.bf16.msra.mxu1 %v3778_v57  ;;  %v3801_v56 = vld [vmem:[#allocation11 + $0x30] sm:$0xff]   ;;  %v3802_v57 = vld [vmem:[#allocation11 + $0x38] sm:$0xff]  }
 0x1af   :  { %3194 = vmatprep.subr.bf16.mxu0 %v3779_v58  ;;  %3216 = vmatprep.subr.bf16.mxu1 %v3780_v59 }
 0x1b2   :  { %3195 = vmatpush3.bf16.msra.mxu0 %v3781_v60  ;;  %3217 = vmatpush3.bf16.msra.mxu1 %v3782_v61  ;;  %v3144_v60 = vld [vmem:[#allocation10] ss:$0 sm:$0xff] }
 0x1b3   :  { %3196 = vmatprep.subr.bf16.mxu0 %v3783_v62  ;;  %3218 = vmatprep.subr.bf16.mxu1 %v3784_v63 }
 0x1b6   :  { %3197 = vmatpush3.bf16.msra.mxu0 %v3785_v0  ;;  %3219 = vmatpush3.bf16.msra.mxu1 %v3786_v1 }
 0x1b7   :  { %3198 = vmatprep.subr.bf16.mxu0 %v3787_v2  ;;  %3220 = vmatprep.subr.bf16.mxu1 %v3788_v3 }
 0x1ba   :  { %3199 = vmatpush3.bf16.msra.mxu0 %v3789_v4  ;;  %3221 = vmatpush3.bf16.msra.mxu1 %v3790_v5 }
 0x1bb   :  { %3200 = vmatprep.subr.bf16.mxu0 %v3791_v6  ;;  %3222 = vmatprep.subr.bf16.mxu1 %v3792_v7 }
 0x1be   :  { %3201 = vmatpush3.bf16.msra.mxu0 %v3793_v8  ;;  %3223 = vmatpush3.bf16.msra.mxu1 %v3794_v9 }
 0x1bf   :  { %3239 = vmatprep.subr.bf16.mxu0 %v4003_v10 }
 0x274   :  { %v2129_v22 = vpop.f32.mrb[0].mxu0  ;;  %v2344_v23 = vpop.f32.mrb[0].mxu1 }
 0x275   :  { %v3259_v24 = vadd.f32 %v2129_v22, %v420_v18  ;;  %v3263_v25 = vadd.f32 %v2344_v23, %v428_v19  ;;  %v2131_v26 = vpop.f32.mrb[1].mxu0  ;;  %v2346_v27 = vpop.f32.mrb[1].mxu1 }
 0x276   :  { %v3260_v28 = vadd.f32 %v2131_v26, %v424_v20  ;;  %v3264_v29 = vadd.f32 %v2346_v27, %v432_v21  ;;  %v2133_v30 = vpop.f32.mrb[2].mxu0  ;;  %v2348_v31 = vpop.f32.mrb[2].mxu1 }
 0x277   :  { %v3261_v32 = vadd.f32 %v2133_v30, %v420_v18  ;;  %v3265_v33 = vadd.f32 %v2348_v31, %v428_v19  ;;  %v2135_v34 = vpop.f32.mrb[3].mxu0  ;;  %v2350_v35 = vpop.f32.mrb[3].mxu1  ;;  %v2353_v38 = vmax.f32 %v3259_v24, 0.0  ;;  %v2355_v39 = vmax.f32 %v3263_v25, 0.0 }
 0x278   :  { %v3262_v36 = vadd.f32 %v2135_v34, %v424_v20  ;;  %v3266_v37 = vadd.f32 %v2350_v35, %v432_v21  ;;  %v2354_v42 = vmax.f32 %v3260_v28, 0.0  ;;  %v2356_v43 = vmax.f32 %v3264_v29, 0.0 }
 0x279   :  { %v2357_v40 = vmax.f32 %v3261_v32, 0.0  ;;  %v2359_v41 = vmax.f32 %v3265_v33, 0.0 }
 0x27a   :  { %v2358_v44 = vmax.f32 %v3262_v36, 0.0  ;;  %v2360_v45 = vmax.f32 %v3266_v37, 0.0 }
 0x27b   :  { %v2361_v46 = vpack.c.bf16 %v2357_v40, %v2353_v38  ;;  %v2363_v47 = vpack.c.bf16 %v2359_v41, %v2355_v39 }
 0x27c   :  { %v2362_v48 = vpack.c.bf16 %v2358_v44, %v2354_v42  ;;  %v2364_v49 = vpack.c.bf16 %v2360_v45, %v2356_v43 }
 0x27e   :  { %2660 = vmatprep.mubr.bf16.mxu0 %v2362_v48  ;;  %2701 = vmatprep.mubr.bf16.mxu1 %v2364_v49 }
 0x27f   :  { %2661 = vmatmul.mubr.bf16.vlgmr.msra.gmra.mrb[4].mxu0 %v2361_v46  ;;  %2702 = vmatmul.mubr.bf16.vlgmr.msra.gmra.mrb[4].mxu1 %v2363_v47 }
 0x280   :  { %3240 = vmatpush3.bf16.msra.mxu0 %v3795_v50  ;;  %3255 = vmatprep.mubr.msk.bf16.mxu0 %vm4004_vm0, %v4003_v10 }
 0x281   :  { %3241 = vmatprep.subr.bf16.mxu0 %v4003_v10 }
 0x284   :  { %3242 = vmatpush3.bf16.msra.mxu0 %v3796_v51 }
 0x285   :  { %3243 = vmatprep.subr.bf16.mxu0 %v4003_v10 }
 0x288   :  { %3244 = vmatpush3.bf16.msra.mxu0 %v3797_v52 }
 0x289   :  { %3245 = vmatprep.subr.bf16.mxu0 %v4003_v10 }
 0x28c   :  { %3246 = vmatpush3.bf16.msra.mxu0 %v3798_v53 }
 0x28d   :  { %3247 = vmatprep.subr.bf16.mxu0 %v4003_v10 }
 0x290   :  { %3248 = vmatpush3.bf16.msra.mxu0 %v3799_v54 }
 0x291   :  { %3249 = vmatprep.subr.bf16.mxu0 %v4003_v10 }
 0x294   :  { %3250 = vmatpush3.bf16.msra.mxu0 %v3800_v55 }
 0x295   :  { %3251 = vmatprep.subr.bf16.mxu0 %v4003_v10 }
 0x298   :  { %3252 = vmatpush3.bf16.msra.mxu0 %v3801_v56 }
 0x299   :  { %3253 = vmatprep.subr.bf16.mxu0 %v4003_v10 }
 0x29c   :  { %3254 = vmatpush3.bf16.msra.mxu0 %v3802_v57 }
 0x352   :  { %v3202_v58 = vpop.f32.mrb[4].mxu0  ;;  %v3224_v59 = vpop.f32.mrb[4].mxu1 }
 0x353   :  { %v3203_v61 = vpop.f32.mrb[5].mxu0  ;;  %v3225_v62 = vpop.f32.mrb[5].mxu1 }
 0x354   :  { %v3204_v63 = vadd.f32 %v3203_v61, %v3202_v58  ;;  %v3226_v0 = vadd.f32 %v3225_v62, %v3224_v59  ;;  %v3205_v1 = vpop.f32.mrb[6].mxu0  ;;  %v3227_v2 = vpop.f32.mrb[6].mxu1 }
 0x355   :  { %v3206_v3 = vpop.f32.mrb[7].mxu0  ;;  %v3228_v4 = vpop.f32.mrb[7].mxu1 }
 0x356   :  { %v2663_v5 = vadd.f32 %v3204_v63, %v3144_v60  ;;  %v3207_v6 = vadd.f32 %v3206_v3, %v3205_v1  ;;  %v3229_v7 = vadd.f32 %v3228_v4, %v3227_v2 }
 0x358   :  { %v2704_v8 = vadd.f32 %v3226_v0, %v2663_v5  ;;  %v2666_v9 = vadd.f32 %v3207_v6, %v3144_v60 }
 0x35a   :  { %v2707_v11 = vadd.f32 %v3229_v7, %v2666_v9  ;;  %v2710_v12 = vmax.f32 %v2704_v8, 0.0 }
 0x35c   :  { %v2711_v13 = vmax.f32 %v2707_v11, 0.0 }
 0x35e   :  { %v2712_v10 = vpack.c.bf16 %v2711_v13, %v2710_v12 }
 0x360   :  { %3256 = vmatmul.mubr.bf16.vlgmr.msra.gmra.mrb[8].mxu0 %v2712_v10 }
 0x433   :  { %v2818_v15 = vpop.f32.mrb[8].mxu0 }
 0x434   :  { %v2819_v16 = vadd.f32 %v3177_v14, %v2818_v15  ;;  %v3257_v17 = vpop.f32.mrb[9].mxu0 }
 0x435   :  { %v2821_v18 = vpop.f32.mrb[10].mxu0 }
 0x436   :  { %2825 = vst [vmem:[#allocation14] sm:$0xff] %v2819_v16  ;;  %v2822_v19 = vadd.f32 %v3177_v14, %v2821_v18  ;;  %v3258_v20 = vpop.f32.mrb[11].mxu0 }
 0x438   :  { %2826 = vst [vmem:[#allocation14 + $0x8] sm:$0xff] %v2822_v19 }
 0x439   :  { %3968 = shalt.err (!%p3965_p4)
}
 0x43a   :  { %s3969_s16 = scalar_lea.hbm %s4167_s7, 256 }
 0x43b   :  { %p3970_p5 = scmp.ne.s32.totalorder %s4167_s7, %s3969_s16  ;;  %p3973_p6 = scmp.lt.u32.totalorder %s3969_s16, %s4167_s7 }
 0x43d   :  { %p3975_p7 = pnand %p3973_p6, %p3970_p5 }
 0x43f   :  { %3978 = shalt.err (!%p3975_p7)
}
 0x440   :  { %s4006_s21 = smov 128   ;;  %s4007_s22 = smov 8  }
 0x441   :  { %2838 = dma.vmem_to_hbm [thread:$0]  %s2833_s15, 256, %s4167_s7, [#allocation4], %s4006_s21, %s4006_s21, %s4007_s22  }
 0x442   :  { %3987 = dma.done.wait [#allocation4], 256  }
 0x443   :  { %3988 = vsyncadd [#allocation4], 4294967040 }
 0x444   :  { %2842 = vsyncpa [#allocation3], 1 }
 0x445   :  { %2843 = vsyncpa [#allocation6], 1 }
 0x446   :  { %2844 = vsyncpa [#allocation9], 1 }
 0x447   :  { %2845 = vsyncpa [#allocation12], 1 }
 0x448   :  { %2846 = vsyncpa [#allocation4], 1 }

// kernel: tpu_custom_call.1
= control target key start
LH: loop header
LB: loop body
LE: loop exit
PB: predicated region body
PF: predicated region fallthrough
CT: control target
= control target key end

     0   :  { %12 = vsyncpa [#allocation3], 0  ;;  %s4160_s0 = inlined_call_operand.hbm [shape: bf16[16,1152], index: 0, kind: input, shape index: {}]   ;;  %s4161_s1 = inlined_call_operand.hbm [shape: bf16[1152,512], index: 1, kind: input, shape index: {}]   ;;  %s4162_s2 = inlined_call_operand.hbm [shape: f32[1,512], index: 2, kind: input, shape index: {}]   ;;  %s4163_s3 = inlined_call_operand.hbm [shape: bf16[512,128], index: 3, kind: input, shape index: {}]   ;;  %s4164_s4 = inlined_call_operand.hbm [shape: f32[1,128], index: 4, kind: input, shape index: {}]   ;;  %s4165_s5 = inlined_call_operand.hbm [shape: bf16[128,128], index: 5, kind: input, shape index: {}]   ;;  %s4166_s6 = inlined_call_operand.hbm [shape: f32[1,128], index: 6, kind: input, shape index: {}]   ;;  %s4167_s7 = inlined_call_operand.hbm [shape: f32[16,128], index: 7, kind: output, shape index: {}]  }
   0x1   :  { %13 = vsyncpa [#allocation6], 0 }
   0x2   :  { %14 = vsyncpa [#allocation9], 0 }
   0x3   :  { %15 = vsyncpa [#allocation12], 0 }
   0x4   :  { %16 = vsyncpa [#allocation4], 0  ;;  %s3989_s24 = smov [#allocation5]   ;;  %s3803_s28 = scalar_lea.hbm %s4161_s1, 36864 }
   0x5   :  { %s34_s25 = sshll.u32 %s3989_s24, 4  ;;  %p3804_p0 = scmp.ne.s32.totalorder %s4161_s1, %s3803_s28  ;;  %s35_s25 = int_to_ptr.vmem [resolvable:$true] %s34_s25 }
   0x6   :  { %p3807_p1 = scmp.lt.u32.totalorder %s3803_s28, %s4161_s1 }
   0x8   :  { %p3809_p2 = pnand %p3807_p1, %p3804_p0 }
   0xa   :  { %3812 = shalt.err (!%p3809_p2)
}
   0xb   :  { %s3813_s10 = scalar_lea.vmem %s35_s25, 36864  ;;  %p3818_p4 = scmp.lt.s32.totalorder %s35_s25, %s35_s25 }
   0xc   :  { %p3814_p3 = scmp.ne.s32.totalorder %s35_s25, %s3813_s10  ;;  %p3819_p5 = scmp.lt.s32.totalorder %s3813_s10, %s3813_s10 }
   0xe   :  { %p3820_p6 = por %p3819_p5, %p3818_p4 }
  0x10   :  { %p3821_p7 = pnand %p3820_p6, %p3814_p3 }
  0x12   :  { %3824 = shalt.err (!%p3821_p7)
}
  0x13   :  { %s3990_s11 = smov 256   ;;  %s3991_s12 = smov 16  }
  0x14   :  { %40 = dma.hbm_to_vmem [thread:$0]  %s4161_s1, 36864, %s35_s25, [#allocation6], %s3990_s11, %s3990_s11, %s3991_s12  }
  0x15   :  { %s3992_s15 = smov [#allocation8]   ;;  %s3825_s19 = scalar_lea.hbm %s4163_s3, 4096 }
  0x16   :  { %s56_s16 = sshll.u32 %s3992_s15, 4  ;;  %p3826_p8 = scmp.ne.s32.totalorder %s4163_s3, %s3825_s19  ;;  %s57_s16 = int_to_ptr.vmem [resolvable:$true] %s56_s16 }
  0x17   :  { %p3829_p9 = scmp.lt.u32.totalorder %s3825_s19, %s4163_s3 }
  0x19   :  { %p3831_p10 = pnand %p3829_p9, %p3826_p8 }
  0x1b   :  { %3834 = shalt.err (!%p3831_p10)
}
  0x1c   :  { %s3835_s24 = scalar_lea.vmem %s57_s16, 4096  ;;  %p3840_p12 = scmp.lt.s32.totalorder %s57_s16, %s57_s16 }
  0x1d   :  { %p3836_p11 = scmp.ne.s32.totalorder %s57_s16, %s3835_s24  ;;  %p3841_p13 = scmp.lt.s32.totalorder %s3835_s24, %s3835_s24 }
  0x1f   :  { %p3842_p0 = por %p3841_p13, %p3840_p12 }
  0x21   :  { %p3843_p1 = pnand %p3842_p0, %p3836_p11 }
  0x23   :  { %3846 = shalt.err (!%p3843_p1)
}
  0x24   :  { %s3993_s1 = smov 64   ;;  %s3994_s25 = smov 4  }
  0x25   :  { %62 = dma.hbm_to_vmem [thread:$0]  %s4163_s3, 4096, %s57_s16, [#allocation9], %s3993_s1, %s3993_s1, %s3994_s25  }
  0x26   :  { %s3995_s28 = smov [#allocation11]   ;;  %s3996_s30 = smov [#allocation2]  }
  0x27   :  { %s78_s29 = sshll.u32 %s3995_s28, 4  ;;  %s22_s8 = sshll.u32 %s3996_s30, 4  ;;  %s79_s29 = int_to_ptr.vmem [resolvable:$true] %s78_s29  ;;  %s4072_s8 = int_to_ptr.vmem [resolvable:$true] %s22_s8 }
  0x28   :  { %s3847_s11 = scalar_lea.hbm %s4165_s5, 1024 }
  0x29   :  { %p3848_p2 = scmp.ne.s32.totalorder %s4165_s5, %s3847_s11  ;;  %p3851_p3 = scmp.lt.u32.totalorder %s3847_s11, %s4165_s5 }
  0x2b   :  { %p3853_p4 = pnand %p3851_p3, %p3848_p2 }
  0x2d   :  { %3856 = shalt.err (!%p3853_p4)
}
  0x2e   :  { %s3857_s3 = scalar_lea.vmem %s79_s29, 1024  ;;  %p3862_p6 = scmp.lt.s32.totalorder %s79_s29, %s79_s29 }
  0x2f   :  { %p3858_p5 = scmp.ne.s32.totalorder %s79_s29, %s3857_s3  ;;  %p3863_p7 = scmp.lt.s32.totalorder %s3857_s3, %s3857_s3 }
  0x31   :  { %p3864_p8 = por %p3863_p7, %p3862_p6 }
  0x33   :  { %p3865_p9 = pnand %p3864_p8, %p3858_p5 }
  0x35   :  { %3868 = shalt.err (!%p3865_p9)
}
  0x36   :  { %84 = dma.hbm_to_vmem [thread:$0]  %s4165_s5, 1024, %s79_s29, [#allocation12], %s3993_s1, %s3993_s1, %s3994_s25  }
  0x37   :  { %s3869_s20 = scalar_lea.hbm %s4160_s0, 1152 }
  0x38   :  { %p3870_p10 = scmp.ne.s32.totalorder %s4160_s0, %s3869_s20  ;;  %p3873_p11 = scmp.lt.u32.totalorder %s3869_s20, %s4160_s0 }
  0x3a   :  { %p3875_p12 = pnand %p3873_p11, %p3870_p10 }
  0x3c   :  { %3878 = shalt.err (!%p3875_p12)
}
  0x3d   :  { %s3879_s26 = scalar_lea.vmem %s4072_s8, 1152  ;;  %p3884_p0 = scmp.lt.s32.totalorder %s4072_s8, %s4072_s8 }
  0x3e   :  { %p3880_p13 = scmp.ne.s32.totalorder %s4072_s8, %s3879_s26  ;;  %p3885_p1 = scmp.lt.s32.totalorder %s3879_s26, %s3879_s26 }
  0x40   :  { %p3886_p2 = por %p3885_p1, %p3884_p0 }
  0x42   :  { %p3887_p3 = pnand %p3886_p2, %p3880_p13 }
  0x44   :  { %3890 = shalt.err (!%p3887_p3)
}
  0x45   :  { %s3997_s5 = smov 576   ;;  %s3998_s1 = smov 36  }
  0x46   :  { %28 = dma.hbm_to_vmem [thread:$0]  %s4160_s0, 1152, %s4072_s8, [#allocation3], %s3997_s5, %s3997_s5, %s3998_s1  }
  0x47   :  { %s3999_s28 = smov [#allocation7]   ;;  %s4000_s30 = smov [#allocation10]  }
  0x48   :  { %s47_s29 = sshll.u32 %s3999_s28, 4  ;;  %s69_s9 = sshll.u32 %s4000_s30, 4  ;;  %s48_s29 = int_to_ptr.vmem [resolvable:$true] %s47_s29  ;;  %s70_s9 = int_to_ptr.vmem [resolvable:$true] %s69_s9 }
  0x49   :  { %s3891_s12 = scalar_lea.hbm %s4162_s2, 64 }
  0x4a   :  { %p3892_p4 = scmp.ne.s32.totalorder %s4162_s2, %s3891_s12  ;;  %p3895_p5 = scmp.lt.u32.totalorder %s3891_s12, %s4162_s2 }
  0x4c   :  { %p3897_p6 = pnand %p3895_p5, %p3892_p4 }
  0x4e   :  { %3900 = shalt.err (!%p3897_p6)
}
  0x4f   :  { %s3901_s0 = scalar_lea.vmem %s48_s29, 64  ;;  %p3906_p8 = scmp.lt.s32.totalorder %s48_s29, %s48_s29 }
  0x50   :  { %p3902_p7 = scmp.ne.s32.totalorder %s48_s29, %s3901_s0  ;;  %p3907_p9 = scmp.lt.s32.totalorder %s3901_s0, %s3901_s0 }
  0x52   :  { %p3908_p10 = por %p3907_p9, %p3906_p8 }
  0x54   :  { %p3909_p11 = pnand %p3908_p10, %p3902_p7 }
  0x56   :  { %3912 = shalt.err (!%p3909_p11)
}
  0x57   :  { %50 = dma.hbm_to_vmem [thread:$0]  %s4162_s2, 64, %s48_s29, [#allocation6]  }
  0x58   :  { %s3913_s19 = scalar_lea.hbm %s4164_s4, 16 }
  0x59   :  { %p3914_p12 = scmp.ne.s32.totalorder %s4164_s4, %s3913_s19  ;;  %p3917_p13 = scmp.lt.u32.totalorder %s3913_s19, %s4164_s4 }
  0x5b   :  { %p3919_p0 = pnand %p3917_p13, %p3914_p12 }
  0x5d   :  { %3922 = shalt.err (!%p3919_p0)
}
  0x5e   :  { %s3923_s24 = scalar_lea.vmem %s70_s9, 16  ;;  %s3927_s26 = scalar_lea.vmem %s70_s9, 32 }
  0x5f   :  { %p3924_p1 = scmp.ne.s32.totalorder %s70_s9, %s3923_s24  ;;  %p3928_p2 = scmp.lt.s32.totalorder %s70_s9, %s70_s9 }
  0x60   :  { %p3929_p3 = scmp.lt.s32.totalorder %s3927_s26, %s3923_s24 }
  0x62   :  { %p3930_p4 = por %p3929_p3, %p3928_p2 }
  0x64   :  { %p3931_p5 = pnand %p3930_p4, %p3924_p1 }
  0x66   :  { %3934 = shalt.err (!%p3931_p5)
}
  0x67   :  { %72 = dma.hbm_to_vmem [thread:$0]  %s4164_s4, 16, %s70_s9, [#allocation9]  }
  0x68   :  { %s4001_s1 = smov [#allocation13]   ;;  %s3935_s29 = scalar_lea.hbm %s4166_s6, 16 }
  0x69   :  { %s91_s25 = sshll.u32 %s4001_s1, 4  ;;  %p3936_p6 = scmp.ne.s32.totalorder %s4166_s6, %s3935_s29  ;;  %s92_s25 = int_to_ptr.vmem [resolvable:$true] %s91_s25 }
  0x6a   :  { %p3939_p7 = scmp.lt.u32.totalorder %s3935_s29, %s4166_s6 }
  0x6c   :  { %p3941_p8 = pnand %p3939_p7, %p3936_p6 }
  0x6e   :  { %3944 = shalt.err (!%p3941_p8)
}
  0x6f   :  { %s3945_s13 = scalar_lea.vmem %s92_s25, 16  ;;  %s3949_s4 = scalar_lea.vmem %s92_s25, 32 }
  0x70   :  { %p3946_p9 = scmp.ne.s32.totalorder %s92_s25, %s3945_s13  ;;  %p3950_p10 = scmp.lt.s32.totalorder %s92_s25, %s92_s25 }
  0x71   :  { %p3951_p11 = scmp.lt.s32.totalorder %s3949_s4, %s3945_s13 }
  0x73   :  { %p3952_p12 = por %p3951_p11, %p3950_p10 }
  0x75   :  { %p3953_p13 = pnand %p3952_p12, %p3946_p9 }
  0x77   :  { %3956 = shalt.err (!%p3953_p13)
}
  0x78   :  { %94 = dma.hbm_to_vmem [thread:$0]  %s4166_s6, 16, %s92_s25, [#allocation12]  }
  0x79   :  { %3979 = dma.done.wait [#allocation3], 1152  }
  0x7a   :  { %3980 = vsyncadd [#allocation3], 4294966144 }
  0x7b   :  { %3981 = dma.done.wait [#allocation6], 36928  }
  0x7c   :  { %3982 = vsyncadd [#allocation6], 4294930368 }
  0x7d   :  { %3983 = dma.done.wait [#allocation9], 4112  }
  0x7e   :  { %3984 = vsyncadd [#allocation9], 4294963184 }
  0x7f   :  { %3985 = dma.done.wait [#allocation12], 1040  }
  0x80   :  { %3986 = vsyncadd [#allocation12], 4294966256  ;;  %v3318_v0 = vld [vmem:[#allocation5 + $0x4] ss:$16 sps:$4 sm:$0xff]   ;;  %v3320_v1 = vld [vmem:[#allocation5 + $0xc] ss:$16 sps:$4 sm:$0xff]  }
  0x81   :  { %1923 = vmatprep.subr.bf16.mxu0 %v3318_v0  ;;  %v3322_v2 = vld [vmem:[#allocation5] ss:$16 sps:$4 sm:$0xff]   ;;  %v3323_v3 = vld [vmem:[#allocation5 + $0x8] ss:$16 sps:$4 sm:$0xff]   ;;  %2138 = vmatprep.subr.bf16.mxu1 %v3320_v1  ;;  %v3324_v4 = vld [vmem:[#allocation5 + $0x24] ss:$16 sps:$4 sm:$0xff]  }
  0x82   :  { %1924 = vmatpush1.bf16.msra.mxu0 %v3322_v2  ;;  %2139 = vmatpush1.bf16.msra.mxu1 %v3323_v3  ;;  %v3326_v5 = vld [vmem:[#allocation5 + $0x2c] ss:$16 sps:$4 sm:$0xff]   ;;  %v3328_v6 = vld [vmem:[#allocation5 + $0x20] ss:$16 sps:$4 sm:$0xff]   ;;  %v3329_v7 = vld [vmem:[#allocation5 + $0x28] ss:$16 sps:$4 sm:$0xff]  }
  0x83   :  { %1925 = vmatprep.subr.bf16.mxu0 %v3324_v4  ;;  %2140 = vmatprep.subr.bf16.mxu1 %v3326_v5  ;;  %v3330_v8 = vld [vmem:[#allocation5 + $0x44] ss:$16 sps:$4 sm:$0xff]   ;;  %v3332_v9 = vld [vmem:[#allocation5 + $0x4c] ss:$16 sps:$4 sm:$0xff]   ;;  %v3334_v10 = vld [vmem:[#allocation5 + $0x40] ss:$16 sps:$4 sm:$0xff]  }
  0x84   :  { %v3335_v11 = vld [vmem:[#allocation5 + $0x48] ss:$16 sps:$4 sm:$0xff]   ;;  %v3336_v12 = vld [vmem:[#allocation5 + $0x64] ss:$16 sps:$4 sm:$0xff]   ;;  %v3338_v13 = vld [vmem:[#allocation5 + $0x6c] ss:$16 sps:$4 sm:$0xff]  }
  0x85   :  { %v3340_v14 = vld [vmem:[#allocation5 + $0x60] ss:$16 sps:$4 sm:$0xff]   ;;  %v3341_v15 = vld [vmem:[#allocation5 + $0x68] ss:$16 sps:$4 sm:$0xff]   ;;  %v3342_v16 = vld [vmem:[#allocation5 + $0x84] ss:$16 sps:$4 sm:$0xff]  }
  0x86   :  { %1926 = vmatpush1.bf16.msra.mxu0 %v3328_v6  ;;  %2141 = vmatpush1.bf16.msra.mxu1 %v3329_v7  ;;  %v3344_v17 = vld [vmem:[#allocation5 + $0x8c] ss:$16 sps:$4 sm:$0xff]   ;;  %v3346_v18 = vld [vmem:[#allocation5 + $0x80] ss:$16 sps:$4 sm:$0xff]   ;;  %v3347_v19 = vld [vmem:[#allocation5 + $0x88] ss:$16 sps:$4 sm:$0xff]  }
  0x87   :  { %1927 = vmatprep.subr.bf16.mxu0 %v3330_v8  ;;  %2142 = vmatprep.subr.bf16.mxu1 %v3332_v9  ;;  %v3348_v20 = vld [vmem:[#allocation5 + $0xa4] ss:$16 sps:$4 sm:$0xff]   ;;  %v3350_v21 = vld [vmem:[#allocation5 + $0xac] ss:$16 sps:$4 sm:$0xff]   ;;  %v3352_v22 = vld [vmem:[#allocation5 + $0xa0] ss:$16 sps:$4 sm:$0xff]  }
  0x88   :  { %v3353_v23 = vld [vmem:[#allocation5 + $0xa8] ss:$16 sps:$4 sm:$0xff]   ;;  %v3354_v24 = vld [vmem:[#allocation5 + $0xc4] ss:$16 sps:$4 sm:$0xff]   ;;  %v3356_v25 = vld [vmem:[#allocation5 + $0xcc] ss:$16 sps:$4 sm:$0xff]  }
  0x89   :  { %v3358_v26 = vld [vmem:[#allocation5 + $0xc0] ss:$16 sps:$4 sm:$0xff]   ;;  %v3359_v27 = vld [vmem:[#allocation5 + $0xc8] ss:$16 sps:$4 sm:$0xff]   ;;  %v3360_v28 = vld [vmem:[#allocation5 + $0xe4] ss:$16 sps:$4 sm:$0xff]  }
  0x8a   :  { %1928 = vmatpush1.bf16.msra.mxu0 %v3334_v10  ;;  %2143 = vmatpush1.bf16.msra.mxu1 %v3335_v11  ;;  %v3362_v29 = vld [vmem:[#allocation5 + $0xec] ss:$16 sps:$4 sm:$0xff]   ;;  %v3364_v30 = vld [vmem:[#allocation5 + $0xe0] ss:$16 sps:$4 sm:$0xff]   ;;  %v3365_v31 = vld [vmem:[#allocation5 + $0xe8] ss:$16 sps:$4 sm:$0xff]  }
  0x8b   :  { %1929 = vmatprep.subr.bf16.mxu0 %v3336_v12  ;;  %2144 = vmatprep.subr.bf16.mxu1 %v3338_v13  ;;  %v3366_v32 = vld [vmem:[#allocation5 + $0x104] ss:$16 sps:$4 sm:$0xff]   ;;  %v3368_v33 = vld [vmem:[#allocation5 + $0x10c] ss:$16 sps:$4 sm:$0xff]   ;;  %v3370_v34 = vld [vmem:[#allocation5 + $0x100] ss:$16 sps:$4 sm:$0xff]  }
  0x8c   :  { %v3371_v35 = vld [vmem:[#allocation5 + $0x108] ss:$16 sps:$4 sm:$0xff]   ;;  %v3372_v36 = vld [vmem:[#allocation5 + $0x124] ss:$16 sps:$4 sm:$0xff]   ;;  %v3374_v37 = vld [vmem:[#allocation5 + $0x12c] ss:$16 sps:$4 sm:$0xff]  }
  0x8d   :  { %v3376_v38 = vld [vmem:[#allocation5 + $0x120] ss:$16 sps:$4 sm:$0xff]   ;;  %v3377_v39 = vld [vmem:[#allocation5 + $0x128] ss:$16 sps:$4 sm:$0xff]   ;;  %v3378_v40 = vld [vmem:[#allocation5 + $0x144] ss:$16 sps:$4 sm:$0xff]  }
  0x8e   :  { %1930 = vmatpush1.bf16.msra.mxu0 %v3340_v14  ;;  %2145 = vmatpush1.bf16.msra.mxu1 %v3341_v15  ;;  %v3380_v41 = vld [vmem:[#allocation5 + $0x14c] ss:$16 sps:$4 sm:$0xff]   ;;  %v3382_v42 = vld [vmem:[#allocation5 + $0x140] ss:$16 sps:$4 sm:$0xff]   ;;  %v3383_v43 = vld [vmem:[#allocation5 + $0x148] ss:$16 sps:$4 sm:$0xff]  }
  0x8f   :  { %1931 = vmatprep.subr.bf16.mxu0 %v3342_v16  ;;  %2146 = vmatprep.subr.bf16.mxu1 %v3344_v17  ;;  %v3384_v44 = vld [vmem:[#allocation5 + $0x164] ss:$16 sps:$4 sm:$0xff]   ;;  %v3386_v45 = vld [vmem:[#allocation5 + $0x16c] ss:$16 sps:$4 sm:$0xff]   ;;  %v3388_v46 = vld [vmem:[#allocation5 + $0x160] ss:$16 sps:$4 sm:$0xff]  }
  0x90   :  { %v3389_v47 = vld [vmem:[#allocation5 + $0x168] ss:$16 sps:$4 sm:$0xff]   ;;  %v3416_v48 = vld [vmem:[#allocation2 + $0x4] ss:$36 sps:$4 sm:$0xff]   ;;  %v3390_v49 = vld [vmem:[#allocation5 + $0x184] ss:$16 sps:$4 sm:$0xff]  }
  0x91   :  { %v3392_v50 = vld [vmem:[#allocation5 + $0x18c] ss:$16 sps:$4 sm:$0xff]   ;;  %1955 = vmatprep.mubr.bf16.mxu0 %v3416_v48  ;;  %2170 = vmatprep.mubr.bf16.mxu1 %v3416_v48  ;;  %v3394_v51 = vld [vmem:[#allocation5 + $0x180] ss:$16 sps:$4 sm:$0xff]   ;;  %v3395_v52 = vld [vmem:[#allocation5 + $0x188] ss:$16 sps:$4 sm:$0xff]  }
  0x92   :  { %1932 = vmatpush1.bf16.msra.mxu0 %v3346_v18  ;;  %2147 = vmatpush1.bf16.msra.mxu1 %v3347_v19  ;;  %v3396_v53 = vld [vmem:[#allocation5 + $0x1a4] ss:$16 sps:$4 sm:$0xff]   ;;  %v3398_v54 = vld [vmem:[#allocation5 + $0x1ac] ss:$16 sps:$4 sm:$0xff]   ;;  %v3400_v55 = vld [vmem:[#allocation5 + $0x1a0] ss:$16 sps:$4 sm:$0xff]  }
  0x93   :  { %1933 = vmatprep.subr.bf16.mxu0 %v3348_v20  ;;  %2148 = vmatprep.subr.bf16.mxu1 %v3350_v21  ;;  %v3401_v56 = vld [vmem:[#allocation5 + $0x1a8] ss:$16 sps:$4 sm:$0xff]   ;;  %v3402_v57 = vld [vmem:[#allocation5 + $0x1c4] ss:$16 sps:$4 sm:$0xff]   ;;  %v3404_v58 = vld [vmem:[#allocation5 + $0x1cc] ss:$16 sps:$4 sm:$0xff]  }
  0x94   :  { %v3406_v59 = vld [vmem:[#allocation5 + $0x1c0] ss:$16 sps:$4 sm:$0xff]   ;;  %v3407_v60 = vld [vmem:[#allocation5 + $0x1c8] ss:$16 sps:$4 sm:$0xff]   ;;  %v3408_v61 = vld [vmem:[#allocation5 + $0x1e4] ss:$16 sps:$4 sm:$0xff]  }
  0x95   :  { %v3410_v62 = vld [vmem:[#allocation5 + $0x1ec] ss:$16 sps:$4 sm:$0xff]   ;;  %v3412_v63 = vld [vmem:[#allocation5 + $0x1e0] ss:$16 sps:$4 sm:$0xff]   ;;  %v3413_v0 = vld [vmem:[#allocation5 + $0x1e8] ss:$16 sps:$4 sm:$0xff]  }
  0x96   :  { %1934 = vmatpush1.bf16.msra.mxu0 %v3352_v22  ;;  %2149 = vmatpush1.bf16.msra.mxu1 %v3353_v23  ;;  %v3419_v1 = vld [vmem:[#allocation5 + $0x204] ss:$16 sps:$4 sm:$0xff]   ;;  %v3422_v2 = vld [vmem:[#allocation5 + $0x20c] ss:$16 sps:$4 sm:$0xff]   ;;  %v3417_v4 = vld [vmem:[#allocation5 + $0x200] ss:$16 sps:$4 sm:$0xff]  }
  0x97   :  { %1935 = vmatprep.subr.bf16.mxu0 %v3354_v24  ;;  %2150 = vmatprep.subr.bf16.mxu1 %v3356_v25  ;;  %v3414_v3 = vld [vmem:[#allocation2] ss:$36 sps:$4 sm:$0xff]   ;;  %v3425_v6 = vld [vmem:[#allocation5 + $0x224] ss:$16 sps:$4 sm:$0xff]   ;;  %v3423_v8 = vld [vmem:[#allocation5 + $0x220] ss:$16 sps:$4 sm:$0xff]  }
  0x98   :  { %v3420_v5 = vld [vmem:[#allocation5 + $0x208] ss:$16 sps:$4 sm:$0xff]   ;;  %v3428_v7 = vld [vmem:[#allocation5 + $0x22c] ss:$16 sps:$4 sm:$0xff]   ;;  %v3431_v10 = vld [vmem:[#allocation5 + $0x244] ss:$16 sps:$4 sm:$0xff]  }
  0x99   :  { %v3426_v9 = vld [vmem:[#allocation5 + $0x228] ss:$16 sps:$4 sm:$0xff]   ;;  %v3434_v11 = vld [vmem:[#allocation5 + $0x24c] ss:$16 sps:$4 sm:$0xff]   ;;  %v3429_v12 = vld [vmem:[#allocation5 + $0x240] ss:$16 sps:$4 sm:$0xff]  }
  0x9a   :  { %1936 = vmatpush1.bf16.msra.mxu0 %v3358_v26  ;;  %2151 = vmatpush1.bf16.msra.mxu1 %v3359_v27  ;;  %v3432_v13 = vld [vmem:[#allocation5 + $0x248] ss:$16 sps:$4 sm:$0xff]   ;;  %v3437_v14 = vld [vmem:[#allocation5 + $0x264] ss:$16 sps:$4 sm:$0xff]   ;;  %v3440_v15 = vld [vmem:[#allocation5 + $0x26c] ss:$16 sps:$4 sm:$0xff]  }
  0x9b   :  { %1937 = vmatprep.subr.bf16.mxu0 %v3360_v28  ;;  %2152 = vmatprep.subr.bf16.mxu1 %v3362_v29  ;;  %v3435_v16 = vld [vmem:[#allocation5 + $0x260] ss:$16 sps:$4 sm:$0xff]   ;;  %v3438_v17 = vld [vmem:[#allocation5 + $0x268] ss:$16 sps:$4 sm:$0xff]   ;;  %v3443_v18 = vld [vmem:[#allocation5 + $0x284] ss:$16 sps:$4 sm:$0xff]  }
  0x9c   :  { %v3446_v19 = vld [vmem:[#allocation5 + $0x28c] ss:$16 sps:$4 sm:$0xff]   ;;  %v3441_v20 = vld [vmem:[#allocation5 + $0x280] ss:$16 sps:$4 sm:$0xff]   ;;  %v3444_v21 = vld [vmem:[#allocation5 + $0x288] ss:$16 sps:$4 sm:$0xff]  }
  0x9d   :  { %v3449_v22 = vld [vmem:[#allocation5 + $0x2a4] ss:$16 sps:$4 sm:$0xff]   ;;  %v3452_v23 = vld [vmem:[#allocation5 + $0x2ac] ss:$16 sps:$4 sm:$0xff]   ;;  %v3447_v24 = vld [vmem:[#allocation5 + $0x2a0] ss:$16 sps:$4 sm:$0xff]  }
  0x9e   :  { %1938 = vmatpush1.bf16.msra.mxu0 %v3364_v30  ;;  %2153 = vmatpush1.bf16.msra.mxu1 %v3365_v31  ;;  %v3450_v25 = vld [vmem:[#allocation5 + $0x2a8] ss:$16 sps:$4 sm:$0xff]   ;;  %v3455_v26 = vld [vmem:[#allocation5 + $0x2c4] ss:$16 sps:$4 sm:$0xff]   ;;  %v3458_v27 = vld [vmem:[#allocation5 + $0x2cc] ss:$16 sps:$4 sm:$0xff]  }
  0x9f   :  { %1939 = vmatprep.subr.bf16.mxu0 %v3366_v32  ;;  %2154 = vmatprep.subr.bf16.mxu1 %v3368_v33  ;;  %v3453_v28 = vld [vmem:[#allocation5 + $0x2c0] ss:$16 sps:$4 sm:$0xff]   ;;  %v3456_v29 = vld [vmem:[#allocation5 + $0x2c8] ss:$16 sps:$4 sm:$0xff]   ;;  %v3461_v31 = vld [vmem:[#allocation5 + $0x2e4] ss:$16 sps:$4 sm:$0xff]  }
  0xa0   :  { %v3515_v30 = vld [vmem:[#allocation2 + $0xc] ss:$36 sps:$4 sm:$0xff]   ;;  %v3464_v32 = vld [vmem:[#allocation5 + $0x2ec] ss:$16 sps:$4 sm:$0xff]   ;;  %v3459_v33 = vld [vmem:[#allocation5 + $0x2e0] ss:$16 sps:$4 sm:$0xff]  }
  0xa1   :  { %v3488_v48 = vld [vmem:[#allocation5 + $0x36c] ss:$16 sps:$4 sm:$0xff]   ;;  %vm4004_vm0 = vmmov 0   ;;  %s4005_s6 = smov [#allocation14]  }
  0xa2   :  { %1940 = vmatpush1.bf16.msra.mxu0 %v3370_v34  ;;  %2155 = vmatpush1.bf16.msra.mxu1 %v3371_v35  ;;  %v3462_v34 = vld [vmem:[#allocation5 + $0x2e8] ss:$16 sps:$4 sm:$0xff]   ;;  %v3467_v35 = vld [vmem:[#allocation5 + $0x304] ss:$16 sps:$4 sm:$0xff]   ;;  %s2832_s15 = sshll.u32 %s4005_s6, 4  ;;  %s2833_s15 = int_to_ptr.vmem [resolvable:$true] %s2832_s15 }
  0xa3   :  { %1941 = vmatprep.subr.bf16.mxu0 %v3372_v36  ;;  %2156 = vmatprep.subr.bf16.mxu1 %v3374_v37  ;;  %v3470_v36 = vld [vmem:[#allocation5 + $0x30c] ss:$16 sps:$4 sm:$0xff]   ;;  %v3465_v37 = vld [vmem:[#allocation5 + $0x300] ss:$16 sps:$4 sm:$0xff]   ;;  %s3957_s3 = scalar_lea.vmem %s2833_s15, 256  ;;  %p3962_p1 = scmp.lt.s32.totalorder %s2833_s15, %s2833_s15 }
  0xa4   :  { %p3958_p0 = scmp.ne.s32.totalorder %s2833_s15, %s3957_s3  ;;  %p3963_p2 = scmp.lt.s32.totalorder %s3957_s3, %s3957_s3 }
  0xa6   :  { %1942 = vmatpush1.bf16.msra.mxu0 %v3376_v38  ;;  %2157 = vmatpush1.bf16.msra.mxu1 %v3377_v39  ;;  %v3468_v38 = vld [vmem:[#allocation5 + $0x308] ss:$16 sps:$4 sm:$0xff]   ;;  %v3473_v39 = vld [vmem:[#allocation5 + $0x324] ss:$16 sps:$4 sm:$0xff]   ;;  %p3964_p3 = por %p3963_p2, %p3962_p1 }
  0xa7   :  { %1943 = vmatprep.subr.bf16.mxu0 %v3378_v40  ;;  %2158 = vmatprep.subr.bf16.mxu1 %v3380_v41  ;;  %v3476_v40 = vld [vmem:[#allocation5 + $0x32c] ss:$16 sps:$4 sm:$0xff]   ;;  %v3471_v41 = vld [vmem:[#allocation5 + $0x320] ss:$16 sps:$4 sm:$0xff]  }
  0xa8   :  { %p3965_p4 = pnand %p3964_p3, %p3958_p0 }
  0xaa   :  { %1944 = vmatpush1.bf16.msra.mxu0 %v3382_v42  ;;  %2159 = vmatpush1.bf16.msra.mxu1 %v3383_v43  ;;  %v3474_v42 = vld [vmem:[#allocation5 + $0x328] ss:$16 sps:$4 sm:$0xff]   ;;  %v3479_v43 = vld [vmem:[#allocation5 + $0x344] ss:$16 sps:$4 sm:$0xff]  }
  0xab   :  { %1945 = vmatprep.subr.bf16.mxu0 %v3384_v44  ;;  %2160 = vmatprep.subr.bf16.mxu1 %v3386_v45  ;;  %v3482_v44 = vld [vmem:[#allocation5 + $0x34c] ss:$16 sps:$4 sm:$0xff]   ;;  %v3477_v45 = vld [vmem:[#allocation5 + $0x340] ss:$16 sps:$4 sm:$0xff]  }
  0xae   :  { %1946 = vmatpush1.bf16.msra.mxu0 %v3388_v46  ;;  %2161 = vmatpush1.bf16.msra.mxu1 %v3389_v47  ;;  %v3480_v46 = vld [vmem:[#allocation5 + $0x348] ss:$16 sps:$4 sm:$0xff]   ;;  %v3485_v47 = vld [vmem:[#allocation5 + $0x364] ss:$16 sps:$4 sm:$0xff]  }
  0xaf   :  { %1947 = vmatprep.subr.bf16.mxu0 %v3390_v49  ;;  %2162 = vmatprep.subr.bf16.mxu1 %v3392_v50  ;;  %v3483_v49 = vld [vmem:[#allocation5 + $0x360] ss:$16 sps:$4 sm:$0xff]   ;;  %v3486_v50 = vld [vmem:[#allocation5 + $0x368] ss:$16 sps:$4 sm:$0xff]  }
  0xb2   :  { %1948 = vmatpush1.bf16.msra.mxu0 %v3394_v51  ;;  %2163 = vmatpush1.bf16.msra.mxu1 %v3395_v52  ;;  %v3491_v51 = vld [vmem:[#allocation5 + $0x384] ss:$16 sps:$4 sm:$0xff]   ;;  %v3494_v52 = vld [vmem:[#allocation5 + $0x38c] ss:$16 sps:$4 sm:$0xff]  }
  0xb3   :  { %1949 = vmatprep.subr.bf16.mxu0 %v3396_v53  ;;  %2164 = vmatprep.subr.bf16.mxu1 %v3398_v54  ;;  %v3489_v53 = vld [vmem:[#allocation5 + $0x380] ss:$16 sps:$4 sm:$0xff]   ;;  %v3492_v54 = vld [vmem:[#allocation5 + $0x388] ss:$16 sps:$4 sm:$0xff]  }
  0xb6   :  { %1950 = vmatpush1.bf16.msra.mxu0 %v3400_v55  ;;  %2165 = vmatpush1.bf16.msra.mxu1 %v3401_v56  ;;  %v3497_v55 = vld [vmem:[#allocation5 + $0x3a4] ss:$16 sps:$4 sm:$0xff]   ;;  %v3500_v56 = vld [vmem:[#allocation5 + $0x3ac] ss:$16 sps:$4 sm:$0xff]  }
  0xb7   :  { %1951 = vmatprep.subr.bf16.mxu0 %v3402_v57  ;;  %2166 = vmatprep.subr.bf16.mxu1 %v3404_v58  ;;  %v3495_v57 = vld [vmem:[#allocation5 + $0x3a0] ss:$16 sps:$4 sm:$0xff]   ;;  %v3498_v58 = vld [vmem:[#allocation5 + $0x3a8] ss:$16 sps:$4 sm:$0xff]  }
  0xba   :  { %1952 = vmatpush1.bf16.msra.mxu0 %v3406_v59  ;;  %2167 = vmatpush1.bf16.msra.mxu1 %v3407_v60  ;;  %v3503_v59 = vld [vmem:[#allocation5 + $0x3c4] ss:$16 sps:$4 sm:$0xff]   ;;  %v3506_v60 = vld [vmem:[#allocation5 + $0x3cc] ss:$16 sps:$4 sm:$0xff]  }
  0xbb   :  { %1953 = vmatprep.subr.bf16.mxu0 %v3408_v61  ;;  %2168 = vmatprep.subr.bf16.mxu1 %v3410_v62  ;;  %v3501_v61 = vld [vmem:[#allocation5 + $0x3c0] ss:$16 sps:$4 sm:$0xff]   ;;  %v3504_v62 = vld [vmem:[#allocation5 + $0x3c8] ss:$16 sps:$4 sm:$0xff]  }
  0xbe   :  { %1954 = vmatpush1.bf16.msra.mxu0 %v3412_v63  ;;  %2169 = vmatpush1.bf16.msra.mxu1 %v3413_v0  ;;  %v3509_v63 = vld [vmem:[#allocation5 + $0x3e4] ss:$16 sps:$4 sm:$0xff]   ;;  %v3512_v0 = vld [vmem:[#allocation5 + $0x3ec] ss:$16 sps:$4 sm:$0xff]  }
  0xbf   :  { %1966 = vmatprep.subr.bf16.mxu0 %v3419_v1  ;;  %2181 = vmatprep.subr.bf16.mxu1 %v3422_v2  ;;  %v3507_v1 = vld [vmem:[#allocation5 + $0x3e0] ss:$16 sps:$4 sm:$0xff]   ;;  %v3510_v2 = vld [vmem:[#allocation5 + $0x3e8] ss:$16 sps:$4 sm:$0xff]  }
  0xc1   :  { %1956 = vmatmul.mubr.bf16.vlgmr.msra.gmra.mrb[0].mxu0 %v3414_v3  ;;  %2171 = vmatmul.mubr.bf16.vlgmr.msra.gmra.mrb[0].mxu1 %v3414_v3  ;;  %v3518_v3 = vld [vmem:[#allocation5 + $0x404] ss:$16 sps:$4 sm:$0xff]  }
  0xc2   :  { %1967 = vmatpush1.bf16.msra.mxu0 %v3417_v4  ;;  %2182 = vmatpush1.bf16.msra.mxu1 %v3420_v5  ;;  %v3521_v4 = vld [vmem:[#allocation5 + $0x40c] ss:$16 sps:$4 sm:$0xff]   ;;  %v3513_v5 = vld [vmem:[#allocation2 + $0x8] ss:$36 sps:$4 sm:$0xff]  }
  0xc3   :  { %1968 = vmatprep.subr.bf16.mxu0 %v3425_v6  ;;  %2183 = vmatprep.subr.bf16.mxu1 %v3428_v7  ;;  %v3516_v6 = vld [vmem:[#allocation5 + $0x400] ss:$16 sps:$4 sm:$0xff]   ;;  %v3519_v7 = vld [vmem:[#allocation5 + $0x408] ss:$16 sps:$4 sm:$0xff]  }
  0xc4   :  { %1998 = vmatprep.mubr.bf16.mxu0 %v3515_v30  ;;  %2213 = vmatprep.mubr.bf16.mxu1 %v3515_v30  ;;  %v3557_v30 = vld [vmem:[#allocation5 + $0x4cc] ss:$16 sps:$4 sm:$0xff]  }
  0xc6   :  { %1969 = vmatpush1.bf16.msra.mxu0 %v3423_v8  ;;  %2184 = vmatpush1.bf16.msra.mxu1 %v3426_v9  ;;  %v3524_v8 = vld [vmem:[#allocation5 + $0x424] ss:$16 sps:$4 sm:$0xff]   ;;  %v3527_v9 = vld [vmem:[#allocation5 + $0x42c] ss:$16 sps:$4 sm:$0xff]  }
  0xc7   :  { %1970 = vmatprep.subr.bf16.mxu0 %v3431_v10  ;;  %2185 = vmatprep.subr.bf16.mxu1 %v3434_v11  ;;  %v3522_v10 = vld [vmem:[#allocation5 + $0x420] ss:$16 sps:$4 sm:$0xff]   ;;  %v3525_v11 = vld [vmem:[#allocation5 + $0x428] ss:$16 sps:$4 sm:$0xff]  }
  0xca   :  { %1971 = vmatpush1.bf16.msra.mxu0 %v3429_v12  ;;  %2186 = vmatpush1.bf16.msra.mxu1 %v3432_v13  ;;  %v3614_v12 = vld [vmem:[#allocation2 + $0x14] ss:$36 sps:$4 sm:$0xff]   ;;  %v3530_v13 = vld [vmem:[#allocation5 + $0x444] ss:$16 sps:$4 sm:$0xff]  }
  0xcb   :  { %1972 = vmatprep.subr.bf16.mxu0 %v3437_v14  ;;  %2187 = vmatprep.subr.bf16.mxu1 %v3440_v15  ;;  %v3533_v14 = vld [vmem:[#allocation5 + $0x44c] ss:$16 sps:$4 sm:$0xff]   ;;  %v3528_v15 = vld [vmem:[#allocation5 + $0x440] ss:$16 sps:$4 sm:$0xff]  }
  0xce   :  { %1973 = vmatpush1.bf16.msra.mxu0 %v3435_v16  ;;  %2188 = vmatpush1.bf16.msra.mxu1 %v3438_v17  ;;  %v3531_v16 = vld [vmem:[#allocation5 + $0x448] ss:$16 sps:$4 sm:$0xff]   ;;  %v3536_v17 = vld [vmem:[#allocation5 + $0x464] ss:$16 sps:$4 sm:$0xff]  }
  0xcf   :  { %1974 = vmatprep.subr.bf16.mxu0 %v3443_v18  ;;  %2189 = vmatprep.subr.bf16.mxu1 %v3446_v19  ;;  %v3539_v18 = vld [vmem:[#allocation5 + $0x46c] ss:$16 sps:$4 sm:$0xff]   ;;  %v3534_v19 = vld [vmem:[#allocation5 + $0x460] ss:$16 sps:$4 sm:$0xff]  }
  0xd2   :  { %1975 = vmatpush1.bf16.msra.mxu0 %v3441_v20  ;;  %2190 = vmatpush1.bf16.msra.mxu1 %v3444_v21  ;;  %v3537_v20 = vld [vmem:[#allocation5 + $0x468] ss:$16 sps:$4 sm:$0xff]   ;;  %v3542_v21 = vld [vmem:[#allocation5 + $0x484] ss:$16 sps:$4 sm:$0xff]  }
  0xd3   :  { %1976 = vmatprep.subr.bf16.mxu0 %v3449_v22  ;;  %2191 = vmatprep.subr.bf16.mxu1 %v3452_v23  ;;  %v3545_v22 = vld [vmem:[#allocation5 + $0x48c] ss:$16 sps:$4 sm:$0xff]   ;;  %v3540_v23 = vld [vmem:[#allocation5 + $0x480] ss:$16 sps:$4 sm:$0xff]  }
  0xd6   :  { %1977 = vmatpush1.bf16.msra.mxu0 %v3447_v24  ;;  %2192 = vmatpush1.bf16.msra.mxu1 %v3450_v25  ;;  %v3543_v24 = vld [vmem:[#allocation5 + $0x488] ss:$16 sps:$4 sm:$0xff]   ;;  %v3548_v25 = vld [vmem:[#allocation5 + $0x4a4] ss:$16 sps:$4 sm:$0xff]  }
  0xd7   :  { %1978 = vmatprep.subr.bf16.mxu0 %v3455_v26  ;;  %2193 = vmatprep.subr.bf16.mxu1 %v3458_v27  ;;  %v3551_v26 = vld [vmem:[#allocation5 + $0x4ac] ss:$16 sps:$4 sm:$0xff]   ;;  %v3546_v27 = vld [vmem:[#allocation5 + $0x4a0] ss:$16 sps:$4 sm:$0xff]  }
  0xda   :  { %1979 = vmatpush1.bf16.msra.mxu0 %v3453_v28  ;;  %2194 = vmatpush1.bf16.msra.mxu1 %v3456_v29  ;;  %v3549_v28 = vld [vmem:[#allocation5 + $0x4a8] ss:$16 sps:$4 sm:$0xff]   ;;  %v3554_v29 = vld [vmem:[#allocation5 + $0x4c4] ss:$16 sps:$4 sm:$0xff]  }
  0xdb   :  { %1980 = vmatprep.subr.bf16.mxu0 %v3461_v31  ;;  %2195 = vmatprep.subr.bf16.mxu1 %v3464_v32  ;;  %v3552_v31 = vld [vmem:[#allocation5 + $0x4c0] ss:$16 sps:$4 sm:$0xff]   ;;  %v3555_v32 = vld [vmem:[#allocation5 + $0x4c8] ss:$16 sps:$4 sm:$0xff]  }
  0xde   :  { %1981 = vmatpush1.bf16.msra.mxu0 %v3459_v33  ;;  %2196 = vmatpush1.bf16.msra.mxu1 %v3462_v34  ;;  %v3560_v33 = vld [vmem:[#allocation5 + $0x4e4] ss:$16 sps:$4 sm:$0xff]   ;;  %v3563_v34 = vld [vmem:[#allocation5 + $0x4ec] ss:$16 sps:$4 sm:$0xff]  }
  0xdf   :  { %1982 = vmatprep.subr.bf16.mxu0 %v3467_v35  ;;  %2197 = vmatprep.subr.bf16.mxu1 %v3470_v36  ;;  %v3558_v35 = vld [vmem:[#allocation5 + $0x4e0] ss:$16 sps:$4 sm:$0xff]   ;;  %v3561_v36 = vld [vmem:[#allocation5 + $0x4e8] ss:$16 sps:$4 sm:$0xff]  }
  0xe2   :  { %1983 = vmatpush1.bf16.msra.mxu0 %v3465_v37  ;;  %2198 = vmatpush1.bf16.msra.mxu1 %v3468_v38  ;;  %v3566_v37 = vld [vmem:[#allocation5 + $0x504] ss:$16 sps:$4 sm:$0xff]   ;;  %v3569_v38 = vld [vmem:[#allocation5 + $0x50c] ss:$16 sps:$4 sm:$0xff]  }
  0xe3   :  { %1984 = vmatprep.subr.bf16.mxu0 %v3473_v39  ;;  %2199 = vmatprep.subr.bf16.mxu1 %v3476_v40  ;;  %v3564_v39 = vld [vmem:[#allocation5 + $0x500] ss:$16 sps:$4 sm:$0xff]   ;;  %v3567_v40 = vld [vmem:[#allocation5 + $0x508] ss:$16 sps:$4 sm:$0xff]  }
  0xe6   :  { %1985 = vmatpush1.bf16.msra.mxu0 %v3471_v41  ;;  %2200 = vmatpush1.bf16.msra.mxu1 %v3474_v42  ;;  %v3572_v41 = vld [vmem:[#allocation5 + $0x524] ss:$16 sps:$4 sm:$0xff]   ;;  %v3575_v42 = vld [vmem:[#allocation5 + $0x52c] ss:$16 sps:$4 sm:$0xff]  }
  0xe7   :  { %1986 = vmatprep.subr.bf16.mxu0 %v3479_v43  ;;  %2201 = vmatprep.subr.bf16.mxu1 %v3482_v44  ;;  %v3570_v43 = vld [vmem:[#allocation5 + $0x520] ss:$16 sps:$4 sm:$0xff]   ;;  %v3573_v44 = vld [vmem:[#allocation5 + $0x528] ss:$16 sps:$4 sm:$0xff]  }
  0xea   :  { %1987 = vmatpush1.bf16.msra.mxu0 %v3477_v45  ;;  %2202 = vmatpush1.bf16.msra.mxu1 %v3480_v46  ;;  %v3578_v45 = vld [vmem:[#allocation5 + $0x544] ss:$16 sps:$4 sm:$0xff]   ;;  %v3581_v46 = vld [vmem:[#allocation5 + $0x54c] ss:$16 sps:$4 sm:$0xff]  }
  0xeb   :  { %1988 = vmatprep.subr.bf16.mxu0 %v3485_v47  ;;  %2203 = vmatprep.subr.bf16.mxu1 %v3488_v48  ;;  %v3576_v47 = vld [vmem:[#allocation5 + $0x540] ss:$16 sps:$4 sm:$0xff]   ;;  %v3579_v48 = vld [vmem:[#allocation5 + $0x548] ss:$16 sps:$4 sm:$0xff]  }
  0xee   :  { %1989 = vmatpush1.bf16.msra.mxu0 %v3483_v49  ;;  %2204 = vmatpush1.bf16.msra.mxu1 %v3486_v50  ;;  %v3584_v49 = vld [vmem:[#allocation5 + $0x564] ss:$16 sps:$4 sm:$0xff]   ;;  %v3587_v50 = vld [vmem:[#allocation5 + $0x56c] ss:$16 sps:$4 sm:$0xff]  }
  0xef   :  { %1990 = vmatprep.subr.bf16.mxu0 %v3491_v51  ;;  %2205 = vmatprep.subr.bf16.mxu1 %v3494_v52  ;;  %v3582_v51 = vld [vmem:[#allocation5 + $0x560] ss:$16 sps:$4 sm:$0xff]   ;;  %v3585_v52 = vld [vmem:[#allocation5 + $0x568] ss:$16 sps:$4 sm:$0xff]  }
  0xf2   :  { %1991 = vmatpush1.bf16.msra.mxu0 %v3489_v53  ;;  %2206 = vmatpush1.bf16.msra.mxu1 %v3492_v54  ;;  %v3590_v53 = vld [vmem:[#allocation5 + $0x584] ss:$16 sps:$4 sm:$0xff]   ;;  %v3593_v54 = vld [vmem:[#allocation5 + $0x58c] ss:$16 sps:$4 sm:$0xff]  }
  0xf3   :  { %1992 = vmatprep.subr.bf16.mxu0 %v3497_v55  ;;  %2207 = vmatprep.subr.bf16.mxu1 %v3500_v56  ;;  %v3588_v55 = vld [vmem:[#allocation5 + $0x580] ss:$16 sps:$4 sm:$0xff]   ;;  %v3591_v56 = vld [vmem:[#allocation5 + $0x588] ss:$16 sps:$4 sm:$0xff]  }
  0xf6   :  { %1993 = vmatpush1.bf16.msra.mxu0 %v3495_v57  ;;  %2208 = vmatpush1.bf16.msra.mxu1 %v3498_v58  ;;  %v3596_v57 = vld [vmem:[#allocation5 + $0x5a4] ss:$16 sps:$4 sm:$0xff]   ;;  %v3599_v58 = vld [vmem:[#allocation5 + $0x5ac] ss:$16 sps:$4 sm:$0xff]  }
  0xf7   :  { %1994 = vmatprep.subr.bf16.mxu0 %v3503_v59  ;;  %2209 = vmatprep.subr.bf16.mxu1 %v3506_v60  ;;  %v3594_v59 = vld [vmem:[#allocation5 + $0x5a0] ss:$16 sps:$4 sm:$0xff]   ;;  %v3597_v60 = vld [vmem:[#allocation5 + $0x5a8] ss:$16 sps:$4 sm:$0xff]  }
  0xfa   :  { %1995 = vmatpush1.bf16.msra.mxu0 %v3501_v61  ;;  %2210 = vmatpush1.bf16.msra.mxu1 %v3504_v62  ;;  %v3602_v61 = vld [vmem:[#allocation5 + $0x5c4] ss:$16 sps:$4 sm:$0xff]   ;;  %v3605_v62 = vld [vmem:[#allocation5 + $0x5cc] ss:$16 sps:$4 sm:$0xff]  }
  0xfb   :  { %1996 = vmatprep.subr.bf16.mxu0 %v3509_v63  ;;  %2211 = vmatprep.subr.bf16.mxu1 %v3512_v0  ;;  %v3600_v63 = vld [vmem:[#allocation5 + $0x5c0] ss:$16 sps:$4 sm:$0xff]   ;;  %v3603_v0 = vld [vmem:[#allocation5 + $0x5c8] ss:$16 sps:$4 sm:$0xff]  }
  0xfe   :  { %1997 = vmatpush1.bf16.msra.mxu0 %v3507_v1  ;;  %2212 = vmatpush1.bf16.msra.mxu1 %v3510_v2  ;;  %v3608_v1 = vld [vmem:[#allocation5 + $0x5e4] ss:$16 sps:$4 sm:$0xff]   ;;  %v3611_v2 = vld [vmem:[#allocation5 + $0x5ec] ss:$16 sps:$4 sm:$0xff]  }
  0xff   :  { %2009 = vmatprep.subr.bf16.mxu0 %v3518_v3  ;;  %2224 = vmatprep.subr.bf16.mxu1 %v3521_v4  ;;  %v3606_v3 = vld [vmem:[#allocation5 + $0x5e0] ss:$16 sps:$4 sm:$0xff]   ;;  %v3609_v4 = vld [vmem:[#allocation5 + $0x5e8] ss:$16 sps:$4 sm:$0xff]  }
 0x101   :  { %1999 = vmatmul.mubr.bf16.vlgmr.msra.gmra.mrb[0].mxu0 %v3513_v5  ;;  %2214 = vmatmul.mubr.bf16.vlgmr.msra.gmra.mrb[0].mxu1 %v3513_v5  ;;  %v3617_v5 = vld [vmem:[#allocation5 + $0x604] ss:$16 sps:$4 sm:$0xff]  }
 0x102   :  { %2010 = vmatpush1.bf16.msra.mxu0 %v3516_v6  ;;  %2225 = vmatpush1.bf16.msra.mxu1 %v3519_v7  ;;  %v3620_v6 = vld [vmem:[#allocation5 + $0x60c] ss:$16 sps:$4 sm:$0xff]  }
 0x103   :  { %2011 = vmatprep.subr.bf16.mxu0 %v3524_v8  ;;  %2226 = vmatprep.subr.bf16.mxu1 %v3527_v9  ;;  %v3612_v7 = vld [vmem:[#allocation2 + $0x10] ss:$36 sps:$4 sm:$0xff]   ;;  %v3615_v8 = vld [vmem:[#allocation5 + $0x600] ss:$16 sps:$4 sm:$0xff]  }
 0x104   :  { %2041 = vmatprep.mubr.bf16.mxu0 %v3614_v12  ;;  %2256 = vmatprep.mubr.bf16.mxu1 %v3614_v12  ;;  %v3618_v9 = vld [vmem:[#allocation5 + $0x608] ss:$16 sps:$4 sm:$0xff]  }
 0x105   :  { %v3713_v12 = vld [vmem:[#allocation2 + $0x1c] ss:$36 sps:$4 sm:$0xff]  }
 0x106   :  { %2012 = vmatpush1.bf16.msra.mxu0 %v3522_v10  ;;  %2227 = vmatpush1.bf16.msra.mxu1 %v3525_v11  ;;  %v3623_v10 = vld [vmem:[#allocation5 + $0x624] ss:$16 sps:$4 sm:$0xff]   ;;  %v3626_v11 = vld [vmem:[#allocation5 + $0x62c] ss:$16 sps:$4 sm:$0xff]  }
 0x107   :  { %2013 = vmatprep.subr.bf16.mxu0 %v3530_v13  ;;  %2228 = vmatprep.subr.bf16.mxu1 %v3533_v14  ;;  %v3621_v13 = vld [vmem:[#allocation5 + $0x620] ss:$16 sps:$4 sm:$0xff]   ;;  %v3624_v14 = vld [vmem:[#allocation5 + $0x628] ss:$16 sps:$4 sm:$0xff]  }
 0x10a   :  { %2014 = vmatpush1.bf16.msra.mxu0 %v3528_v15  ;;  %2229 = vmatpush1.bf16.msra.mxu1 %v3531_v16  ;;  %v3629_v15 = vld [vmem:[#allocation5 + $0x644] ss:$16 sps:$4 sm:$0xff]   ;;  %v3632_v16 = vld [vmem:[#allocation5 + $0x64c] ss:$16 sps:$4 sm:$0xff]  }
 0x10b   :  { %2015 = vmatprep.subr.bf16.mxu0 %v3536_v17  ;;  %2230 = vmatprep.subr.bf16.mxu1 %v3539_v18  ;;  %v3627_v17 = vld [vmem:[#allocation5 + $0x640] ss:$16 sps:$4 sm:$0xff]   ;;  %v3630_v18 = vld [vmem:[#allocation5 + $0x648] ss:$16 sps:$4 sm:$0xff]  }
 0x10e   :  { %2016 = vmatpush1.bf16.msra.mxu0 %v3534_v19  ;;  %2231 = vmatpush1.bf16.msra.mxu1 %v3537_v20  ;;  %v3635_v19 = vld [vmem:[#allocation5 + $0x664] ss:$16 sps:$4 sm:$0xff]   ;;  %v3638_v20 = vld [vmem:[#allocation5 + $0x66c] ss:$16 sps:$4 sm:$0xff]  }
 0x10f   :  { %2017 = vmatprep.subr.bf16.mxu0 %v3542_v21  ;;  %2232 = vmatprep.subr.bf16.mxu1 %v3545_v22  ;;  %v3633_v21 = vld [vmem:[#allocation5 + $0x660] ss:$16 sps:$4 sm:$0xff]   ;;  %v3636_v22 = vld [vmem:[#allocation5 + $0x668] ss:$16 sps:$4 sm:$0xff]  }
 0x112   :  { %2018 = vmatpush1.bf16.msra.mxu0 %v3540_v23  ;;  %2233 = vmatpush1.bf16.msra.mxu1 %v3543_v24  ;;  %v3641_v23 = vld [vmem:[#allocation5 + $0x684] ss:$16 sps:$4 sm:$0xff]   ;;  %v3644_v24 = vld [vmem:[#allocation5 + $0x68c] ss:$16 sps:$4 sm:$0xff]  }
 0x113   :  { %2019 = vmatprep.subr.bf16.mxu0 %v3548_v25  ;;  %2234 = vmatprep.subr.bf16.mxu1 %v3551_v26  ;;  %v3639_v25 = vld [vmem:[#allocation5 + $0x680] ss:$16 sps:$4 sm:$0xff]   ;;  %v3642_v26 = vld [vmem:[#allocation5 + $0x688] ss:$16 sps:$4 sm:$0xff]  }
 0x116   :  { %2020 = vmatpush1.bf16.msra.mxu0 %v3546_v27  ;;  %2235 = vmatpush1.bf16.msra.mxu1 %v3549_v28  ;;  %v3647_v27 = vld [vmem:[#allocation5 + $0x6a4] ss:$16 sps:$4 sm:$0xff]   ;;  %v3650_v28 = vld [vmem:[#allocation5 + $0x6ac] ss:$16 sps:$4 sm:$0xff]  }
 0x117   :  { %2021 = vmatprep.subr.bf16.mxu0 %v3554_v29  ;;  %2236 = vmatprep.subr.bf16.mxu1 %v3557_v30  ;;  %v3645_v29 = vld [vmem:[#allocation5 + $0x6a0] ss:$16 sps:$4 sm:$0xff]   ;;  %v3648_v30 = vld [vmem:[#allocation5 + $0x6a8] ss:$16 sps:$4 sm:$0xff]  }
 0x11a   :  { %2022 = vmatpush1.bf16.msra.mxu0 %v3552_v31  ;;  %2237 = vmatpush1.bf16.msra.mxu1 %v3555_v32  ;;  %v3653_v31 = vld [vmem:[#allocation5 + $0x6c4] ss:$16 sps:$4 sm:$0xff]   ;;  %v3656_v32 = vld [vmem:[#allocation5 + $0x6cc] ss:$16 sps:$4 sm:$0xff]  }
 0x11b   :  { %2023 = vmatprep.subr.bf16.mxu0 %v3560_v33  ;;  %2238 = vmatprep.subr.bf16.mxu1 %v3563_v34  ;;  %v3651_v33 = vld [vmem:[#allocation5 + $0x6c0] ss:$16 sps:$4 sm:$0xff]   ;;  %v3654_v34 = vld [vmem:[#allocation5 + $0x6c8] ss:$16 sps:$4 sm:$0xff]  }
 0x11e   :  { %2024 = vmatpush1.bf16.msra.mxu0 %v3558_v35  ;;  %2239 = vmatpush1.bf16.msra.mxu1 %v3561_v36  ;;  %v3659_v35 = vld [vmem:[#allocation5 + $0x6e4] ss:$16 sps:$4 sm:$0xff]   ;;  %v3662_v36 = vld [vmem:[#allocation5 + $0x6ec] ss:$16 sps:$4 sm:$0xff]  }
 0x11f   :  { %2025 = vmatprep.subr.bf16.mxu0 %v3566_v37  ;;  %2240 = vmatprep.subr.bf16.mxu1 %v3569_v38  ;;  %v3657_v37 = vld [vmem:[#allocation5 + $0x6e0] ss:$16 sps:$4 sm:$0xff]   ;;  %v3660_v38 = vld [vmem:[#allocation5 + $0x6e8] ss:$16 sps:$4 sm:$0xff]  }
 0x122   :  { %2026 = vmatpush1.bf16.msra.mxu0 %v3564_v39  ;;  %2241 = vmatpush1.bf16.msra.mxu1 %v3567_v40  ;;  %v3665_v39 = vld [vmem:[#allocation5 + $0x704] ss:$16 sps:$4 sm:$0xff]   ;;  %v3668_v40 = vld [vmem:[#allocation5 + $0x70c] ss:$16 sps:$4 sm:$0xff]  }
 0x123   :  { %2027 = vmatprep.subr.bf16.mxu0 %v3572_v41  ;;  %2242 = vmatprep.subr.bf16.mxu1 %v3575_v42  ;;  %v3663_v41 = vld [vmem:[#allocation5 + $0x700] ss:$16 sps:$4 sm:$0xff]   ;;  %v3666_v42 = vld [vmem:[#allocation5 + $0x708] ss:$16 sps:$4 sm:$0xff]  }
 0x126   :  { %2028 = vmatpush1.bf16.msra.mxu0 %v3570_v43  ;;  %2243 = vmatpush1.bf16.msra.mxu1 %v3573_v44  ;;  %v3671_v43 = vld [vmem:[#allocation5 + $0x724] ss:$16 sps:$4 sm:$0xff]   ;;  %v3674_v44 = vld [vmem:[#allocation5 + $0x72c] ss:$16 sps:$4 sm:$0xff]  }
 0x127   :  { %2029 = vmatprep.subr.bf16.mxu0 %v3578_v45  ;;  %2244 = vmatprep.subr.bf16.mxu1 %v3581_v46  ;;  %v3669_v45 = vld [vmem:[#allocation5 + $0x720] ss:$16 sps:$4 sm:$0xff]   ;;  %v3672_v46 = vld [vmem:[#allocation5 + $0x728] ss:$16 sps:$4 sm:$0xff]  }
 0x12a   :  { %2030 = vmatpush1.bf16.msra.mxu0 %v3576_v47  ;;  %2245 = vmatpush1.bf16.msra.mxu1 %v3579_v48  ;;  %v3677_v47 = vld [vmem:[#allocation5 + $0x744] ss:$16 sps:$4 sm:$0xff]   ;;  %v3680_v48 = vld [vmem:[#allocation5 + $0x74c] ss:$16 sps:$4 sm:$0xff]  }
 0x12b   :  { %2031 = vmatprep.subr.bf16.mxu0 %v3584_v49  ;;  %2246 = vmatprep.subr.bf16.mxu1 %v3587_v50  ;;  %v3675_v49 = vld [vmem:[#allocation5 + $0x740] ss:$16 sps:$4 sm:$0xff]   ;;  %v3678_v50 = vld [vmem:[#allocation5 + $0x748] ss:$16 sps:$4 sm:$0xff]  }
 0x12e   :  { %2032 = vmatpush1.bf16.msra.mxu0 %v3582_v51  ;;  %2247 = vmatpush1.bf16.msra.mxu1 %v3585_v52  ;;  %v3683_v51 = vld [vmem:[#allocation5 + $0x764] ss:$16 sps:$4 sm:$0xff]   ;;  %v3686_v52 = vld [vmem:[#allocation5 + $0x76c] ss:$16 sps:$4 sm:$0xff]  }
 0x12f   :  { %2033 = vmatprep.subr.bf16.mxu0 %v3590_v53  ;;  %2248 = vmatprep.subr.bf16.mxu1 %v3593_v54  ;;  %v3681_v53 = vld [vmem:[#allocation5 + $0x760] ss:$16 sps:$4 sm:$0xff]   ;;  %v3684_v54 = vld [vmem:[#allocation5 + $0x768] ss:$16 sps:$4 sm:$0xff]  }
 0x132   :  { %2034 = vmatpush1.bf16.msra.mxu0 %v3588_v55  ;;  %2249 = vmatpush1.bf16.msra.mxu1 %v3591_v56  ;;  %v3689_v55 = vld [vmem:[#allocation5 + $0x784] ss:$16 sps:$4 sm:$0xff]   ;;  %v3692_v56 = vld [vmem:[#allocation5 + $0x78c] ss:$16 sps:$4 sm:$0xff]  }
 0x133   :  { %2035 = vmatprep.subr.bf16.mxu0 %v3596_v57  ;;  %2250 = vmatprep.subr.bf16.mxu1 %v3599_v58  ;;  %v3687_v57 = vld [vmem:[#allocation5 + $0x780] ss:$16 sps:$4 sm:$0xff]   ;;  %v3690_v58 = vld [vmem:[#allocation5 + $0x788] ss:$16 sps:$4 sm:$0xff]  }
 0x136   :  { %2036 = vmatpush1.bf16.msra.mxu0 %v3594_v59  ;;  %2251 = vmatpush1.bf16.msra.mxu1 %v3597_v60  ;;  %v3695_v59 = vld [vmem:[#allocation5 + $0x7a4] ss:$16 sps:$4 sm:$0xff]   ;;  %v3698_v60 = vld [vmem:[#allocation5 + $0x7ac] ss:$16 sps:$4 sm:$0xff]  }
 0x137   :  { %2037 = vmatprep.subr.bf16.mxu0 %v3602_v61  ;;  %2252 = vmatprep.subr.bf16.mxu1 %v3605_v62  ;;  %v3693_v61 = vld [vmem:[#allocation5 + $0x7a0] ss:$16 sps:$4 sm:$0xff]   ;;  %v3696_v62 = vld [vmem:[#allocation5 + $0x7a8] ss:$16 sps:$4 sm:$0xff]  }
 0x13a   :  { %2038 = vmatpush1.bf16.msra.mxu0 %v3600_v63  ;;  %2253 = vmatpush1.bf16.msra.mxu1 %v3603_v0  ;;  %v3701_v63 = vld [vmem:[#allocation5 + $0x7c4] ss:$16 sps:$4 sm:$0xff]   ;;  %v3704_v0 = vld [vmem:[#allocation5 + $0x7cc] ss:$16 sps:$4 sm:$0xff]  }
 0x13b   :  { %2039 = vmatprep.subr.bf16.mxu0 %v3608_v1  ;;  %2254 = vmatprep.subr.bf16.mxu1 %v3611_v2  ;;  %v3699_v1 = vld [vmem:[#allocation5 + $0x7c0] ss:$16 sps:$4 sm:$0xff]   ;;  %v3702_v2 = vld [vmem:[#allocation5 + $0x7c8] ss:$16 sps:$4 sm:$0xff]  }
 0x13e   :  { %2040 = vmatpush1.bf16.msra.mxu0 %v3606_v3  ;;  %2255 = vmatpush1.bf16.msra.mxu1 %v3609_v4  ;;  %v3707_v3 = vld [vmem:[#allocation5 + $0x7e4] ss:$16 sps:$4 sm:$0xff]   ;;  %v3710_v4 = vld [vmem:[#allocation5 + $0x7ec] ss:$16 sps:$4 sm:$0xff]  }
 0x13f   :  { %2052 = vmatprep.subr.bf16.mxu0 %v3617_v5  ;;  %2267 = vmatprep.subr.bf16.mxu1 %v3620_v6  ;;  %v3705_v5 = vld [vmem:[#allocation5 + $0x7e0] ss:$16 sps:$4 sm:$0xff]   ;;  %v3708_v6 = vld [vmem:[#allocation5 + $0x7e8] ss:$16 sps:$4 sm:$0xff]  }
 0x141   :  { %2042 = vmatmul.mubr.bf16.vlgmr.msra.gmra.mrb[0].mxu0 %v3612_v7  ;;  %2257 = vmatmul.mubr.bf16.vlgmr.msra.gmra.mrb[0].mxu1 %v3612_v7  ;;  %v3716_v7 = vld [vmem:[#allocation5 + $0x804] ss:$16 sps:$4 sm:$0xff]  }
 0x142   :  { %2053 = vmatpush1.bf16.msra.mxu0 %v3615_v8  ;;  %2268 = vmatpush1.bf16.msra.mxu1 %v3618_v9  ;;  %v3719_v8 = vld [vmem:[#allocation5 + $0x80c] ss:$16 sps:$4 sm:$0xff]   ;;  %v3711_v9 = vld [vmem:[#allocation2 + $0x18] ss:$36 sps:$4 sm:$0xff]  }
 0x143   :  { %2054 = vmatprep.subr.bf16.mxu0 %v3623_v10  ;;  %2269 = vmatprep.subr.bf16.mxu1 %v3626_v11  ;;  %v3714_v10 = vld [vmem:[#allocation5 + $0x800] ss:$16 sps:$4 sm:$0xff]   ;;  %v3717_v11 = vld [vmem:[#allocation5 + $0x808] ss:$16 sps:$4 sm:$0xff]  }
 0x144   :  { %2084 = vmatprep.mubr.bf16.mxu0 %v3713_v12  ;;  %2299 = vmatprep.mubr.bf16.mxu1 %v3713_v12  ;;  %v3722_v12 = vld [vmem:[#allocation5 + $0x824] ss:$16 sps:$4 sm:$0xff]  }
 0x146   :  { %2055 = vmatpush1.bf16.msra.mxu0 %v3621_v13  ;;  %2270 = vmatpush1.bf16.msra.mxu1 %v3624_v14  ;;  %v3725_v13 = vld [vmem:[#allocation5 + $0x82c] ss:$16 sps:$4 sm:$0xff]   ;;  %v3720_v14 = vld [vmem:[#allocation5 + $0x820] ss:$16 sps:$4 sm:$0xff]  }
 0x147   :  { %2056 = vmatprep.subr.bf16.mxu0 %v3629_v15  ;;  %2271 = vmatprep.subr.bf16.mxu1 %v3632_v16  ;;  %v3723_v15 = vld [vmem:[#allocation5 + $0x828] ss:$16 sps:$4 sm:$0xff]   ;;  %v3728_v16 = vld [vmem:[#allocation5 + $0x844] ss:$16 sps:$4 sm:$0xff]  }
 0x14a   :  { %2057 = vmatpush1.bf16.msra.mxu0 %v3627_v17  ;;  %2272 = vmatpush1.bf16.msra.mxu1 %v3630_v18  ;;  %v3731_v17 = vld [vmem:[#allocation5 + $0x84c] ss:$16 sps:$4 sm:$0xff]   ;;  %v4002_v18 = vmov 0  }
 0x14b   :  { %2058 = vmatprep.subr.bf16.mxu0 %v3635_v19  ;;  %2273 = vmatprep.subr.bf16.mxu1 %v3638_v20  ;;  %v3726_v19 = vld [vmem:[#allocation5 + $0x840] ss:$16 sps:$4 sm:$0xff]   ;;  %v3729_v20 = vld [vmem:[#allocation5 + $0x848] ss:$16 sps:$4 sm:$0xff]  }
 0x14e   :  { %2059 = vmatpush1.bf16.msra.mxu0 %v3633_v21  ;;  %2274 = vmatpush1.bf16.msra.mxu1 %v3636_v22  ;;  %v3734_v21 = vld [vmem:[#allocation5 + $0x864] ss:$16 sps:$4 sm:$0xff]   ;;  %v3737_v22 = vld [vmem:[#allocation5 + $0x86c] ss:$16 sps:$4 sm:$0xff]  }
 0x14f   :  { %2060 = vmatprep.subr.bf16.mxu0 %v3641_v23  ;;  %2275 = vmatprep.subr.bf16.mxu1 %v3644_v24  ;;  %v3732_v23 = vld [vmem:[#allocation5 + $0x860] ss:$16 sps:$4 sm:$0xff]   ;;  %v3735_v24 = vld [vmem:[#allocation5 + $0x868] ss:$16 sps:$4 sm:$0xff]  }
 0x152   :  { %2061 = vmatpush1.bf16.msra.mxu0 %v3639_v25  ;;  %2276 = vmatpush1.bf16.msra.mxu1 %v3642_v26  ;;  %v3740_v25 = vld [vmem:[#allocation5 + $0x884] ss:$16 sps:$4 sm:$0xff]   ;;  %v3743_v26 = vld [vmem:[#allocation5 + $0x88c] ss:$16 sps:$4 sm:$0xff]  }
 0x153   :  { %2062 = vmatprep.subr.bf16.mxu0 %v3647_v27  ;;  %2277 = vmatprep.subr.bf16.mxu1 %v3650_v28  ;;  %v3738_v27 = vld [vmem:[#allocation5 + $0x880] ss:$16 sps:$4 sm:$0xff]   ;;  %v3741_v28 = vld [vmem:[#allocation5 + $0x888] ss:$16 sps:$4 sm:$0xff]  }
 0x156   :  { %2063 = vmatpush1.bf16.msra.mxu0 %v3645_v29  ;;  %2278 = vmatpush1.bf16.msra.mxu1 %v3648_v30  ;;  %v3746_v29 = vld [vmem:[#allocation5 + $0x8a4] ss:$16 sps:$4 sm:$0xff]   ;;  %v3749_v30 = vld [vmem:[#allocation5 + $0x8ac] ss:$16 sps:$4 sm:$0xff]  }
 0x157   :  { %2064 = vmatprep.subr.bf16.mxu0 %v3653_v31  ;;  %2279 = vmatprep.subr.bf16.mxu1 %v3656_v32  ;;  %v3744_v31 = vld [vmem:[#allocation5 + $0x8a0] ss:$16 sps:$4 sm:$0xff]   ;;  %v3747_v32 = vld [vmem:[#allocation5 + $0x8a8] ss:$16 sps:$4 sm:$0xff]  }
 0x15a   :  { %2065 = vmatpush1.bf16.msra.mxu0 %v3651_v33  ;;  %2280 = vmatpush1.bf16.msra.mxu1 %v3654_v34  ;;  %v3752_v33 = vld [vmem:[#allocation5 + $0x8c4] ss:$16 sps:$4 sm:$0xff]   ;;  %v3755_v34 = vld [vmem:[#allocation5 + $0x8cc] ss:$16 sps:$4 sm:$0xff]  }
 0x15b   :  { %2066 = vmatprep.subr.bf16.mxu0 %v3659_v35  ;;  %2281 = vmatprep.subr.bf16.mxu1 %v3662_v36  ;;  %v3750_v35 = vld [vmem:[#allocation5 + $0x8c0] ss:$16 sps:$4 sm:$0xff]   ;;  %v3753_v36 = vld [vmem:[#allocation5 + $0x8c8] ss:$16 sps:$4 sm:$0xff]  }
 0x15e   :  { %2067 = vmatpush1.bf16.msra.mxu0 %v3657_v37  ;;  %2282 = vmatpush1.bf16.msra.mxu1 %v3660_v38  ;;  %v3758_v37 = vld [vmem:[#allocation5 + $0x8e4] ss:$16 sps:$4 sm:$0xff]   ;;  %v3761_v38 = vld [vmem:[#allocation5 + $0x8ec] ss:$16 sps:$4 sm:$0xff]  }
 0x15f   :  { %2068 = vmatprep.subr.bf16.mxu0 %v3665_v39  ;;  %2283 = vmatprep.subr.bf16.mxu1 %v3668_v40  ;;  %v3756_v39 = vld [vmem:[#allocation5 + $0x8e0] ss:$16 sps:$4 sm:$0xff]   ;;  %v3759_v40 = vld [vmem:[#allocation5 + $0x8e8] ss:$16 sps:$4 sm:$0xff]  }
 0x162   :  { %2069 = vmatpush1.bf16.msra.mxu0 %v3663_v41  ;;  %2284 = vmatpush1.bf16.msra.mxu1 %v3666_v42  ;;  %v3763_v41 = vld [vmem:[#allocation8 + $0x40] sm:$0xff]  }
 0x163   :  { %2070 = vmatprep.subr.bf16.mxu0 %v3671_v43  ;;  %2285 = vmatprep.subr.bf16.mxu1 %v3674_v44  ;;  %v3764_v42 = vld [vmem:[#allocation8 + $0xc0] sm:$0xff]   ;;  %v3762_v43 = vld [vmem:[#allocation2 + $0x20] ss:$36 sps:$4 sm:$0xff]  }
 0x164   :  { %v3765_v44 = vld [vmem:[#allocation8] sm:$0xff]  }
 0x166   :  { %2071 = vmatpush1.bf16.msra.mxu0 %v3669_v45  ;;  %2286 = vmatpush1.bf16.msra.mxu1 %v3672_v46  ;;  %v3766_v45 = vld [vmem:[#allocation8 + $0x80] sm:$0xff]   ;;  %v3767_v46 = vld [vmem:[#allocation8 + $0x48] sm:$0xff]  }
 0x167   :  { %2072 = vmatprep.subr.bf16.mxu0 %v3677_v47  ;;  %2287 = vmatprep.subr.bf16.mxu1 %v3680_v48  ;;  %v3768_v47 = vld [vmem:[#allocation8 + $0xc8] sm:$0xff]  }
 0x168   :  { %v3769_v48 = vld [vmem:[#allocation8 + $0x8] sm:$0xff]  }
 0x16a   :  { %2073 = vmatpush1.bf16.msra.mxu0 %v3675_v49  ;;  %2288 = vmatpush1.bf16.msra.mxu1 %v3678_v50  ;;  %v3770_v49 = vld [vmem:[#allocation8 + $0x88] sm:$0xff]   ;;  %v3771_v50 = vld [vmem:[#allocation8 + $0x50] sm:$0xff]  }
 0x16b   :  { %2074 = vmatprep.subr.bf16.mxu0 %v3683_v51  ;;  %2289 = vmatprep.subr.bf16.mxu1 %v3686_v52  ;;  %v3772_v51 = vld [vmem:[#allocation8 + $0xd0] sm:$0xff]  }
 0x16c   :  { %v3773_v52 = vld [vmem:[#allocation8 + $0x10] sm:$0xff]  }
 0x16e   :  { %2075 = vmatpush1.bf16.msra.mxu0 %v3681_v53  ;;  %2290 = vmatpush1.bf16.msra.mxu1 %v3684_v54  ;;  %v3774_v53 = vld [vmem:[#allocation8 + $0x90] sm:$0xff]   ;;  %v3775_v54 = vld [vmem:[#allocation8 + $0x58] sm:$0xff]  }
 0x16f   :  { %2076 = vmatprep.subr.bf16.mxu0 %v3689_v55  ;;  %2291 = vmatprep.subr.bf16.mxu1 %v3692_v56  ;;  %v3776_v55 = vld [vmem:[#allocation8 + $0xd8] sm:$0xff]  }
 0x170   :  { %v3777_v56 = vld [vmem:[#allocation8 + $0x18] sm:$0xff]  }
 0x172   :  { %2077 = vmatpush1.bf16.msra.mxu0 %v3687_v57  ;;  %2292 = vmatpush1.bf16.msra.mxu1 %v3690_v58  ;;  %v3778_v57 = vld [vmem:[#allocation8 + $0x98] sm:$0xff]   ;;  %v3779_v58 = vld [vmem:[#allocation8 + $0x60] sm:$0xff]  }
 0x173   :  { %2078 = vmatprep.subr.bf16.mxu0 %v3695_v59  ;;  %2293 = vmatprep.subr.bf16.mxu1 %v3698_v60  ;;  %v3780_v59 = vld [vmem:[#allocation8 + $0xe0] sm:$0xff]  }
 0x174   :  { %v3781_v60 = vld [vmem:[#allocation8 + $0x20] sm:$0xff]  }
 0x176   :  { %2079 = vmatpush1.bf16.msra.mxu0 %v3693_v61  ;;  %2294 = vmatpush1.bf16.msra.mxu1 %v3696_v62  ;;  %v3782_v61 = vld [vmem:[#allocation8 + $0xa0] sm:$0xff]   ;;  %v3783_v62 = vld [vmem:[#allocation8 + $0x68] sm:$0xff]  }
 0x177   :  { %2080 = vmatprep.subr.bf16.mxu0 %v3701_v63  ;;  %2295 = vmatprep.subr.bf16.mxu1 %v3704_v0  ;;  %v3784_v63 = vld [vmem:[#allocation8 + $0xe8] sm:$0xff]  }
 0x178   :  { %v3785_v0 = vld [vmem:[#allocation8 + $0x28] sm:$0xff]  }
 0x17a   :  { %2081 = vmatpush1.bf16.msra.mxu0 %v3699_v1  ;;  %2296 = vmatpush1.bf16.msra.mxu1 %v3702_v2  ;;  %v3786_v1 = vld [vmem:[#allocation8 + $0xa8] sm:$0xff]   ;;  %v3787_v2 = vld [vmem:[#allocation8 + $0x70] sm:$0xff]  }
 0x17b   :  { %2082 = vmatprep.subr.bf16.mxu0 %v3707_v3  ;;  %2297 = vmatprep.subr.bf16.mxu1 %v3710_v4  ;;  %v3788_v3 = vld [vmem:[#allocation8 + $0xf0] sm:$0xff]  }
 0x17c   :  { %v3789_v4 = vld [vmem:[#allocation8 + $0x30] sm:$0xff]  }
 0x17e   :  { %2083 = vmatpush1.bf16.msra.mxu0 %v3705_v5  ;;  %2298 = vmatpush1.bf16.msra.mxu1 %v3708_v6  ;;  %v3790_v5 = vld [vmem:[#allocation8 + $0xb0] sm:$0xff]   ;;  %v3791_v6 = vld [vmem:[#allocation8 + $0x78] sm:$0xff]  }
 0x17f   :  { %2095 = vmatprep.subr.bf16.mxu0 %v3716_v7  ;;  %2310 = vmatprep.subr.bf16.mxu1 %v3719_v8  ;;  %v3792_v7 = vld [vmem:[#allocation8 + $0xf8] sm:$0xff]  }
 0x180   :  { %v3793_v8 = vld [vmem:[#allocation8 + $0x38] sm:$0xff]  }
 0x181   :  { %2085 = vmatmul.mubr.bf16.vlgmr.msra.gmra.mrb[0].mxu0 %v3711_v9  ;;  %2300 = vmatmul.mubr.bf16.vlgmr.msra.gmra.mrb[0].mxu1 %v3711_v9  ;;  %v3794_v9 = vld [vmem:[#allocation8 + $0xb8] sm:$0xff]  }
 0x182   :  { %2096 = vmatpush1.bf16.msra.mxu0 %v3714_v10  ;;  %2311 = vmatpush1.bf16.msra.mxu1 %v3717_v11  ;;  %v4003_v10 = vmov 0.0   ;;  %v417_v11 = vlaneseq }
 0x183   :  { %2097 = vmatprep.subr.bf16.mxu0 %v3722_v12  ;;  %2312 = vmatprep.subr.bf16.mxu1 %v3725_v13 }
 0x184   :  { %2127 = vmatprep.mubr.bf16.mxu0 %v4002_v18  ;;  %2342 = vmatprep.mubr.bf16.mxu1 %v4002_v18  ;;  %v418_v12 = vshrl.u32 %v417_v11, 7 }
 0x186   :  { %2098 = vmatpush1.bf16.msra.mxu0 %v3720_v14  ;;  %2313 = vmatpush1.bf16.msra.mxu1 %v3723_v15  ;;  %v419_v13 = vsub.s32 0, %v418_v12  ;;  %v427_v14 = vsub.s32 2, %v418_v12  ;;  %v415_v15 = vld [vmem:[#allocation7] sm:$0xf] }
 0x187   :  { %2099 = vmatprep.subr.bf16.mxu0 %v3728_v16  ;;  %2314 = vmatprep.subr.bf16.mxu1 %v3731_v17  ;;  %v423_v16 = vsub.s32 1, %v418_v12  ;;  %v431_v17 = vsub.s32 3, %v418_v12 }
 0x188   :  { %v420_v18 = vrot.slane %v415_v15, %v419_v13 }
 0x18a   :  { %2100 = vmatpush1.bf16.msra.mxu0 %v3726_v19  ;;  %2315 = vmatpush1.bf16.msra.mxu1 %v3729_v20  ;;  %v428_v19 = vrot.slane %v415_v15, %v427_v14  ;;  %v424_v20 = vrot.slane %v415_v15, %v423_v16  ;;  %v3177_v14 = vld [vmem:[#allocation13] ss:$0 sm:$0xff] }
 0x18b   :  { %2101 = vmatprep.subr.bf16.mxu0 %v3734_v21  ;;  %2316 = vmatprep.subr.bf16.mxu1 %v3737_v22  ;;  %v432_v21 = vrot.slane %v415_v15, %v431_v17 }
 0x18e   :  { %2102 = vmatpush1.bf16.msra.mxu0 %v3732_v23  ;;  %2317 = vmatpush1.bf16.msra.mxu1 %v3735_v24 }
 0x18f   :  { %2103 = vmatprep.subr.bf16.mxu0 %v3740_v25  ;;  %2318 = vmatprep.subr.bf16.mxu1 %v3743_v26 }
 0x192   :  { %2104 = vmatpush1.bf16.msra.mxu0 %v3738_v27  ;;  %2319 = vmatpush1.bf16.msra.mxu1 %v3741_v28 }
 0x193   :  { %2105 = vmatprep.subr.bf16.mxu0 %v3746_v29  ;;  %2320 = vmatprep.subr.bf16.mxu1 %v3749_v30 }
 0x196   :  { %2106 = vmatpush1.bf16.msra.mxu0 %v3744_v31  ;;  %2321 = vmatpush1.bf16.msra.mxu1 %v3747_v32 }
 0x197   :  { %2107 = vmatprep.subr.bf16.mxu0 %v3752_v33  ;;  %2322 = vmatprep.subr.bf16.mxu1 %v3755_v34 }
 0x19a   :  { %2108 = vmatpush1.bf16.msra.mxu0 %v3750_v35  ;;  %2323 = vmatpush1.bf16.msra.mxu1 %v3753_v36 }
 0x19b   :  { %2109 = vmatprep.subr.bf16.mxu0 %v3758_v37  ;;  %2324 = vmatprep.subr.bf16.mxu1 %v3761_v38 }
 0x19e   :  { %2110 = vmatpush1.bf16.msra.mxu0 %v3756_v39  ;;  %2325 = vmatpush1.bf16.msra.mxu1 %v3759_v40 }
 0x19f   :  { %3186 = vmatprep.subr.bf16.mxu0 %v3763_v41  ;;  %3208 = vmatprep.subr.bf16.mxu1 %v3764_v42 }
 0x1a1   :  { %2128 = vmatmul.mubr.bf16.vlgmr.msra.gmra.mrb[0].mxu0 %v3762_v43  ;;  %2343 = vmatmul.mubr.bf16.vlgmr.msra.gmra.mrb[0].mxu1 %v3762_v43 }
 0x1a2   :  { %3187 = vmatpush3.bf16.msra.mxu0 %v3765_v44  ;;  %3209 = vmatpush3.bf16.msra.mxu1 %v3766_v45 }
 0x1a3   :  { %3188 = vmatprep.subr.bf16.mxu0 %v3767_v46  ;;  %3210 = vmatprep.subr.bf16.mxu1 %v3768_v47 }
 0x1a6   :  { %3189 = vmatpush3.bf16.msra.mxu0 %v3769_v48  ;;  %3211 = vmatpush3.bf16.msra.mxu1 %v3770_v49 }
 0x1a7   :  { %3190 = vmatprep.subr.bf16.mxu0 %v3771_v50  ;;  %3212 = vmatprep.subr.bf16.mxu1 %v3772_v51  ;;  %v3795_v50 = vld [vmem:[#allocation11] sm:$0xff]   ;;  %v3796_v51 = vld [vmem:[#allocation11 + $0x8] sm:$0xff]  }
 0x1aa   :  { %3191 = vmatpush3.bf16.msra.mxu0 %v3773_v52  ;;  %3213 = vmatpush3.bf16.msra.mxu1 %v3774_v53  ;;  %v3797_v52 = vld [vmem:[#allocation11 + $0x10] sm:$0xff]   ;;  %v3798_v53 = vld [vmem:[#allocation11 + $0x18] sm:$0xff]  }
 0x1ab   :  { %3192 = vmatprep.subr.bf16.mxu0 %v3775_v54  ;;  %3214 = vmatprep.subr.bf16.mxu1 %v3776_v55  ;;  %v3799_v54 = vld [vmem:[#allocation11 + $0x20] sm:$0xff]   ;;  %v3800_v55 = vld [vmem:[#allocation11 + $0x28] sm:$0xff]  }
 0x1ae   :  { %3193 = vmatpush3.bf16.msra.mxu0 %v3777_v56  ;;  %3215 = vmatpush3.bf16.msra.mxu1 %v3778_v57  ;;  %v3801_v56 = vld [vmem:[#allocation11 + $0x30] sm:$0xff]   ;;  %v3802_v57 = vld [vmem:[#allocation11 + $0x38] sm:$0xff]  }
 0x1af   :  { %3194 = vmatprep.subr.bf16.mxu0 %v3779_v58  ;;  %3216 = vmatprep.subr.bf16.mxu1 %v3780_v59 }
 0x1b2   :  { %3195 = vmatpush3.bf16.msra.mxu0 %v3781_v60  ;;  %3217 = vmatpush3.bf16.msra.mxu1 %v3782_v61  ;;  %v3144_v60 = vld [vmem:[#allocation10] ss:$0 sm:$0xff] }
 0x1b3   :  { %3196 = vmatprep.subr.bf16.mxu0 %v3783_v62  ;;  %3218 = vmatprep.subr.bf16.mxu1 %v3784_v63 }
 0x1b6   :  { %3197 = vmatpush3.bf16.msra.mxu0 %v3785_v0  ;;  %3219 = vmatpush3.bf16.msra.mxu1 %v3786_v1 }
 0x1b7   :  { %3198 = vmatprep.subr.bf16.mxu0 %v3787_v2  ;;  %3220 = vmatprep.subr.bf16.mxu1 %v3788_v3 }
 0x1ba   :  { %3199 = vmatpush3.bf16.msra.mxu0 %v3789_v4  ;;  %3221 = vmatpush3.bf16.msra.mxu1 %v3790_v5 }
 0x1bb   :  { %3200 = vmatprep.subr.bf16.mxu0 %v3791_v6  ;;  %3222 = vmatprep.subr.bf16.mxu1 %v3792_v7 }
 0x1be   :  { %3201 = vmatpush3.bf16.msra.mxu0 %v3793_v8  ;;  %3223 = vmatpush3.bf16.msra.mxu1 %v3794_v9 }
 0x1bf   :  { %3239 = vmatprep.subr.bf16.mxu0 %v4003_v10 }
 0x274   :  { %v2129_v22 = vpop.f32.mrb[0].mxu0  ;;  %v2344_v23 = vpop.f32.mrb[0].mxu1 }
 0x275   :  { %v3259_v24 = vadd.f32 %v2129_v22, %v420_v18  ;;  %v3263_v25 = vadd.f32 %v2344_v23, %v428_v19  ;;  %v2131_v26 = vpop.f32.mrb[1].mxu0  ;;  %v2346_v27 = vpop.f32.mrb[1].mxu1 }
 0x276   :  { %v3260_v28 = vadd.f32 %v2131_v26, %v424_v20  ;;  %v3264_v29 = vadd.f32 %v2346_v27, %v432_v21  ;;  %v2133_v30 = vpop.f32.mrb[2].mxu0  ;;  %v2348_v31 = vpop.f32.mrb[2].mxu1 }
 0x277   :  { %v3261_v32 = vadd.f32 %v2133_v30, %v420_v18  ;;  %v3265_v33 = vadd.f32 %v2348_v31, %v428_v19  ;;  %v2135_v34 = vpop.f32.mrb[3].mxu0  ;;  %v2350_v35 = vpop.f32.mrb[3].mxu1  ;;  %v2353_v38 = vmax.f32 %v3259_v24, 0.0  ;;  %v2355_v39 = vmax.f32 %v3263_v25, 0.0 }
 0x278   :  { %v3262_v36 = vadd.f32 %v2135_v34, %v424_v20  ;;  %v3266_v37 = vadd.f32 %v2350_v35, %v432_v21  ;;  %v2354_v42 = vmax.f32 %v3260_v28, 0.0  ;;  %v2356_v43 = vmax.f32 %v3264_v29, 0.0 }
 0x279   :  { %v2357_v40 = vmax.f32 %v3261_v32, 0.0  ;;  %v2359_v41 = vmax.f32 %v3265_v33, 0.0 }
 0x27a   :  { %v2358_v44 = vmax.f32 %v3262_v36, 0.0  ;;  %v2360_v45 = vmax.f32 %v3266_v37, 0.0 }
 0x27b   :  { %v2361_v46 = vpack.c.bf16 %v2357_v40, %v2353_v38  ;;  %v2363_v47 = vpack.c.bf16 %v2359_v41, %v2355_v39 }
 0x27c   :  { %v2362_v48 = vpack.c.bf16 %v2358_v44, %v2354_v42  ;;  %v2364_v49 = vpack.c.bf16 %v2360_v45, %v2356_v43 }
 0x27e   :  { %2660 = vmatprep.mubr.bf16.mxu0 %v2362_v48  ;;  %2701 = vmatprep.mubr.bf16.mxu1 %v2364_v49 }
 0x27f   :  { %2661 = vmatmul.mubr.bf16.vlgmr.msra.gmra.mrb[4].mxu0 %v2361_v46  ;;  %2702 = vmatmul.mubr.bf16.vlgmr.msra.gmra.mrb[4].mxu1 %v2363_v47 }
 0x280   :  { %3240 = vmatpush3.bf16.msra.mxu0 %v3795_v50  ;;  %3255 = vmatprep.mubr.msk.bf16.mxu0 %vm4004_vm0, %v4003_v10 }
 0x281   :  { %3241 = vmatprep.subr.bf16.mxu0 %v4003_v10 }
 0x284   :  { %3242 = vmatpush3.bf16.msra.mxu0 %v3796_v51 }
 0x285   :  { %3243 = vmatprep.subr.bf16.mxu0 %v4003_v10 }
 0x288   :  { %3244 = vmatpush3.bf16.msra.mxu0 %v3797_v52 }
 0x289   :  { %3245 = vmatprep.subr.bf16.mxu0 %v4003_v10 }
 0x28c   :  { %3246 = vmatpush3.bf16.msra.mxu0 %v3798_v53 }
 0x28d   :  { %3247 = vmatprep.subr.bf16.mxu0 %v4003_v10 }
 0x290   :  { %3248 = vmatpush3.bf16.msra.mxu0 %v3799_v54 }
 0x291   :  { %3249 = vmatprep.subr.bf16.mxu0 %v4003_v10 }
 0x294   :  { %3250 = vmatpush3.bf16.msra.mxu0 %v3800_v55 }
 0x295   :  { %3251 = vmatprep.subr.bf16.mxu0 %v4003_v10 }
 0x298   :  { %3252 = vmatpush3.bf16.msra.mxu0 %v3801_v56 }
 0x299   :  { %3253 = vmatprep.subr.bf16.mxu0 %v4003_v10 }
 0x29c   :  { %3254 = vmatpush3.bf16.msra.mxu0 %v3802_v57 }
 0x352   :  { %v3202_v58 = vpop.f32.mrb[4].mxu0  ;;  %v3224_v59 = vpop.f32.mrb[4].mxu1 }
 0x353   :  { %v3203_v61 = vpop.f32.mrb[5].mxu0  ;;  %v3225_v62 = vpop.f32.mrb[5].mxu1 }
 0x354   :  { %v3204_v63 = vadd.f32 %v3203_v61, %v3202_v58  ;;  %v3226_v0 = vadd.f32 %v3225_v62, %v3224_v59  ;;  %v3205_v1 = vpop.f32.mrb[6].mxu0  ;;  %v3227_v2 = vpop.f32.mrb[6].mxu1 }
 0x355   :  { %v3206_v3 = vpop.f32.mrb[7].mxu0  ;;  %v3228_v4 = vpop.f32.mrb[7].mxu1 }
 0x356   :  { %v2663_v5 = vadd.f32 %v3204_v63, %v3144_v60  ;;  %v3207_v6 = vadd.f32 %v3206_v3, %v3205_v1  ;;  %v3229_v7 = vadd.f32 %v3228_v4, %v3227_v2 }
 0x358   :  { %v2704_v8 = vadd.f32 %v3226_v0, %v2663_v5  ;;  %v2666_v9 = vadd.f32 %v3207_v6, %v3144_v60 }
 0x35a   :  { %v2707_v11 = vadd.f32 %v3229_v7, %v2666_v9  ;;  %v2710_v12 = vmax.f32 %v2704_v8, 0.0 }
 0x35c   :  { %v2711_v13 = vmax.f32 %v2707_v11, 0.0 }
 0x35e   :  { %v2712_v10 = vpack.c.bf16 %v2711_v13, %v2710_v12 }
 0x360   :  { %3256 = vmatmul.mubr.bf16.vlgmr.msra.gmra.mrb[8].mxu0 %v2712_v10 }
 0x433   :  { %v2818_v15 = vpop.f32.mrb[8].mxu0 }
 0x434   :  { %v2819_v16 = vadd.f32 %v3177_v14, %v2818_v15  ;;  %v3257_v17 = vpop.f32.mrb[9].mxu0 }
 0x435   :  { %v2821_v18 = vpop.f32.mrb[10].mxu0 }
 0x436   :  { %2825 = vst [vmem:[#allocation14] sm:$0xff] %v2819_v16  ;;  %v2822_v19 = vadd.f32 %v3177_v14, %v2821_v18  ;;  %v3258_v20 = vpop.f32.mrb[11].mxu0 }
 0x438   :  { %2826 = vst [vmem:[#allocation14 + $0x8] sm:$0xff] %v2822_v19 }
 0x439   :  { %3968 = shalt.err (!%p3965_p4)
}
 0x43a   :  { %s3969_s16 = scalar_lea.hbm %s4167_s7, 256 }
 0x43b   :  { %p3970_p5 = scmp.ne.s32.totalorder %s4167_s7, %s3969_s16  ;;  %p3973_p6 = scmp.lt.u32.totalorder %s3969_s16, %s4167_s7 }
 0x43d   :  { %p3975_p7 = pnand %p3973_p6, %p3970_p5 }
 0x43f   :  { %3978 = shalt.err (!%p3975_p7)
}
 0x440   :  { %s4006_s21 = smov 128   ;;  %s4007_s22 = smov 8  }
 0x441   :  { %2838 = dma.vmem_to_hbm [thread:$0]  %s2833_s15, 256, %s4167_s7, [#allocation4], %s4006_s21, %s4006_s21, %s4007_s22  }
 0x442   :  { %3987 = dma.done.wait [#allocation4], 256  }
 0x443   :  { %3988 = vsyncadd [#allocation4], 4294967040 }
 0x444   :  { %2842 = vsyncpa [#allocation3], 1 }
 0x445   :  { %2843 = vsyncpa [#allocation6], 1 }
 0x446   :  { %2844 = vsyncpa [#allocation9], 1 }
 0x447   :  { %2845 = vsyncpa [#allocation12], 1 }
 0x448   :  { %2846 = vsyncpa [#allocation4], 1 }

</bundles_post_ra>
